<compile_context>
chip_gen: v7x
topology: tpu7x:2x2x1
jax: 0.10.0
libtpu: 0.0.40
codegen_flags: <defaults>
</compile_context>

<pallas_src>
import functools

import jax
import jax.numpy as jnp
from jax.experimental import pallas as pl
from jax.experimental.pallas import tpu as pltpu

INPUT_SIZE = 204
LAYER_SIZE = 20
N_LAYERS = 3
N_CLASSES = 6


def _round_up(n, m):
    return ((n + m - 1) // m) * m


def _sigmoid(h):
    # sigmoid(x) == 0.5 * (tanh(x/2) + 1): single EUP transcendental per element
    # instead of exp + reciprocal.
    return 0.5 * (jnp.tanh(0.5 * h) + 1.0)


def _mlp_ce_kernel(x_ref, lab_ref,
                   w0_ref, b0_ref, w1_ref, b1_ref, w2_ref, b2_ref,
                   wf_ref, bf_ref,
                   loss_ref, *, batch_size, needs_mask):
    """One batch tile: MLP forward + cross-entropy partial sum.

    Writes a single per-tile partial sum into loss_ref (shape (1,1,1)); tiles are
    fully independent so the grid axis can be megacore-parallel.
    """
    step = pl.program_id(0)
    tb = x_ref.shape[0]

    # Hidden layers: sigmoid(h @ W + b).  Compute in f32 regardless of the
    # (possibly bf16) storage dtype of x; matmuls accumulate in f32 on the MXU.
    h = x_ref[...].astype(jnp.float32)
    h = _sigmoid(
        jnp.dot(h, w0_ref[...], preferred_element_type=jnp.float32) + b0_ref[...])
    h = _sigmoid(
        jnp.dot(h, w1_ref[...], preferred_element_type=jnp.float32) + b1_ref[...])
    h = _sigmoid(
        jnp.dot(h, w2_ref[...], preferred_element_type=jnp.float32) + b2_ref[...])

    # Final linear layer -> logits (tb, N_CLASSES).
    logits = jnp.dot(h, wf_ref[...], preferred_element_type=jnp.float32) + bf_ref[...]

    # Cross-entropy terms: logsumexp(logits) - logits[target].
    m = jnp.max(logits, axis=-1, keepdims=True)                                # (tb,1)
    lse = m + jnp.log(jnp.sum(jnp.exp(logits - m), axis=-1, keepdims=True))    # (tb,1)

    labels = lab_ref[...]                                          # (tb, 1) int32
    cls = jax.lax.broadcasted_iota(jnp.int32, logits.shape, 1)     # (tb, C)
    onehot = (cls == labels).astype(jnp.float32)
    tgt = jnp.sum(logits * onehot, axis=-1, keepdims=True)         # (tb, 1)

    per_row = lse - tgt                                            # (tb, 1)

    if needs_mask:
        last = pl.num_programs(0) - 1

        @pl.when(step != last)
        def _full_tile():
            loss_ref[...] = jnp.sum(per_row).reshape(1, 1, 1)

        @pl.when(step == last)
        def _masked_tile():
            # Only the last tile contains padded rows; mask them out there.
            rows = step * tb + jax.lax.broadcasted_iota(jnp.int32, (tb, 1), 0)
            valid = (rows < batch_size).astype(jnp.float32)
            loss_ref[...] = jnp.sum(per_row * valid).reshape(1, 1, 1)
    else:
        loss_ref[...] = jnp.sum(per_row).reshape(1, 1, 1)


def generic_nn_salinasA_loss(x, labels, params, *, block_b=2048,
                             x_dtype=jnp.bfloat16):
    """Mean cross-entropy loss of the SalinasA MLP, fused in one Pallas kernel.

    x: (B, 204) float, labels: (B,) integer classes, params: dict of weights/biases.
    block_b: batch tile size (rounded to a multiple of 16 sublanes; default 2048
             to amortize per-grid-step overhead).
    x_dtype: storage dtype of the streamed x (default bf16 to halve HBM traffic
             of the dominant operand; pass None / jnp.float32 for exact f32).
    """
    B = x.shape[0]
    if x_dtype is not None:
        x = x.astype(x_dtype)

    # Batch tile: multiple of 16 sublanes covers both f32 (8) and bf16 (16) packing.
    tb = _round_up(min(block_b, B), 16)
    b_pad = _round_up(B, tb)
    num_tiles = b_pad // tb
    needs_mask = b_pad != B

    if needs_mask:
        x = jnp.pad(x, ((0, b_pad - B), (0, 0)))
        labels = jnp.pad(labels, (0, b_pad - B))
    labels2d = labels.reshape(b_pad, 1).astype(jnp.int32)

    def as_row(b):
        return b if b.ndim == 2 else b.reshape(1, -1)

    w0, b0 = params["weight_0"], as_row(params["bias_0"])
    w1, b1 = params["weight_1"], as_row(params["bias_1"])
    w2, b2 = params["weight_2"], as_row(params["bias_2"])
    wf, bf = params["final_weight"], as_row(params["final_bias"])

    def resident(shape):
        # Full-array block with a constant block index: stays VMEM-resident.
        return pl.BlockSpec(shape, lambda i: (0, 0))

    in_specs = [
        pl.BlockSpec((tb, INPUT_SIZE), lambda i: (i, 0)),   # x tile (pipelined)
        pl.BlockSpec((tb, 1), lambda i: (i, 0)),            # labels tile
        resident(w0.shape), resident(b0.shape),
        resident(w1.shape), resident(b1.shape),
        resident(w2.shape), resident(b2.shape),
        resident(wf.shape), resident(bf.shape),
    ]

    partial = pl.pallas_call(
        functools.partial(_mlp_ce_kernel, batch_size=B, needs_mask=needs_mask),
        grid=(num_tiles,),
        in_specs=in_specs,
        # One partial sum per tile; (1,1,1) block keeps the last two dims equal
        # to the full array dims (no (8,128) constraint issue) and every grid
        # step writes a distinct block -> safe under "parallel"/megacore.
        out_specs=pl.BlockSpec((1, 1, 1), lambda i: (i, 0, 0)),
        out_shape=jax.ShapeDtypeStruct((num_tiles, 1, 1), jnp.float32),
        compiler_params=pltpu.CompilerParams(
            dimension_semantics=("parallel",),
            vmem_limit_bytes=32 * 1024 * 1024,
        ),
    )(x, labels2d, w0, b0, w1, b1, w2, b2, wf, bf)

    # Final reduction + mean in plain JAX (tiny: num_tiles elements).
    return jnp.sum(partial) / B


def init_params(key):
    """Deterministic parameter init mirroring the PyTorch __init__ shapes."""
    params = {}
    in_size = INPUT_SIZE
    keys = jax.random.split(key, N_LAYERS + 1)
    for i in range(N_LAYERS):
        params[f"weight_{i}"] = jax.random.normal(
            keys[i], (in_size, LAYER_SIZE), dtype=jnp.float32)
        params[f"bias_{i}"] = jnp.zeros((LAYER_SIZE,), dtype=jnp.float32)
        in_size = LAYER_SIZE
    params["final_weight"] = jax.random.normal(
        keys[N_LAYERS], (in_size, N_CLASSES), dtype=jnp.float32)
    params["final_bias"] = jnp.zeros((N_CLASSES,), dtype=jnp.float32)
    return params


def _reference_loss(x, labels, params):
    """Pure-JAX reference (matches PyTorch forward with nn.CrossEntropyLoss)."""
    h = x
    for i in range(N_LAYERS):
        h = jax.nn.sigmoid(h @ params[f"weight_{i}"] + params[f"bias_{i}"])
    logits = h @ params["final_weight"] + params["final_bias"]
    logp = jax.nn.log_softmax(logits, axis=-1)
    return -jnp.mean(jnp.take_along_axis(logp, labels[:, None], axis=-1))


if __name__ == "__main__":
    key = jax.random.PRNGKey(0)
    k_params, k_x, k_y = jax.random.split(key, 3)

    params = init_params(k_params)

    # Non-multiple-of-tile batch to exercise padding masking.
    B = 300
    x = jax.random.normal(k_x, (B, INPUT_SIZE), dtype=jnp.float32)
    labels = jax.random.randint(k_y, (B,), 0, N_CLASSES, dtype=jnp.int32)

    # Exact f32 path (default big tile -> single partially-masked tile).
    loss_f32 = generic_nn_salinasA_loss(x, labels, params, x_dtype=jnp.float32)
    loss_f32 = jax.block_until_ready(loss_f32)
    ref_f32 = jax.block_until_ready(_reference_loss(x, labels, params))
    assert jnp.allclose(loss_f32, ref_f32, rtol=1e-5, atol=1e-5), (loss_f32, ref_f32)

    # Default bf16 x-streaming path with a small tile to exercise multi-tile
    # partial sums + last-step-only masking (5 tiles, last one padded).
    loss_bf16 = generic_nn_salinasA_loss(x, labels, params, block_b=64)
    loss_bf16 = jax.block_until_ready(loss_bf16)
    ref_bf16 = jax.block_until_ready(
        _reference_loss(x.astype(jnp.bfloat16).astype(jnp.float32), labels, params))
    assert jnp.allclose(loss_bf16, ref_bf16, rtol=1e-3, atol=1e-3), (loss_bf16, ref_bf16)

    print("KERNEL_OK")
</pallas_src>

<mosaic_0001>
module attributes {stable_mosaic.version = 11 : i64} {
  func.func @_mlp_ce_kernel(%arg0: i32, %arg1: memref<304x204xf32, #tpu.memory_space<vmem>>, %arg2: memref<304x1xi32, #tpu.memory_space<vmem>>, %arg3: memref<204x20xf32, #tpu.memory_space<vmem>>, %arg4: memref<1x20xf32, #tpu.memory_space<vmem>>, %arg5: memref<20x20xf32, #tpu.memory_space<vmem>>, %arg6: memref<1x20xf32, #tpu.memory_space<vmem>>, %arg7: memref<20x20xf32, #tpu.memory_space<vmem>>, %arg8: memref<1x20xf32, #tpu.memory_space<vmem>>, %arg9: memref<20x6xf32, #tpu.memory_space<vmem>>, %arg10: memref<1x6xf32, #tpu.memory_space<vmem>>, %arg11: memref<1x1x1xf32, #tpu.memory_space<vmem>>) attributes {dimension_semantics = [#tpu.dimension_semantics<parallel>], iteration_bounds = array<i64: 1>, scalar_prefetch = 0 : i64, scratch_operands = 0 : i64, tpu.core_type = #tpu.core_type<tc>, window_params = [{transform_indices = @transform_0, window_bounds = array<i64: 304, 204>}, {transform_indices = @transform_1, window_bounds = array<i64: 304, 1>}, {pipeline_mode = #tpu.pipeline_mode<synchronous>, transform_indices = @transform_2, window_bounds = array<i64: 204, 20>}, {pipeline_mode = #tpu.pipeline_mode<synchronous>, transform_indices = @transform_3, window_bounds = array<i64: 1, 20>}, {pipeline_mode = #tpu.pipeline_mode<synchronous>, transform_indices = @transform_4, window_bounds = array<i64: 20, 20>}, {pipeline_mode = #tpu.pipeline_mode<synchronous>, transform_indices = @transform_5, window_bounds = array<i64: 1, 20>}, {pipeline_mode = #tpu.pipeline_mode<synchronous>, transform_indices = @transform_6, window_bounds = array<i64: 20, 20>}, {pipeline_mode = #tpu.pipeline_mode<synchronous>, transform_indices = @transform_7, window_bounds = array<i64: 1, 20>}, {pipeline_mode = #tpu.pipeline_mode<synchronous>, transform_indices = @transform_8, window_bounds = array<i64: 20, 6>}, {pipeline_mode = #tpu.pipeline_mode<synchronous>, transform_indices = @transform_9, window_bounds = array<i64: 1, 6>}, {transform_indices = @transform_10, window_bounds = array<i64: 1, 1, 1>}]} {
    %c0 = arith.constant 0 : index
    %c0_0 = arith.constant 0 : index
    %0 = vector.load %arg1[%c0, %c0_0] : memref<304x204xf32, #tpu.memory_space<vmem>>, vector<304x204xf32>
    %c0_1 = arith.constant 0 : index
    %c0_2 = arith.constant 0 : index
    %1 = vector.load %arg3[%c0_1, %c0_2] : memref<204x20xf32, #tpu.memory_space<vmem>>, vector<204x20xf32>
    %cst = arith.constant dense<0.000000e+00> : vector<304x20xf32>
    %2 = tpu.matmul %0, %1, %cst {dimension_numbers = #tpu.dot_dimension_numbers<[1], [0], [0], [1], [0, 0, 1, 1], [], []>} : vector<304x204xf32>, vector<204x20xf32>, vector<304x20xf32> -> vector<304x20xf32>
    %c0_3 = arith.constant 0 : index
    %c0_4 = arith.constant 0 : index
    %3 = vector.load %arg4[%c0_3, %c0_4] : memref<1x20xf32, #tpu.memory_space<vmem>>, vector<1x20xf32>
    %4 = vector.broadcast %3 : vector<1x20xf32> to vector<304x20xf32>
    %5 = arith.addf %2, %4 : vector<304x20xf32>
    %cst_5 = arith.constant 5.000000e-01 : f32
    %6 = vector.broadcast %cst_5 : f32 to vector<304x20xf32>
    %7 = arith.mulf %6, %5 : vector<304x20xf32>
    %8 = math.tanh %7 : vector<304x20xf32>
    %cst_6 = arith.constant 1.000000e+00 : f32
    %9 = vector.broadcast %cst_6 : f32 to vector<304x20xf32>
    %10 = arith.addf %8, %9 : vector<304x20xf32>
    %cst_7 = arith.constant 5.000000e-01 : f32
    %11 = vector.broadcast %cst_7 : f32 to vector<304x20xf32>
    %12 = arith.mulf %11, %10 : vector<304x20xf32>
    %c0_8 = arith.constant 0 : index
    %c0_9 = arith.constant 0 : index
    %13 = vector.load %arg5[%c0_8, %c0_9] : memref<20x20xf32, #tpu.memory_space<vmem>>, vector<20x20xf32>
    %cst_10 = arith.constant dense<0.000000e+00> : vector<304x20xf32>
    %14 = tpu.matmul %12, %13, %cst_10 {dimension_numbers = #tpu.dot_dimension_numbers<[1], [0], [0], [1], [0, 0, 1, 1], [], []>} : vector<304x20xf32>, vector<20x20xf32>, vector<304x20xf32> -> vector<304x20xf32>
    %c0_11 = arith.constant 0 : index
    %c0_12 = arith.constant 0 : index
    %15 = vector.load %arg6[%c0_11, %c0_12] : memref<1x20xf32, #tpu.memory_space<vmem>>, vector<1x20xf32>
    %16 = vector.broadcast %15 : vector<1x20xf32> to vector<304x20xf32>
    %17 = arith.addf %14, %16 : vector<304x20xf32>
    %cst_13 = arith.constant 5.000000e-01 : f32
    %18 = vector.broadcast %cst_13 : f32 to vector<304x20xf32>
    %19 = arith.mulf %18, %17 : vector<304x20xf32>
    %20 = math.tanh %19 : vector<304x20xf32>
    %cst_14 = arith.constant 1.000000e+00 : f32
    %21 = vector.broadcast %cst_14 : f32 to vector<304x20xf32>
    %22 = arith.addf %20, %21 : vector<304x20xf32>
    %cst_15 = arith.constant 5.000000e-01 : f32
    %23 = vector.broadcast %cst_15 : f32 to vector<304x20xf32>
    %24 = arith.mulf %23, %22 : vector<304x20xf32>
    %c0_16 = arith.constant 0 : index
    %c0_17 = arith.constant 0 : index
    %25 = vector.load %arg7[%c0_16, %c0_17] : memref<20x20xf32, #tpu.memory_space<vmem>>, vector<20x20xf32>
    %cst_18 = arith.constant dense<0.000000e+00> : vector<304x20xf32>
    %26 = tpu.matmul %24, %25, %cst_18 {dimension_numbers = #tpu.dot_dimension_numbers<[1], [0], [0], [1], [0, 0, 1, 1], [], []>} : vector<304x20xf32>, vector<20x20xf32>, vector<304x20xf32> -> vector<304x20xf32>
    %c0_19 = arith.constant 0 : index
    %c0_20 = arith.constant 0 : index
    %27 = vector.load %arg8[%c0_19, %c0_20] : memref<1x20xf32, #tpu.memory_space<vmem>>, vector<1x20xf32>
    %28 = vector.broadcast %27 : vector<1x20xf32> to vector<304x20xf32>
    %29 = arith.addf %26, %28 : vector<304x20xf32>
    %cst_21 = arith.constant 5.000000e-01 : f32
    %30 = vector.broadcast %cst_21 : f32 to vector<304x20xf32>
    %31 = arith.mulf %30, %29 : vector<304x20xf32>
    %32 = math.tanh %31 : vector<304x20xf32>
    %cst_22 = arith.constant 1.000000e+00 : f32
    %33 = vector.broadcast %cst_22 : f32 to vector<304x20xf32>
    %34 = arith.addf %32, %33 : vector<304x20xf32>
    %cst_23 = arith.constant 5.000000e-01 : f32
    %35 = vector.broadcast %cst_23 : f32 to vector<304x20xf32>
    %36 = arith.mulf %35, %34 : vector<304x20xf32>
    %c0_24 = arith.constant 0 : index
    %c0_25 = arith.constant 0 : index
    %37 = vector.load %arg9[%c0_24, %c0_25] : memref<20x6xf32, #tpu.memory_space<vmem>>, vector<20x6xf32>
    %cst_26 = arith.constant dense<0.000000e+00> : vector<304x6xf32>
    %38 = tpu.matmul %36, %37, %cst_26 {dimension_numbers = #tpu.dot_dimension_numbers<[1], [0], [0], [1], [0, 0, 1, 1], [], []>} : vector<304x20xf32>, vector<20x6xf32>, vector<304x6xf32> -> vector<304x6xf32>
    %c0_27 = arith.constant 0 : index
    %c0_28 = arith.constant 0 : index
    %39 = vector.load %arg10[%c0_27, %c0_28] : memref<1x6xf32, #tpu.memory_space<vmem>>, vector<1x6xf32>
    %40 = vector.broadcast %39 : vector<1x6xf32> to vector<304x6xf32>
    %41 = arith.addf %38, %40 : vector<304x6xf32>
    %cst_29 = arith.constant dense<0xFF800000> : vector<304xf32>
    %42 = vector.multi_reduction <maximumf>, %41, %cst_29 [1] : vector<304x6xf32> to vector<304xf32>
    %43 = vector.shape_cast %42 : vector<304xf32> to vector<304x1xf32>
    %44 = vector.broadcast %43 : vector<304x1xf32> to vector<304x6xf32>
    %45 = arith.subf %41, %44 : vector<304x6xf32>
    %46 = math.exp %45 : vector<304x6xf32>
    %cst_30 = arith.constant dense<0.000000e+00> : vector<304xf32>
    %47 = vector.multi_reduction <add>, %46, %cst_30 [1] : vector<304x6xf32> to vector<304xf32>
    %48 = vector.shape_cast %47 : vector<304xf32> to vector<304x1xf32>
    %49 = math.log %48 : vector<304x1xf32>
    %50 = arith.addf %43, %49 : vector<304x1xf32>
    %c0_31 = arith.constant 0 : index
    %c0_32 = arith.constant 0 : index
    %51 = vector.load %arg2[%c0_31, %c0_32] : memref<304x1xi32, #tpu.memory_space<vmem>>, vector<304x1xi32>
    %52 = tpu.iota {dimensions = array<i32: 1>} : vector<304x6xi32>
    %53 = vector.broadcast %51 : vector<304x1xi32> to vector<304x6xi32>
    %54 = arith.cmpi eq, %52, %53 : vector<304x6xi32>
    %55 = arith.extui %54 : vector<304x6xi1> to vector<304x6xi32>
    %56 = arith.sitofp %55 : vector<304x6xi32> to vector<304x6xf32>
    %57 = arith.mulf %41, %56 : vector<304x6xf32>
    %cst_33 = arith.constant dense<0.000000e+00> : vector<304xf32>
    %58 = vector.multi_reduction <add>, %57, %cst_33 [1] : vector<304x6xf32> to vector<304xf32>
    %59 = vector.shape_cast %58 : vector<304xf32> to vector<304x1xf32>
    %60 = arith.subf %50, %59 : vector<304x1xf32>
    %c0_i32 = arith.constant 0 : i32
    %61 = arith.cmpi ne, %arg0, %c0_i32 : i32
    %62 = arith.extui %61 : i1 to i32
    %c0_i32_34 = arith.constant 0 : i32
    %63 = arith.cmpi ne, %62, %c0_i32_34 : i32
    scf.if %63 {
      %67 = vector.shape_cast %60 : vector<304x1xf32> to vector<1x304x1xf32>
      %cst_37 = arith.constant dense<0.000000e+00> : vector<1xf32>
      %68 = vector.multi_reduction <add>, %67, %cst_37 [1, 2] : vector<1x304x1xf32> to vector<1xf32>
      %69 = vector.shape_cast %68 : vector<1xf32> to vector<1x1x1xf32>
      %70 = vector.extract %69[0, 0, 0] : f32 from vector<1x1x1xf32>
      %71 = vector.broadcast %70 : f32 to vector<1x1x1xf32>
      %c0_38 = arith.constant 0 : index
      %c0_39 = arith.constant 0 : index
      %c0_40 = arith.constant 0 : index
      %72 = vector.load %arg11[%c0_38, %c0_39, %c0_40] : memref<1x1x1xf32, #tpu.memory_space<vmem>>, vector<1x1x1xf32>
      tpu.vector_store %arg11[%c0_38, %c0_39, %c0_40], %71 {strides = array<i32>} : memref<1x1x1xf32, #tpu.memory_space<vmem>>, vector<1x1x1xf32>,
    } else {
    }
    %c0_i32_35 = arith.constant 0 : i32
    %64 = arith.cmpi eq, %arg0, %c0_i32_35 : i32
    %65 = arith.extui %64 : i1 to i32
    %c0_i32_36 = arith.constant 0 : i32
    %66 = arith.cmpi ne, %65, %c0_i32_36 : i32
    scf.if %66 {
      %c304_i32 = arith.constant 304 : i32
      %67 = arith.muli %arg0, %c304_i32 : i32
      %68 = tpu.iota {dimensions = array<i32: 0>} : vector<304x1xi32>
      %69 = vector.broadcast %67 : i32 to vector<304x1xi32>
      %70 = arith.addi %69, %68 : vector<304x1xi32>
      %c300_i32 = arith.constant 300 : i32
      %71 = vector.broadcast %c300_i32 : i32 to vector<304x1xi32>
      %72 = arith.cmpi slt, %70, %71 : vector<304x1xi32>
      %73 = arith.extui %72 : vector<304x1xi1> to vector<304x1xi32>
      %74 = arith.sitofp %73 : vector<304x1xi32> to vector<304x1xf32>
      %75 = arith.mulf %60, %74 : vector<304x1xf32>
      %76 = vector.shape_cast %75 : vector<304x1xf32> to vector<1x304x1xf32>
      %cst_37 = arith.constant dense<0.000000e+00> : vector<1xf32>
      %77 = vector.multi_reduction <add>, %76, %cst_37 [1, 2] : vector<1x304x1xf32> to vector<1xf32>
      %78 = vector.shape_cast %77 : vector<1xf32> to vector<1x1x1xf32>
      %79 = vector.extract %78[0, 0, 0] : f32 from vector<1x1x1xf32>
      %80 = vector.broadcast %79 : f32 to vector<1x1x1xf32>
      %c0_38 = arith.constant 0 : index
      %c0_39 = arith.constant 0 : index
      %c0_40 = arith.constant 0 : index
      %81 = vector.load %arg11[%c0_38, %c0_39, %c0_40] : memref<1x1x1xf32, #tpu.memory_space<vmem>>, vector<1x1x1xf32>
      tpu.vector_store %arg11[%c0_38, %c0_39, %c0_40], %80 {strides = array<i32>} : memref<1x1x1xf32, #tpu.memory_space<vmem>>, vector<1x1x1xf32>,
    } else {
    }
    return
  }
  func.func @transform_0(%arg0: i32) -> (i32, i32) {
    %c0_i32 = arith.constant 0 : i32
    %c0_i32_0 = arith.constant 0 : i32
    return %arg0, %c0_i32 : i32, i32
  }
  func.func @transform_1(%arg0: i32) -> (i32, i32) {
    %c0_i32 = arith.constant 0 : i32
    %c0_i32_0 = arith.constant 0 : i32
    return %arg0, %c0_i32 : i32, i32
  }
  func.func @transform_2(%arg0: i32) -> (i32, i32) {
    %c0_i32 = arith.constant 0 : i32
    %c0_i32_0 = arith.constant 0 : i32
    %c0_i32_1 = arith.constant 0 : i32
    return %c0_i32, %c0_i32_0 : i32, i32
  }
  func.func @transform_3(%arg0: i32) -> (i32, i32) {
    %c0_i32 = arith.constant 0 : i32
    %c0_i32_0 = arith.constant 0 : i32
    %c0_i32_1 = arith.constant 0 : i32
    return %c0_i32, %c0_i32_0 : i32, i32
  }
  func.func @transform_4(%arg0: i32) -> (i32, i32) {
    %c0_i32 = arith.constant 0 : i32
    %c0_i32_0 = arith.constant 0 : i32
    %c0_i32_1 = arith.constant 0 : i32
    return %c0_i32, %c0_i32_0 : i32, i32
  }
  func.func @transform_5(%arg0: i32) -> (i32, i32) {
    %c0_i32 = arith.constant 0 : i32
    %c0_i32_0 = arith.constant 0 : i32
    %c0_i32_1 = arith.constant 0 : i32
    return %c0_i32, %c0_i32_0 : i32, i32
  }
  func.func @transform_6(%arg0: i32) -> (i32, i32) {
    %c0_i32 = arith.constant 0 : i32
    %c0_i32_0 = arith.constant 0 : i32
    %c0_i32_1 = arith.constant 0 : i32
    return %c0_i32, %c0_i32_0 : i32, i32
  }
  func.func @transform_7(%arg0: i32) -> (i32, i32) {
    %c0_i32 = arith.constant 0 : i32
    %c0_i32_0 = arith.constant 0 : i32
    %c0_i32_1 = arith.constant 0 : i32
    return %c0_i32, %c0_i32_0 : i32, i32
  }
  func.func @transform_8(%arg0: i32) -> (i32, i32) {
    %c0_i32 = arith.constant 0 : i32
    %c0_i32_0 = arith.constant 0 : i32
    %c0_i32_1 = arith.constant 0 : i32
    return %c0_i32, %c0_i32_0 : i32, i32
  }
  func.func @transform_9(%arg0: i32) -> (i32, i32) {
    %c0_i32 = arith.constant 0 : i32
    %c0_i32_0 = arith.constant 0 : i32
    %c0_i32_1 = arith.constant 0 : i32
    return %c0_i32, %c0_i32_0 : i32, i32
  }
  func.func @transform_10(%arg0: i32) -> (i32, i32, i32) {
    %c0_i32 = arith.constant 0 : i32
    %c0_i32_0 = arith.constant 0 : i32
    %c0_i32_1 = arith.constant 0 : i32
    return %arg0, %c0_i32, %c0_i32_0 : i32, i32, i32
  }
}

</mosaic_0001>

<bundles_post_ra>
// kernel: tpu_custom_call.1
= control target key start
LH: loop header
LB: loop body
LE: loop exit
PB: predicated region body
PF: predicated region fallthrough
CT: control target
= control target key end

     0   :  { %15 = vsyncpa [#allocation3], 0  ;;  %s5865_s0 = inlined_call_operand.hbm [shape: f32[304,204], index: 0, kind: input, shape index: {}]   ;;  %s5866_s1 = inlined_call_operand.vmem [shape: s32[304,1], index: 1, kind: input, shape index: {}]   ;;  %s5867_s2 = inlined_call_operand.vmem [shape: f32[204,20], index: 2, kind: input, shape index: {}]   ;;  %s5868_s3 = inlined_call_operand.vmem [shape: f32[1,20], index: 3, kind: input, shape index: {}]   ;;  %s5869_s4 = inlined_call_operand.vmem [shape: f32[20,20], index: 4, kind: input, shape index: {}]   ;;  %s5870_s5 = inlined_call_operand.vmem [shape: f32[1,20], index: 5, kind: input, shape index: {}]   ;;  %s5871_s6 = inlined_call_operand.vmem [shape: f32[20,20], index: 6, kind: input, shape index: {}]   ;;  %s5872_s7 = inlined_call_operand.vmem [shape: f32[1,20], index: 7, kind: input, shape index: {}]   ;;  %s5873_s8 = inlined_call_operand.vmem [shape: f32[20,6], index: 8, kind: input, shape index: {}]   ;;  %s5874_s9 = inlined_call_operand.vmem [shape: f32[1,6], index: 9, kind: input, shape index: {}]   ;;  %s5875_s10 = inlined_call_operand.hbm [shape: f32[1,1,1], index: 10, kind: output, shape index: {}]  }
   0x1   :  { %16 = vsyncpa [#allocation4], 0  ;;  %s4488_s13 = smov [#allocation2]   ;;  %s4440_s17 = scalar_lea.hbm %s5865_s0, 9728 }
   0x2   :  { %s22_s14 = sshll.u32 %s4488_s13, 4  ;;  %p4441_p0 = scmp.ne.s32.totalorder %s5865_s0, %s4440_s17  ;;  %s23_s14 = int_to_ptr.vmem [resolvable:$true] %s22_s14 }
   0x3   :  { %p4444_p1 = scmp.lt.u32.totalorder %s4440_s17, %s5865_s0 }
   0x5   :  { %p4446_p2 = pnand %p4444_p1, %p4441_p0 }
   0x7   :  { %4449 = shalt.err (!%p4446_p2)
}
   0x8   :  { %s4450_s22 = scalar_lea.vmem %s23_s14, 9728  ;;  %p4455_p4 = scmp.lt.s32.totalorder %s23_s14, %s23_s14 }
   0x9   :  { %p4451_p3 = scmp.ne.s32.totalorder %s23_s14, %s4450_s22  ;;  %p4456_p5 = scmp.lt.s32.totalorder %s4450_s22, %s4450_s22 }
   0xb   :  { %p4457_p6 = por %p4456_p5, %p4455_p4 }
   0xd   :  { %p4458_p7 = pnand %p4457_p6, %p4451_p3 }
   0xf   :  { %4461 = shalt.err (!%p4458_p7)
}
  0x10   :  { %s4489_s23 = smov 256   ;;  %s4490_s24 = smov 16  }
  0x11   :  { %28 = dma.hbm_to_vmem [thread:$0]  %s5865_s0, 9728, %s23_s14, [#allocation3], %s4489_s23, %s4489_s23, %s4490_s24  }
  0x12   :  { %4484 = dma.done.wait [#allocation3], 9728  }
  0x13   :  { %4485 = vsyncadd [#allocation3], 4294957568  ;;  %v4491_v0 = vmov 0.0|0.0   ;;  %v126_v1 = vld [vmem:[%s5867_s2] sm:$0xff]  ;;  %v127_v2 = vld [vmem:[%s5867_s2 + $0x8] sm:$0xff]  ;;  %vm159_vm0 = vcmask 621568  }
  0x14   :  { %3992 = vmatprep.subr.bf16.mxu0 %v4491_v0  ;;  %v128_v3 = vld [vmem:[%s5867_s2 + $0x10] sm:$0xff]  ;;  %v3993_v4 = vpack.c.bf16 %v127_v2, %v126_v1  ;;  %v129_v5 = vld [vmem:[%s5867_s2 + $0x18] sm:$0xff]  ;;  %v130_v7 = vld [vmem:[%s5867_s2 + $0x20] sm:$0xff]  ;;  %vm274_vm1 = vcmask 1043456   ;;  %vm4492_vm2 = vmmov 1   ;;  %vm695_vm4 = vcmask 162816  }
  0x15   :  { %v3996_v6 = vpack.c.bf16 %v129_v5, %v128_v3  ;;  %v131_v8 = vld [vmem:[%s5867_s2 + $0x28] sm:$0xff]  ;;  %v132_v10 = vld [vmem:[%s5867_s2 + $0x30] sm:$0xff]  ;;  %v133_v11 = vld [vmem:[%s5867_s2 + $0x38] sm:$0xff]  ;;  %vm2136_vm6 = vcmask 48128  }
  0x16   :  { %3994 = vmatpush1.bf16.msra.mxu0 %v3993_v4  ;;  %v3999_v9 = vpack.c.bf16 %v131_v8, %v130_v7  ;;  %v51_v12 = vld [vmem:[#allocation2 + $0x8] sm:$0xff]  ;;  %v4002_v13 = vpack.c.bf16 %v133_v11, %v132_v10  ;;  %v134_v14 = vld [vmem:[%s5867_s2 + $0x40] sm:$0xff]  ;;  %v136_v17 = vld [vmem:[%s5867_s2 + $0x50] sm:$0xff] }
  0x17   :  { %3995 = vmatprep.subr.bf16.mxu0 %v4491_v0  ;;  %3483 = vmatprep.mubr.msk.f32.mxu0 %vm159_vm0, %v51_v12  ;;  %v135_v15 = vld [vmem:[%s5867_s2 + $0x48] sm:$0xff]  ;;  %v137_v18 = vld [vmem:[%s5867_s2 + $0x58] sm:$0xff]  ;;  %v138_v20 = vld [vmem:[%s5867_s2 + $0x60] sm:$0xff] }
  0x18   :  { %v4005_v16 = vpack.c.bf16 %v135_v15, %v134_v14  ;;  %v4008_v19 = vpack.c.bf16 %v137_v18, %v136_v17  ;;  %v139_v21 = vld [vmem:[%s5867_s2 + $0x68] sm:$0xff]  ;;  %v685_v22 = vld [vmem:[%s5869_s4] sm:$0xff]  ;;  %v140_v25 = vld [vmem:[%s5867_s2 + $0x70] sm:$0xff] }
  0x19   :  { %v4011_v23 = vpack.c.bf16 %v139_v21, %v138_v20  ;;  %v686_v24 = vld [vmem:[%s5869_s4 + $0x8] sm:$0xff]  ;;  %v141_v26 = vld [vmem:[%s5867_s2 + $0x78] sm:$0xff]  ;;  %v142_v29 = vld [vmem:[%s5867_s2 + $0x80] sm:$0xff] }
  0x1a   :  { %3997 = vmatpush1.bf16.msra.mxu0 %v3996_v6  ;;  %v4032_v27 = vpack.c.bf16 %v686_v24, %v685_v22  ;;  %v4014_v28 = vpack.c.bf16 %v141_v26, %v140_v25  ;;  %v143_v30 = vld [vmem:[%s5867_s2 + $0x88] sm:$0xff]  ;;  %v144_v32 = vld [vmem:[%s5867_s2 + $0x90] sm:$0xff]  ;;  %v145_v33 = vld [vmem:[%s5867_s2 + $0x98] sm:$0xff] }
  0x1b   :  { %3998 = vmatprep.subr.bf16.mxu0 %v4491_v0  ;;  %v4017_v31 = vpack.c.bf16 %v143_v30, %v142_v29  ;;  %v4020_v34 = vpack.c.bf16 %v145_v33, %v144_v32  ;;  %v146_v35 = vld [vmem:[%s5867_s2 + $0xa0] sm:$0xff]  ;;  %v147_v36 = vld [vmem:[%s5867_s2 + $0xa8] sm:$0xff]  ;;  %v148_v38 = vld [vmem:[%s5867_s2 + $0xb0] sm:$0xff] }
  0x1c   :  { %4044 = vmatprep.subr.bf16.mxu1 %v4032_v27  ;;  %v4023_v37 = vpack.c.bf16 %v147_v36, %v146_v35  ;;  %v149_v39 = vld [vmem:[%s5867_s2 + $0xb8] sm:$0xff]  ;;  %v150_v41 = vld [vmem:[%s5867_s2 + $0xc0] sm:$0xff]  ;;  %v151_v42 = vld [vmem:[%s5867_s2 + $0xc8] sm:$0xf] }
  0x1d   :  { %4046 = vmatpush3.bf16.msra.mxu1 %v4032_v27  ;;  %v4026_v40 = vpack.c.bf16 %v149_v39, %v148_v38  ;;  %v4029_v43 = vpack.c.bf16 %v151_v42, %v150_v41  ;;  %vm4030_vm3 = vmpackc.low %vm274_vm1, %vm4492_vm2  ;;  %v50_v44 = vld [vmem:[#allocation2] sm:$0xff]  ;;  %v53_v45 = vld [vmem:[#allocation2 + $0x18] sm:$0xff] }
  0x1e   :  { %4000 = vmatpush1.bf16.msra.mxu0 %v3999_v9  ;;  %v52_v46 = vld [vmem:[#allocation2 + $0x10] sm:$0xff]  ;;  %v55_v47 = vld [vmem:[#allocation2 + $0x28] sm:$0xff]  ;;  %v54_v48 = vld [vmem:[#allocation2 + $0x20] sm:$0xff] }
  0x1f   :  { %4001 = vmatprep.subr.bf16.mxu0 %v4491_v0  ;;  %v57_v49 = vld [vmem:[#allocation2 + $0x38] sm:$0xff]  ;;  %v56_v50 = vld [vmem:[#allocation2 + $0x30] sm:$0xff]  ;;  %v59_v51 = vld [vmem:[#allocation2 + $0x48] sm:$0xff] }
  0x20   :  { %v58_v52 = vld [vmem:[#allocation2 + $0x40] sm:$0xff]  ;;  %v61_v53 = vld [vmem:[#allocation2 + $0x58] sm:$0xff]  ;;  %v60_v54 = vld [vmem:[#allocation2 + $0x50] sm:$0xff] }
  0x21   :  { %v63_v55 = vld [vmem:[#allocation2 + $0x68] sm:$0xff]  ;;  %v687_v56 = vld [vmem:[%s5869_s4 + $0x10] sm:$0xf]  ;;  %v62_v57 = vld [vmem:[#allocation2 + $0x60] sm:$0xff] }
  0x22   :  { %4003 = vmatpush1.bf16.msra.mxu0 %v4002_v13  ;;  %v65_v58 = vld [vmem:[#allocation2 + $0x78] sm:$0xff]  ;;  %4045 = vmatprep.subr.msk.mxu1 %vm274_vm1, %v687_v56  ;;  %v64_v59 = vld [vmem:[#allocation2 + $0x70] sm:$0xff]  ;;  %v67_v60 = vld [vmem:[#allocation2 + $0x88] sm:$0xff] }
  0x23   :  { %4004 = vmatprep.subr.bf16.mxu0 %v4491_v0  ;;  %4047 = vmatpush3.msk.msra.mxu1 %vm274_vm1, %v687_v56  ;;  %v66_v61 = vld [vmem:[#allocation2 + $0x80] sm:$0xff]  ;;  %v69_v62 = vld [vmem:[#allocation2 + $0x98] sm:$0xff]  ;;  %v68_v63 = vld [vmem:[#allocation2 + $0x90] sm:$0xff] }
  0x24   :  { %v70_v1 = vld [vmem:[#allocation2 + $0xa0] sm:$0xff]  ;;  %v73_v2 = vld [vmem:[#allocation2 + $0xb8] sm:$0xff]  ;;  %v72_v3 = vld [vmem:[#allocation2 + $0xb0] sm:$0xff] }
  0x25   :  { %v75_v4 = vld [vmem:[#allocation2 + $0xc8] sm:$0xff]  ;;  %v74_v5 = vld [vmem:[#allocation2 + $0xc0] sm:$0xff]  ;;  %v77_v6 = vld [vmem:[#allocation2 + $0xd8] sm:$0xff] }
  0x26   :  { %4006 = vmatpush1.bf16.msra.mxu0 %v4005_v16  ;;  %v76_v7 = vld [vmem:[#allocation2 + $0xd0] sm:$0xff]  ;;  %v79_v8 = vld [vmem:[#allocation2 + $0xe8] sm:$0xff]  ;;  %v78_v9 = vld [vmem:[#allocation2 + $0xe0] sm:$0xff] }
  0x27   :  { %4007 = vmatprep.subr.bf16.mxu0 %v4491_v0  ;;  %v81_v10 = vld [vmem:[#allocation2 + $0xf8] sm:$0xff]  ;;  %v80_v11 = vld [vmem:[#allocation2 + $0xf0] sm:$0xff]  ;;  %v83_v12 = vld [vmem:[#allocation2 + $0x108] sm:$0xff] }
  0x28   :  { %v82_v13 = vld [vmem:[#allocation2 + $0x100] sm:$0xff]  ;;  %v85_v14 = vld [vmem:[#allocation2 + $0x118] sm:$0xff]  ;;  %v84_v15 = vld [vmem:[#allocation2 + $0x110] sm:$0xff] }
  0x29   :  { %v87_v16 = vld [vmem:[#allocation2 + $0x128] sm:$0xff]  ;;  %v86_v17 = vld [vmem:[#allocation2 + $0x120] sm:$0xff]  ;;  %v89_v18 = vld [vmem:[#allocation2 + $0x138] sm:$0xff] }
  0x2a   :  { %4009 = vmatpush1.bf16.msra.mxu0 %v4008_v19  ;;  %v88_v19 = vld [vmem:[#allocation2 + $0x130] sm:$0xff]  ;;  %v91_v20 = vld [vmem:[#allocation2 + $0x148] sm:$0xff]  ;;  %v90_v21 = vld [vmem:[#allocation2 + $0x140] sm:$0xff] }
  0x2b   :  { %4010 = vmatprep.subr.bf16.mxu0 %v4491_v0  ;;  %v93_v22 = vld [vmem:[#allocation2 + $0x158] sm:$0xff]  ;;  %v95_v24 = vld [vmem:[#allocation2 + $0x168] sm:$0xff]  ;;  %v94_v25 = vld [vmem:[#allocation2 + $0x160] sm:$0xff] }
  0x2c   :  { %v97_v26 = vld [vmem:[#allocation2 + $0x178] sm:$0xff]  ;;  %v98_v29 = vld [vmem:[#allocation2 + $0x180] sm:$0xff]  ;;  %v103_v32 = vld [vmem:[#allocation2 + $0x1a8] sm:$0xff] }
  0x2d   :  { %v101_v30 = vld [vmem:[#allocation2 + $0x198] sm:$0xff]  ;;  %v102_v33 = vld [vmem:[#allocation2 + $0x1a0] sm:$0xff]  ;;  %v104_v35 = vld [vmem:[#allocation2 + $0x1b0] sm:$0xff] }
  0x2e   :  { %4012 = vmatpush1.bf16.msra.mxu0 %v4011_v23  ;;  %v92_v23 = vld [vmem:[#allocation2 + $0x150] sm:$0xff]  ;;  %v107_v36 = vld [vmem:[#allocation2 + $0x1c8] sm:$0xff]  ;;  %v109_v38 = vld [vmem:[#allocation2 + $0x1d8] sm:$0xff] }
  0x2f   :  { %4013 = vmatprep.subr.bf16.mxu0 %v4491_v0  ;;  %v108_v39 = vld [vmem:[#allocation2 + $0x1d0] sm:$0xff]  ;;  %v110_v41 = vld [vmem:[#allocation2 + $0x1e0] sm:$0xff]  ;;  %v113_v42 = vld [vmem:[#allocation2 + $0x1f8] sm:$0xff] }
  0x32   :  { %4015 = vmatpush1.bf16.msra.mxu0 %v4014_v28  ;;  %v99_v28 = vld [vmem:[#allocation2 + $0x188] sm:$0xff] }
  0x33   :  { %4016 = vmatprep.subr.bf16.mxu0 %v4491_v0 }
  0x36   :  { %4018 = vmatpush1.bf16.msra.mxu0 %v4017_v31  ;;  %v100_v31 = vld [vmem:[#allocation2 + $0x190] sm:$0xff] }
  0x37   :  { %4019 = vmatprep.subr.bf16.mxu0 %v4491_v0 }
  0x3a   :  { %4021 = vmatpush1.bf16.msra.mxu0 %v4020_v34  ;;  %v105_v34 = vld [vmem:[#allocation2 + $0x1b8] sm:$0xff] }
  0x3b   :  { %4022 = vmatprep.subr.bf16.mxu0 %v4491_v0 }
  0x3e   :  { %4024 = vmatpush1.bf16.msra.mxu0 %v4023_v37  ;;  %v106_v37 = vld [vmem:[#allocation2 + $0x1c0] sm:$0xff] }
  0x3f   :  { %4025 = vmatprep.subr.bf16.mxu0 %v4491_v0 }
  0x42   :  { %4027 = vmatpush1.bf16.msra.mxu0 %v4026_v40  ;;  %v111_v40 = vld [vmem:[#allocation2 + $0x1e8] sm:$0xff] }
  0x43   :  { %4028 = vmatprep.subr.bf16.mxu0 %v4491_v0  ;;  %v71_v0 = vld [vmem:[#allocation2 + $0xa8] sm:$0xff] }
  0x46   :  { %4031 = vmatpush1.bf16.msk.msra.mxu0 %vm4030_vm3, %v4029_v43  ;;  %v112_v43 = vld [vmem:[#allocation2 + $0x1f0] sm:$0xff] }
  0x47   :  { %4033 = vmatprep.subr.bf16.mxu0 %v4032_v27 }
  0x49   :  { %343 = vmatmul.mubr.f32.vlgmr.msra.gmra.mrb[0].mxu0 %v50_v44  ;;  %v115_v44 = vld [vmem:[#allocation2 + $0x208] sm:$0xff] }
  0x4a   :  { %3484 = vmatprep.mubr.msk.f32.mxu0 %vm159_vm0, %v53_v45  ;;  %4035 = vmatpush3.bf16.msra.mxu0 %v4032_v27  ;;  %v96_v27 = vld [vmem:[#allocation2 + $0x170] sm:$0xff]  ;;  %v114_v45 = vld [vmem:[#allocation2 + $0x200] sm:$0xff] }
  0x4b   :  { %3807 = vmatprep.subr.msk.mxu0 %vm274_vm1, %v687_v56 }
  0x4d   :  { %348 = vmatmul.mubr.f32.gmra.mrb[2].mxu0 %v52_v46  ;;  %v117_v46 = vld [vmem:[#allocation2 + $0x218] sm:$0xff] }
  0x4e   :  { %3485 = vmatprep.mubr.msk.f32.mxu0 %vm159_vm0, %v55_v47  ;;  %3808 = vmatpush3.msk.msra.mxu0 %vm274_vm1, %v687_v56  ;;  %v116_v47 = vld [vmem:[#allocation2 + $0x210] sm:$0xff]  ;;  %v4709_v56 = vld [vmem:[%s5868_s3] ss:$0 sm:$0xff] }
  0x51   :  { %353 = vmatmul.mubr.f32.gmra.mrb[4].mxu0 %v54_v48  ;;  %v119_v48 = vld [vmem:[#allocation2 + $0x228] sm:$0xff] }
  0x52   :  { %3486 = vmatprep.mubr.msk.f32.mxu0 %vm159_vm0, %v57_v49  ;;  %v118_v49 = vld [vmem:[#allocation2 + $0x220] sm:$0xff] }
  0x55   :  { %358 = vmatmul.mubr.f32.gmra.mrb[6].mxu0 %v56_v50  ;;  %v121_v50 = vld [vmem:[#allocation2 + $0x238] sm:$0xff] }
  0x56   :  { %3487 = vmatprep.mubr.msk.f32.mxu0 %vm159_vm0, %v59_v51  ;;  %v120_v51 = vld [vmem:[#allocation2 + $0x230] sm:$0xff] }
  0x59   :  { %363 = vmatmul.mubr.f32.gmra.mrb[8].mxu0 %v58_v52  ;;  %v123_v52 = vld [vmem:[#allocation2 + $0x248] sm:$0xff] }
  0x5a   :  { %3488 = vmatprep.mubr.msk.f32.mxu0 %vm159_vm0, %v61_v53  ;;  %v122_v53 = vld [vmem:[#allocation2 + $0x240] sm:$0xff] }
  0x5d   :  { %368 = vmatmul.mubr.f32.gmra.mrb[10].mxu0 %v60_v54  ;;  %v125_v54 = vld [vmem:[#allocation2 + $0x258] sm:$0xff] }
  0x5e   :  { %3489 = vmatprep.mubr.msk.f32.mxu0 %vm159_vm0, %v63_v55  ;;  %v124_v55 = vld [vmem:[#allocation2 + $0x250] sm:$0xff] }
  0x61   :  { %373 = vmatmul.mubr.f32.gmra.mrb[12].mxu0 %v62_v57 }
  0x62   :  { %3490 = vmatprep.mubr.msk.f32.mxu0 %vm159_vm0, %v65_v58 }
  0x65   :  { %378 = vmatmul.mubr.f32.gmra.mrb[14].mxu0 %v64_v59 }
  0x66   :  { %3491 = vmatprep.mubr.msk.f32.mxu0 %vm159_vm0, %v67_v60 }
  0x69   :  { %383 = vmatmul.mubr.f32.gmra.mrb[16].mxu0 %v66_v61 }
  0x6a   :  { %3492 = vmatprep.mubr.msk.f32.mxu0 %vm159_vm0, %v69_v62 }
  0x6d   :  { %388 = vmatmul.mubr.f32.gmra.mrb[18].mxu0 %v68_v63 }
  0x6e   :  { %3493 = vmatprep.mubr.msk.f32.mxu0 %vm159_vm0, %v71_v0 }
  0x71   :  { %393 = vmatmul.mubr.f32.gmra.mrb[20].mxu0 %v70_v1 }
  0x72   :  { %3494 = vmatprep.mubr.msk.f32.mxu0 %vm159_vm0, %v73_v2 }
  0x75   :  { %398 = vmatmul.mubr.f32.gmra.mrb[22].mxu0 %v72_v3 }
  0x76   :  { %3495 = vmatprep.mubr.msk.f32.mxu0 %vm159_vm0, %v75_v4 }
  0x79   :  { %403 = vmatmul.mubr.f32.gmra.mrb[24].mxu0 %v74_v5 }
  0x7a   :  { %3496 = vmatprep.mubr.msk.f32.mxu0 %vm159_vm0, %v77_v6 }
  0x7d   :  { %408 = vmatmul.mubr.f32.gmra.mrb[26].mxu0 %v76_v7 }
  0x7e   :  { %3497 = vmatprep.mubr.msk.f32.mxu0 %vm159_vm0, %v79_v8 }
  0x81   :  { %413 = vmatmul.mubr.f32.gmra.mrb[28].mxu0 %v78_v9 }
  0x82   :  { %3498 = vmatprep.mubr.msk.f32.mxu0 %vm159_vm0, %v81_v10 }
  0x85   :  { %418 = vmatmul.mubr.f32.gmra.mrb[30].mxu0 %v80_v11 }
  0x86   :  { %3499 = vmatprep.mubr.msk.f32.mxu0 %vm159_vm0, %v83_v12 }
  0x89   :  { %423 = vmatmul.mubr.f32.gmra.mrb[32].mxu0 %v82_v13 }
  0x8a   :  { %3500 = vmatprep.mubr.msk.f32.mxu0 %vm159_vm0, %v85_v14 }
  0x8d   :  { %428 = vmatmul.mubr.f32.gmra.mrb[34].mxu0 %v84_v15 }
  0x8e   :  { %3501 = vmatprep.mubr.msk.f32.mxu0 %vm159_vm0, %v87_v16 }
  0x91   :  { %433 = vmatmul.mubr.f32.gmra.mrb[36].mxu0 %v86_v17 }
  0x92   :  { %3502 = vmatprep.mubr.msk.f32.mxu0 %vm159_vm0, %v89_v18 }
  0x95   :  { %438 = vmatmul.mubr.f32.gmra.mrb[38].mxu0 %v88_v19 }
  0x96   :  { %3503 = vmatprep.mubr.msk.f32.mxu0 %vm159_vm0, %v91_v20 }
  0x99   :  { %443 = vmatmul.mubr.f32.gmra.mrb[40].mxu0 %v90_v21 }
  0x9a   :  { %3504 = vmatprep.mubr.msk.f32.mxu0 %vm159_vm0, %v93_v22 }
  0x9d   :  { %448 = vmatmul.mubr.f32.gmra.mrb[42].mxu0 %v92_v23 }
  0x9e   :  { %3505 = vmatprep.mubr.msk.f32.mxu0 %vm159_vm0, %v95_v24 }
  0xa1   :  { %453 = vmatmul.mubr.f32.gmra.mrb[44].mxu0 %v94_v25 }
  0xa2   :  { %3506 = vmatprep.mubr.msk.f32.mxu0 %vm159_vm0, %v97_v26 }
  0xa5   :  { %458 = vmatmul.mubr.f32.gmra.mrb[46].mxu0 %v96_v27 }
  0xa6   :  { %3507 = vmatprep.mubr.msk.f32.mxu0 %vm159_vm0, %v99_v28 }
  0xa9   :  { %463 = vmatmul.mubr.f32.gmra.mrb[48].mxu0 %v98_v29 }
  0xaa   :  { %3508 = vmatprep.mubr.msk.f32.mxu0 %vm159_vm0, %v101_v30 }
  0xad   :  { %468 = vmatmul.mubr.f32.gmra.mrb[50].mxu0 %v100_v31 }
  0xae   :  { %3509 = vmatprep.mubr.msk.f32.mxu0 %vm159_vm0, %v103_v32 }
  0xb1   :  { %473 = vmatmul.mubr.f32.gmra.mrb[52].mxu0 %v102_v33 }
  0xb2   :  { %3510 = vmatprep.mubr.msk.f32.mxu0 %vm159_vm0, %v105_v34 }
  0xb5   :  { %478 = vmatmul.mubr.f32.gmra.mrb[54].mxu0 %v104_v35 }
  0xb6   :  { %3511 = vmatprep.mubr.msk.f32.mxu0 %vm159_vm0, %v107_v36 }
  0xb9   :  { %483 = vmatmul.mubr.f32.gmra.mrb[56].mxu0 %v106_v37 }
  0xba   :  { %3512 = vmatprep.mubr.msk.f32.mxu0 %vm159_vm0, %v109_v38 }
  0xbd   :  { %488 = vmatmul.mubr.f32.gmra.mrb[58].mxu0 %v108_v39 }
  0xbe   :  { %3513 = vmatprep.mubr.msk.f32.mxu0 %vm159_vm0, %v111_v40 }
  0xc1   :  { %493 = vmatmul.mubr.f32.gmra.mrb[60].mxu0 %v110_v41 }
  0xc2   :  { %3514 = vmatprep.mubr.msk.f32.mxu0 %vm159_vm0, %v113_v42 }
  0xc5   :  { %498 = vmatmul.mubr.f32.gmra.mrb[62].mxu0 %v112_v43 }
  0xc6   :  { %3515 = vmatprep.mubr.msk.f32.mxu0 %vm159_vm0, %v115_v44 }
  0xc9   :  { %503 = vmatmul.mubr.f32.gmra.mrb[64].mxu0 %v114_v45 }
  0xca   :  { %3516 = vmatprep.mubr.msk.f32.mxu0 %vm159_vm0, %v117_v46 }
  0xcd   :  { %508 = vmatmul.mubr.f32.gmra.mrb[66].mxu0 %v116_v47 }
  0xce   :  { %3517 = vmatprep.mubr.msk.f32.mxu0 %vm159_vm0, %v119_v48 }
  0xd1   :  { %513 = vmatmul.mubr.f32.gmra.mrb[68].mxu0 %v118_v49 }
  0xd2   :  { %3518 = vmatprep.mubr.msk.f32.mxu0 %vm159_vm0, %v121_v50 }
  0xd5   :  { %518 = vmatmul.mubr.f32.gmra.mrb[70].mxu0 %v120_v51 }
  0xd6   :  { %3519 = vmatprep.mubr.msk.f32.mxu0 %vm159_vm0, %v123_v52 }
  0xd9   :  { %523 = vmatmul.mubr.f32.gmra.mrb[72].mxu0 %v122_v53 }
  0xda   :  { %3520 = vmatprep.mubr.msk.f32.mxu0 %vm159_vm0, %v125_v54  ;;  %v1220_v54 = vld [vmem:[%s5871_s6] sm:$0xff] }
  0xdd   :  { %528 = vmatmul.mubr.f32.gmra.mrb[74].mxu0 %v124_v55  ;;  %v1221_v55 = vld [vmem:[%s5871_s6 + $0x8] sm:$0xff] }
 0x11c   :  { %v344_v57 = vpop.f32.mrb[0].mxu0 }
 0x11d   :  { %v345_v58 = vadd.f32 %v4709_v56, %v344_v57  ;;  %v346_v59 = vpop.f32.mrb[1].mxu0 }
 0x11e   :  { %v4036_v59 = vpack.c.bf16 %v1221_v55, %v1220_v54 }
 0x11f   :  { %v533_v60 = vmul.f32 0.5, %v345_v58 }
 0x120   :  { %v349_v61 = vpop.f32.mrb[2].mxu0  ;;  %4037 = vmatprep.subr.bf16.mxu1 %v4036_v59 }
 0x121   :  { %4060 = vtanh.f32 %v533_v60  ;;  %v350_v62 = vadd.f32 %v4709_v56, %v349_v61  ;;  %v351_v63 = vpop.f32.mrb[3].mxu0 }
 0x123   :  { %v534_v0 = vmul.f32 0.5, %v350_v62 }
 0x124   :  { %v354_v1 = vpop.f32.mrb[4].mxu0 }
 0x125   :  { %4062 = vtanh.f32 %v534_v0  ;;  %v355_v2 = vadd.f32 %v4709_v56, %v354_v1  ;;  %v356_v3 = vpop.f32.mrb[5].mxu0 }
 0x127   :  { %v535_v4 = vmul.f32 0.5, %v355_v2 }
 0x128   :  { %v359_v5 = vpop.f32.mrb[6].mxu0 }
 0x129   :  { %4064 = vtanh.f32 %v535_v4  ;;  %v360_v6 = vadd.f32 %v4709_v56, %v359_v5  ;;  %v361_v7 = vpop.f32.mrb[7].mxu0 }
 0x12b   :  { %v4061_v8 = vpop.eup %4060  ;;  %v536_v9 = vmul.f32 0.5, %v360_v6  ;;  %v1222_v6 = vld [vmem:[%s5871_s6 + $0x10] sm:$0xf] }
 0x12c   :  { %v609_v10 = vadd.f32 1.0, %v4061_v8  ;;  %v364_v11 = vpop.f32.mrb[8].mxu0 }
 0x12d   :  { %4066 = vtanh.f32 %v536_v9  ;;  %v365_v12 = vadd.f32 %v4709_v56, %v364_v11  ;;  %v366_v13 = vpop.f32.mrb[9].mxu0 }
 0x12e   :  { %v647_v14 = vmul.f32 0.5, %v609_v10 }
 0x12f   :  { %v4063_v15 = vpop.eup %4062  ;;  %v537_v16 = vmul.f32 0.5, %v365_v12 }
 0x130   :  { %v610_v17 = vadd.f32 1.0, %v4063_v15  ;;  %v369_v18 = vpop.f32.mrb[10].mxu0  ;;  %3809 = vmatprep.mubr.msk.f32.mxu0 %vm695_vm4, %v647_v14 }
 0x131   :  { %4068 = vtanh.f32 %v537_v16  ;;  %v370_v19 = vadd.f32 %v4709_v56, %v369_v18  ;;  %v371_v20 = vpop.f32.mrb[11].mxu0 }
 0x132   :  { %v648_v21 = vmul.f32 0.5, %v610_v17 }
 0x133   :  { %v4065_v22 = vpop.eup %4064  ;;  %v538_v23 = vmul.f32 0.5, %v370_v19 }
 0x134   :  { %v611_v24 = vadd.f32 1.0, %v4065_v22  ;;  %3810 = vmatmul.mubr.msk.f32.vlgmr.msra.gmra.mrb[76].mxu0 %vm695_vm4, %v648_v21  ;;  %v374_v25 = vpop.f32.mrb[12].mxu0 }
 0x135   :  { %4070 = vtanh.f32 %v538_v23  ;;  %v375_v26 = vadd.f32 %v4709_v56, %v374_v25  ;;  %v376_v27 = vpop.f32.mrb[13].mxu0 }
 0x136   :  { %v649_v28 = vmul.f32 0.5, %v611_v24 }
 0x137   :  { %v4067_v29 = vpop.eup %4066  ;;  %v539_v30 = vmul.f32 0.5, %v375_v26 }
 0x138   :  { %v612_v31 = vadd.f32 1.0, %v4067_v29  ;;  %v379_v32 = vpop.f32.mrb[14].mxu0  ;;  %3812 = vmatprep.mubr.msk.f32.mxu0 %vm695_vm4, %v649_v28 }
 0x139   :  { %4072 = vtanh.f32 %v539_v30  ;;  %v380_v33 = vadd.f32 %v4709_v56, %v379_v32  ;;  %v381_v34 = vpop.f32.mrb[15].mxu0 }
 0x13a   :  { %v650_v35 = vmul.f32 0.5, %v612_v31 }
 0x13b   :  { %v4069_v36 = vpop.eup %4068  ;;  %v540_v37 = vmul.f32 0.5, %v380_v33 }
 0x13c   :  { %v613_v38 = vadd.f32 1.0, %v4069_v36  ;;  %3813 = vmatmul.mubr.msk.f32.gmra.mrb[78].mxu0 %vm695_vm4, %v650_v35  ;;  %v384_v39 = vpop.f32.mrb[16].mxu0 }
 0x13d   :  { %4074 = vtanh.f32 %v540_v37  ;;  %v385_v40 = vadd.f32 %v4709_v56, %v384_v39  ;;  %v386_v41 = vpop.f32.mrb[17].mxu0 }
 0x13e   :  { %v651_v42 = vmul.f32 0.5, %v613_v38 }
 0x13f   :  { %v4071_v43 = vpop.eup %4070  ;;  %v541_v44 = vmul.f32 0.5, %v385_v40 }
 0x140   :  { %v614_v45 = vadd.f32 1.0, %v4071_v43  ;;  %v389_v46 = vpop.f32.mrb[18].mxu0  ;;  %3815 = vmatprep.mubr.msk.f32.mxu0 %vm695_vm4, %v651_v42 }
 0x141   :  { %4076 = vtanh.f32 %v541_v44  ;;  %v390_v47 = vadd.f32 %v4709_v56, %v389_v46  ;;  %v391_v48 = vpop.f32.mrb[19].mxu0 }
 0x142   :  { %v652_v49 = vmul.f32 0.5, %v614_v45 }
 0x143   :  { %v4073_v50 = vpop.eup %4072  ;;  %v542_v51 = vmul.f32 0.5, %v390_v47 }
 0x144   :  { %3816 = vmatmul.mubr.msk.f32.gmra.mrb[80].mxu0 %vm695_vm4, %v652_v49  ;;  %v394_v52 = vpop.f32.mrb[20].mxu0  ;;  %v615_v53 = vadd.f32 1.0, %v4073_v50 }
 0x145   :  { %4078 = vtanh.f32 %v542_v51  ;;  %v395_v57 = vadd.f32 %v4709_v56, %v394_v52  ;;  %v396_v58 = vpop.f32.mrb[21].mxu0 }
 0x146   :  { %v653_v60 = vmul.f32 0.5, %v615_v53 }
 0x147   :  { %v4075_v61 = vpop.eup %4074  ;;  %v543_v62 = vmul.f32 0.5, %v395_v57 }
 0x148   :  { %v616_v63 = vadd.f32 1.0, %v4075_v61  ;;  %v399_v0 = vpop.f32.mrb[22].mxu0  ;;  %3818 = vmatprep.mubr.msk.f32.mxu1 %vm695_vm4, %v653_v60 }
 0x149   :  { %4080 = vtanh.f32 %v543_v62  ;;  %v400_v1 = vadd.f32 %v4709_v56, %v399_v0  ;;  %v401_v2 = vpop.f32.mrb[23].mxu0 }
 0x14a   :  { %v654_v3 = vmul.f32 0.5, %v616_v63 }
 0x14b   :  { %v4077_v4 = vpop.eup %4076  ;;  %v544_v5 = vmul.f32 0.5, %v400_v1 }
 0x14c   :  { %v617_v7 = vadd.f32 1.0, %v4077_v4  ;;  %3819 = vmatmul.mubr.msk.f32.vlgmr.msra.gmra.mrb[0].mxu1 %vm695_vm4, %v654_v3  ;;  %v404_v8 = vpop.f32.mrb[24].mxu0 }
 0x14d   :  { %4082 = vtanh.f32 %v544_v5  ;;  %v405_v9 = vadd.f32 %v4709_v56, %v404_v8  ;;  %v406_v10 = vpop.f32.mrb[25].mxu0  ;;  %4039 = vmatpush3.bf16.msra.mxu1 %v4036_v59 }
 0x14e   :  { %v655_v11 = vmul.f32 0.5, %v617_v7  ;;  %3870 = vmatprep.subr.msk.mxu1 %vm274_vm1, %v1222_v6 }
 0x14f   :  { %v4079_v12 = vpop.eup %4078  ;;  %v545_v13 = vmul.f32 0.5, %v405_v9 }
 0x150   :  { %v618_v14 = vadd.f32 1.0, %v4079_v12  ;;  %v409_v15 = vpop.f32.mrb[26].mxu0  ;;  %3821 = vmatprep.mubr.msk.f32.mxu1 %vm695_vm4, %v655_v11 }
 0x151   :  { %4084 = vtanh.f32 %v545_v13  ;;  %v410_v16 = vadd.f32 %v4709_v56, %v409_v15  ;;  %v411_v17 = vpop.f32.mrb[27].mxu0  ;;  %3871 = vmatpush3.msk.msra.mxu1 %vm274_vm1, %v1222_v6 }
 0x152   :  { %v656_v18 = vmul.f32 0.5, %v618_v14 }
 0x153   :  { %v4081_v19 = vpop.eup %4080  ;;  %v546_v20 = vmul.f32 0.5, %v410_v16 }
 0x154   :  { %v619_v21 = vadd.f32 1.0, %v4081_v19  ;;  %3822 = vmatmul.mubr.msk.f32.gmra.mrb[2].mxu1 %vm695_vm4, %v656_v18  ;;  %v414_v22 = vpop.f32.mrb[28].mxu0 }
 0x155   :  { %4086 = vtanh.f32 %v546_v20  ;;  %v415_v23 = vadd.f32 %v4709_v56, %v414_v22  ;;  %v416_v24 = vpop.f32.mrb[29].mxu0 }
 0x156   :  { %v657_v25 = vmul.f32 0.5, %v619_v21 }
 0x157   :  { %v4083_v26 = vpop.eup %4082  ;;  %v547_v27 = vmul.f32 0.5, %v415_v23 }
 0x158   :  { %v620_v28 = vadd.f32 1.0, %v4083_v26  ;;  %v419_v29 = vpop.f32.mrb[30].mxu0  ;;  %3824 = vmatprep.mubr.msk.f32.mxu1 %vm695_vm4, %v657_v25 }
 0x159   :  { %4088 = vtanh.f32 %v547_v27  ;;  %v420_v30 = vadd.f32 %v4709_v56, %v419_v29  ;;  %v421_v31 = vpop.f32.mrb[31].mxu0 }
 0x15a   :  { %v658_v32 = vmul.f32 0.5, %v620_v28 }
 0x15b   :  { %v4085_v33 = vpop.eup %4084  ;;  %v548_v34 = vmul.f32 0.5, %v420_v30 }
 0x15c   :  { %v621_v35 = vadd.f32 1.0, %v4085_v33  ;;  %3825 = vmatmul.mubr.msk.f32.gmra.mrb[4].mxu1 %vm695_vm4, %v658_v32  ;;  %v424_v36 = vpop.f32.mrb[32].mxu0 }
 0x15d   :  { %4090 = vtanh.f32 %v548_v34  ;;  %v425_v37 = vadd.f32 %v4709_v56, %v424_v36  ;;  %v426_v38 = vpop.f32.mrb[33].mxu0 }
 0x15e   :  { %v659_v39 = vmul.f32 0.5, %v621_v35 }
 0x15f   :  { %v4087_v40 = vpop.eup %4086  ;;  %v549_v41 = vmul.f32 0.5, %v425_v37 }
 0x160   :  { %v622_v42 = vadd.f32 1.0, %v4087_v40  ;;  %v429_v43 = vpop.f32.mrb[34].mxu0  ;;  %3827 = vmatprep.mubr.msk.f32.mxu1 %vm695_vm4, %v659_v39 }
 0x161   :  { %4092 = vtanh.f32 %v549_v41  ;;  %v430_v44 = vadd.f32 %v4709_v56, %v429_v43  ;;  %v431_v45 = vpop.f32.mrb[35].mxu0 }
 0x162   :  { %v660_v46 = vmul.f32 0.5, %v622_v42 }
 0x163   :  { %v4089_v47 = vpop.eup %4088  ;;  %v550_v48 = vmul.f32 0.5, %v430_v44 }
 0x164   :  { %v623_v49 = vadd.f32 1.0, %v4089_v47  ;;  %3828 = vmatmul.mubr.msk.f32.gmra.mrb[6].mxu1 %vm695_vm4, %v660_v46  ;;  %v434_v50 = vpop.f32.mrb[36].mxu0 }
 0x165   :  { %4094 = vtanh.f32 %v550_v48  ;;  %v435_v51 = vadd.f32 %v4709_v56, %v434_v50  ;;  %v436_v52 = vpop.f32.mrb[37].mxu0 }
 0x166   :  { %v661_v53 = vmul.f32 0.5, %v623_v49 }
 0x167   :  { %v4091_v54 = vpop.eup %4090  ;;  %v551_v55 = vmul.f32 0.5, %v435_v51 }
 0x168   :  { %v624_v57 = vadd.f32 1.0, %v4091_v54  ;;  %v439_v58 = vpop.f32.mrb[38].mxu0  ;;  %3830 = vmatprep.mubr.msk.f32.mxu1 %vm695_vm4, %v661_v53 }
 0x169   :  { %4096 = vtanh.f32 %v551_v55  ;;  %v440_v59 = vadd.f32 %v4709_v56, %v439_v58  ;;  %v441_v60 = vpop.f32.mrb[39].mxu0 }
 0x16a   :  { %v662_v61 = vmul.f32 0.5, %v624_v57 }
 0x16b   :  { %v4093_v62 = vpop.eup %4092  ;;  %v552_v63 = vmul.f32 0.5, %v440_v59 }
 0x16c   :  { %v625_v0 = vadd.f32 1.0, %v4093_v62  ;;  %3831 = vmatmul.mubr.msk.f32.gmra.mrb[8].mxu1 %vm695_vm4, %v662_v61  ;;  %v444_v1 = vpop.f32.mrb[40].mxu0 }
 0x16d   :  { %4098 = vtanh.f32 %v552_v63  ;;  %v445_v2 = vadd.f32 %v4709_v56, %v444_v1  ;;  %v446_v3 = vpop.f32.mrb[41].mxu0 }
 0x16e   :  { %v663_v4 = vmul.f32 0.5, %v625_v0 }
 0x16f   :  { %v4095_v5 = vpop.eup %4094  ;;  %v553_v6 = vmul.f32 0.5, %v445_v2 }
 0x170   :  { %v626_v7 = vadd.f32 1.0, %v4095_v5  ;;  %v449_v8 = vpop.f32.mrb[42].mxu0  ;;  %3833 = vmatprep.mubr.msk.f32.mxu1 %vm695_vm4, %v663_v4 }
 0x171   :  { %4100 = vtanh.f32 %v553_v6  ;;  %v450_v9 = vadd.f32 %v4709_v56, %v449_v8  ;;  %v451_v10 = vpop.f32.mrb[43].mxu0 }
 0x172   :  { %v664_v11 = vmul.f32 0.5, %v626_v7 }
 0x173   :  { %v4097_v12 = vpop.eup %4096  ;;  %v554_v13 = vmul.f32 0.5, %v450_v9 }
 0x174   :  { %v627_v14 = vadd.f32 1.0, %v4097_v12  ;;  %3834 = vmatmul.mubr.msk.f32.gmra.mrb[10].mxu1 %vm695_vm4, %v664_v11  ;;  %v454_v15 = vpop.f32.mrb[44].mxu0 }
 0x175   :  { %4102 = vtanh.f32 %v554_v13  ;;  %v455_v16 = vadd.f32 %v4709_v56, %v454_v15  ;;  %v456_v17 = vpop.f32.mrb[45].mxu0 }
 0x176   :  { %v665_v18 = vmul.f32 0.5, %v627_v14 }
 0x177   :  { %v4099_v19 = vpop.eup %4098  ;;  %v555_v20 = vmul.f32 0.5, %v455_v16 }
 0x178   :  { %v628_v21 = vadd.f32 1.0, %v4099_v19  ;;  %v459_v22 = vpop.f32.mrb[46].mxu0  ;;  %3836 = vmatprep.mubr.msk.f32.mxu1 %vm695_vm4, %v665_v18 }
 0x179   :  { %4104 = vtanh.f32 %v555_v20  ;;  %v460_v23 = vadd.f32 %v4709_v56, %v459_v22  ;;  %v461_v24 = vpop.f32.mrb[47].mxu0 }
 0x17a   :  { %v666_v25 = vmul.f32 0.5, %v628_v21 }
 0x17b   :  { %v4101_v26 = vpop.eup %4100  ;;  %v556_v27 = vmul.f32 0.5, %v460_v23 }
 0x17c   :  { %v629_v28 = vadd.f32 1.0, %v4101_v26  ;;  %3837 = vmatmul.mubr.msk.f32.gmra.mrb[12].mxu1 %vm695_vm4, %v666_v25  ;;  %v464_v29 = vpop.f32.mrb[48].mxu0 }
 0x17d   :  { %4106 = vtanh.f32 %v556_v27  ;;  %v465_v30 = vadd.f32 %v4709_v56, %v464_v29  ;;  %v466_v31 = vpop.f32.mrb[49].mxu0 }
 0x17e   :  { %v667_v32 = vmul.f32 0.5, %v629_v28 }
 0x17f   :  { %v4103_v33 = vpop.eup %4102  ;;  %v557_v34 = vmul.f32 0.5, %v465_v30 }
 0x180   :  { %v630_v35 = vadd.f32 1.0, %v4103_v33  ;;  %v469_v36 = vpop.f32.mrb[50].mxu0  ;;  %3839 = vmatprep.mubr.msk.f32.mxu1 %vm695_vm4, %v667_v32 }
 0x181   :  { %4108 = vtanh.f32 %v557_v34  ;;  %v470_v37 = vadd.f32 %v4709_v56, %v469_v36  ;;  %v471_v38 = vpop.f32.mrb[51].mxu0 }
 0x182   :  { %v668_v39 = vmul.f32 0.5, %v630_v35 }
 0x183   :  { %v4105_v40 = vpop.eup %4104  ;;  %v558_v41 = vmul.f32 0.5, %v470_v37 }
 0x184   :  { %v631_v42 = vadd.f32 1.0, %v4105_v40  ;;  %3840 = vmatmul.mubr.msk.f32.gmra.mrb[14].mxu1 %vm695_vm4, %v668_v39  ;;  %v474_v43 = vpop.f32.mrb[52].mxu0 }
 0x185   :  { %4110 = vtanh.f32 %v558_v41  ;;  %v475_v44 = vadd.f32 %v4709_v56, %v474_v43  ;;  %v476_v45 = vpop.f32.mrb[53].mxu0 }
 0x186   :  { %v669_v46 = vmul.f32 0.5, %v631_v42 }
 0x187   :  { %v4107_v47 = vpop.eup %4106  ;;  %v559_v48 = vmul.f32 0.5, %v475_v44 }
 0x188   :  { %v632_v49 = vadd.f32 1.0, %v4107_v47  ;;  %v479_v50 = vpop.f32.mrb[54].mxu0  ;;  %3842 = vmatprep.mubr.msk.f32.mxu1 %vm695_vm4, %v669_v46 }
 0x189   :  { %4112 = vtanh.f32 %v559_v48  ;;  %v480_v51 = vadd.f32 %v4709_v56, %v479_v50  ;;  %v481_v52 = vpop.f32.mrb[55].mxu0 }
 0x18a   :  { %v670_v53 = vmul.f32 0.5, %v632_v49 }
 0x18b   :  { %v4109_v54 = vpop.eup %4108  ;;  %v560_v55 = vmul.f32 0.5, %v480_v51 }
 0x18c   :  { %v633_v57 = vadd.f32 1.0, %v4109_v54  ;;  %3843 = vmatmul.mubr.msk.f32.gmra.mrb[16].mxu1 %vm695_vm4, %v670_v53  ;;  %v484_v58 = vpop.f32.mrb[56].mxu0 }
 0x18d   :  { %4114 = vtanh.f32 %v560_v55  ;;  %v485_v59 = vadd.f32 %v4709_v56, %v484_v58  ;;  %v486_v60 = vpop.f32.mrb[57].mxu0 }
 0x18e   :  { %v671_v61 = vmul.f32 0.5, %v633_v57 }
 0x18f   :  { %v4111_v62 = vpop.eup %4110  ;;  %v561_v63 = vmul.f32 0.5, %v485_v59 }
 0x190   :  { %v634_v0 = vadd.f32 1.0, %v4111_v62  ;;  %v489_v1 = vpop.f32.mrb[58].mxu0  ;;  %3845 = vmatprep.mubr.msk.f32.mxu1 %vm695_vm4, %v671_v61 }
 0x191   :  { %4116 = vtanh.f32 %v561_v63  ;;  %v490_v2 = vadd.f32 %v4709_v56, %v489_v1  ;;  %v491_v3 = vpop.f32.mrb[59].mxu0 }
 0x192   :  { %v672_v4 = vmul.f32 0.5, %v634_v0 }
 0x193   :  { %v4113_v5 = vpop.eup %4112  ;;  %v562_v6 = vmul.f32 0.5, %v490_v2 }
 0x194   :  { %v635_v7 = vadd.f32 1.0, %v4113_v5  ;;  %3846 = vmatmul.mubr.msk.f32.gmra.mrb[18].mxu1 %vm695_vm4, %v672_v4  ;;  %v494_v8 = vpop.f32.mrb[60].mxu0 }
 0x195   :  { %4118 = vtanh.f32 %v562_v6  ;;  %v495_v9 = vadd.f32 %v4709_v56, %v494_v8  ;;  %v496_v10 = vpop.f32.mrb[61].mxu0 }
 0x196   :  { %v673_v11 = vmul.f32 0.5, %v635_v7  ;;  %v4801_v10 = vld [vmem:[%s5870_s5] ss:$0 sm:$0xff] }
 0x197   :  { %v4115_v12 = vpop.eup %4114  ;;  %v563_v13 = vmul.f32 0.5, %v495_v9 }
 0x198   :  { %v636_v14 = vadd.f32 1.0, %v4115_v12  ;;  %v499_v15 = vpop.f32.mrb[62].mxu0  ;;  %3848 = vmatprep.mubr.msk.f32.mxu1 %vm695_vm4, %v673_v11 }
 0x199   :  { %4120 = vtanh.f32 %v563_v13  ;;  %v500_v16 = vadd.f32 %v4709_v56, %v499_v15  ;;  %v501_v17 = vpop.f32.mrb[63].mxu0 }
 0x19a   :  { %v674_v18 = vmul.f32 0.5, %v636_v14 }
 0x19b   :  { %v4117_v19 = vpop.eup %4116  ;;  %v564_v20 = vmul.f32 0.5, %v500_v16 }
 0x19c   :  { %v637_v21 = vadd.f32 1.0, %v4117_v19  ;;  %3849 = vmatmul.mubr.msk.f32.gmra.mrb[20].mxu1 %vm695_vm4, %v674_v18  ;;  %v504_v22 = vpop.f32.mrb[64].mxu0 }
 0x19d   :  { %4122 = vtanh.f32 %v564_v20  ;;  %v505_v23 = vadd.f32 %v4709_v56, %v504_v22  ;;  %v506_v24 = vpop.f32.mrb[65].mxu0 }
 0x19e   :  { %v675_v25 = vmul.f32 0.5, %v637_v21 }
 0x19f   :  { %v4119_v26 = vpop.eup %4118  ;;  %v565_v27 = vmul.f32 0.5, %v505_v23 }
 0x1a0   :  { %v638_v28 = vadd.f32 1.0, %v4119_v26  ;;  %v509_v29 = vpop.f32.mrb[66].mxu0  ;;  %3851 = vmatprep.mubr.msk.f32.mxu1 %vm695_vm4, %v675_v25 }
 0x1a1   :  { %4124 = vtanh.f32 %v565_v27  ;;  %v510_v30 = vadd.f32 %v4709_v56, %v509_v29  ;;  %v511_v31 = vpop.f32.mrb[67].mxu0 }
 0x1a2   :  { %v676_v32 = vmul.f32 0.5, %v638_v28 }
 0x1a3   :  { %v4121_v33 = vpop.eup %4120  ;;  %v566_v34 = vmul.f32 0.5, %v510_v30 }
 0x1a4   :  { %v639_v35 = vadd.f32 1.0, %v4121_v33  ;;  %3852 = vmatmul.mubr.msk.f32.gmra.mrb[22].mxu1 %vm695_vm4, %v676_v32  ;;  %v514_v36 = vpop.f32.mrb[68].mxu0 }
 0x1a5   :  { %4126 = vtanh.f32 %v566_v34  ;;  %v515_v37 = vadd.f32 %v4709_v56, %v514_v36  ;;  %v516_v38 = vpop.f32.mrb[69].mxu0 }
 0x1a6   :  { %v677_v39 = vmul.f32 0.5, %v639_v35 }
 0x1a7   :  { %v4123_v40 = vpop.eup %4122  ;;  %v567_v41 = vmul.f32 0.5, %v515_v37 }
 0x1a8   :  { %v640_v42 = vadd.f32 1.0, %v4123_v40  ;;  %v519_v43 = vpop.f32.mrb[70].mxu0  ;;  %3854 = vmatprep.mubr.msk.f32.mxu1 %vm695_vm4, %v677_v39 }
 0x1a9   :  { %4128 = vtanh.f32 %v567_v41  ;;  %v520_v44 = vadd.f32 %v4709_v56, %v519_v43  ;;  %v521_v45 = vpop.f32.mrb[71].mxu0 }
 0x1aa   :  { %v678_v46 = vmul.f32 0.5, %v640_v42 }
 0x1ab   :  { %v4125_v47 = vpop.eup %4124  ;;  %v568_v48 = vmul.f32 0.5, %v520_v44 }
 0x1ac   :  { %v641_v49 = vadd.f32 1.0, %v4125_v47  ;;  %3855 = vmatmul.mubr.msk.f32.gmra.mrb[24].mxu1 %vm695_vm4, %v678_v46  ;;  %v524_v50 = vpop.f32.mrb[72].mxu0 }
 0x1ad   :  { %4130 = vtanh.f32 %v568_v48  ;;  %v525_v51 = vadd.f32 %v4709_v56, %v524_v50  ;;  %v526_v52 = vpop.f32.mrb[73].mxu0 }
 0x1ae   :  { %v679_v53 = vmul.f32 0.5, %v641_v49 }
 0x1af   :  { %v4127_v54 = vpop.eup %4126  ;;  %v569_v55 = vmul.f32 0.5, %v525_v51 }
 0x1b0   :  { %v642_v57 = vadd.f32 1.0, %v4127_v54  ;;  %v529_v58 = vpop.f32.mrb[74].mxu0  ;;  %3857 = vmatprep.mubr.msk.f32.mxu1 %vm695_vm4, %v679_v53 }
 0x1b1   :  { %4132 = vtanh.f32 %v569_v55  ;;  %v530_v59 = vadd.f32 %v4709_v56, %v529_v58  ;;  %v531_v60 = vpop.f32.mrb[75].mxu0 }
 0x1b2   :  { %v680_v61 = vmul.f32 0.5, %v642_v57  ;;  %v1754_v60 = vld [vmem:[%s5873_s8] sm:$0xff] }
 0x1b3   :  { %v4129_v62 = vpop.eup %4128  ;;  %v570_v63 = vmul.f32 0.5, %v530_v59 }
 0x1b4   :  { %v643_v0 = vadd.f32 1.0, %v4129_v62  ;;  %3858 = vmatmul.mubr.msk.f32.gmra.mrb[26].mxu1 %vm695_vm4, %v680_v61  ;;  %v1755_v61 = vld [vmem:[%s5873_s8 + $0x8] sm:$0xff] }
 0x1b5   :  { %4134 = vtanh.f32 %v570_v63  ;;  %v4040_v63 = vpack.c.bf16 %v1755_v61, %v1754_v60 }
 0x1b6   :  { %v681_v1 = vmul.f32 0.5, %v643_v0 }
 0x1b7   :  { %v4131_v2 = vpop.eup %4130  ;;  %4041 = vmatprep.subr.bf16.mxu1 %v4040_v63 }
 0x1b8   :  { %v644_v3 = vadd.f32 1.0, %v4131_v2  ;;  %3860 = vmatprep.mubr.msk.f32.mxu1 %vm695_vm4, %v681_v1 }
 0x1ba   :  { %v682_v4 = vmul.f32 0.5, %v644_v3  ;;  %v1756_v3 = vld [vmem:[%s5873_s8 + $0x10] sm:$0xf] }
 0x1bb   :  { %v4133_v5 = vpop.eup %4132 }
 0x1bc   :  { %v645_v6 = vadd.f32 1.0, %v4133_v5  ;;  %3861 = vmatmul.mubr.msk.f32.gmra.mrb[28].mxu1 %vm695_vm4, %v682_v4 }
 0x1be   :  { %v683_v7 = vmul.f32 0.5, %v645_v6 }
 0x1bf   :  { %v4135_v56 = vpop.eup %4134 }
 0x1c0   :  { %v646_v8 = vadd.f32 1.0, %v4135_v56  ;;  %3863 = vmatprep.mubr.msk.f32.mxu1 %vm695_vm4, %v683_v7 }
 0x1c2   :  { %v684_v9 = vmul.f32 0.5, %v646_v8 }
 0x1c4   :  { %3864 = vmatmul.mubr.msk.f32.gmra.mrb[30].mxu1 %vm695_vm4, %v684_v9 }
 0x207   :  { %v3811_v11 = vpop.f32.mrb[76].mxu0 }
 0x208   :  { %v885_v12 = vadd.f32 %v3811_v11, %v4801_v10  ;;  %v879_v13 = vpop.f32.mrb[77].mxu0 }
 0x209   :  { %v880_v14 = vadd.f32 %v4801_v10, %v879_v13 }
 0x20a   :  { %v1069_v15 = vmul.f32 0.5, %v885_v12 }
 0x20b   :  { %v1068_v16 = vmul.f32 0.5, %v880_v14 }
 0x20c   :  { %4136 = vtanh.f32 %v1069_v15 }
 0x20d   :  { %4138 = vtanh.f32 %v1068_v16 }
 0x20f   :  { %v3814_v17 = vpop.f32.mrb[78].mxu0 }
 0x210   :  { %v895_v18 = vadd.f32 %v3814_v17, %v4801_v10  ;;  %v889_v19 = vpop.f32.mrb[79].mxu0 }
 0x211   :  { %v890_v20 = vadd.f32 %v4801_v10, %v889_v19 }
 0x212   :  { %v1071_v21 = vmul.f32 0.5, %v895_v18 }
 0x213   :  { %v1070_v22 = vmul.f32 0.5, %v890_v20 }
 0x214   :  { %4140 = vtanh.f32 %v1071_v21 }
 0x215   :  { %4142 = vtanh.f32 %v1070_v22 }
 0x216   :  { %v4137_v23 = vpop.eup %4136 }
 0x217   :  { %v4139_v24 = vpop.eup %4138  ;;  %v1145_v25 = vadd.f32 1.0, %v4137_v23  ;;  %v3817_v26 = vpop.f32.mrb[80].mxu0 }
 0x218   :  { %v1144_v27 = vadd.f32 1.0, %v4139_v24  ;;  %v905_v28 = vadd.f32 %v3817_v26, %v4801_v10  ;;  %v899_v29 = vpop.f32.mrb[81].mxu0 }
 0x219   :  { %v900_v30 = vadd.f32 %v4801_v10, %v899_v29  ;;  %v1183_v33 = vmul.f32 0.5, %v1145_v25 }
 0x21a   :  { %v1182_v31 = vmul.f32 0.5, %v1144_v27  ;;  %v1073_v32 = vmul.f32 0.5, %v905_v28 }
 0x21b   :  { %v1072_v34 = vmul.f32 0.5, %v900_v30 }
 0x21c   :  { %4144 = vtanh.f32 %v1073_v32  ;;  %3872 = vmatprep.mubr.msk.f32.mxu1 %vm695_vm4, %v1182_v31 }
 0x21d   :  { %4146 = vtanh.f32 %v1072_v34  ;;  %3873 = vmatmul.mubr.msk.f32.vlgmr.msra.gmra.mrb[32].mxu1 %vm695_vm4, %v1183_v33 }
 0x21e   :  { %v4141_v35 = vpop.eup %4140  ;;  %4043 = vmatpush3.bf16.msra.mxu1 %v4040_v63 }
 0x21f   :  { %v4143_v36 = vpop.eup %4142  ;;  %v1147_v37 = vadd.f32 1.0, %v4141_v35  ;;  %v3820_v38 = vpop.f32.mrb[0].mxu1  ;;  %3933 = vmatprep.subr.msk.mxu1 %vm274_vm1, %v1756_v3 }
 0x220   :  { %v1146_v39 = vadd.f32 1.0, %v4143_v36  ;;  %v915_v40 = vadd.f32 %v3820_v38, %v4801_v10  ;;  %v909_v41 = vpop.f32.mrb[1].mxu1 }
 0x221   :  { %v1185_v42 = vmul.f32 0.5, %v1147_v37  ;;  %v910_v43 = vadd.f32 %v4801_v10, %v909_v41 }
 0x222   :  { %v1184_v44 = vmul.f32 0.5, %v1146_v39  ;;  %v1075_v45 = vmul.f32 0.5, %v915_v40  ;;  %3934 = vmatpush3.msk.msra.mxu1 %vm274_vm1, %v1756_v3 }
 0x223   :  { %v1074_v46 = vmul.f32 0.5, %v910_v43 }
 0x224   :  { %4148 = vtanh.f32 %v1075_v45  ;;  %3875 = vmatprep.mubr.msk.f32.mxu1 %vm695_vm4, %v1184_v44 }
 0x225   :  { %4150 = vtanh.f32 %v1074_v46  ;;  %3876 = vmatmul.mubr.msk.f32.gmra.mrb[34].mxu1 %vm695_vm4, %v1185_v42 }
 0x226   :  { %v4145_v47 = vpop.eup %4144 }
 0x227   :  { %v4147_v48 = vpop.eup %4146  ;;  %v1149_v49 = vadd.f32 1.0, %v4145_v47  ;;  %v3823_v50 = vpop.f32.mrb[2].mxu1 }
 0x228   :  { %v1148_v51 = vadd.f32 1.0, %v4147_v48  ;;  %v925_v52 = vadd.f32 %v3823_v50, %v4801_v10  ;;  %v919_v53 = vpop.f32.mrb[3].mxu1 }
 0x229   :  { %v1187_v54 = vmul.f32 0.5, %v1149_v49  ;;  %v920_v55 = vadd.f32 %v4801_v10, %v919_v53 }
 0x22a   :  { %v1186_v57 = vmul.f32 0.5, %v1148_v51  ;;  %v1077_v58 = vmul.f32 0.5, %v925_v52 }
 0x22b   :  { %v1076_v59 = vmul.f32 0.5, %v920_v55 }
 0x22c   :  { %4152 = vtanh.f32 %v1077_v58  ;;  %3878 = vmatprep.mubr.msk.f32.mxu1 %vm695_vm4, %v1186_v57 }
 0x22d   :  { %4154 = vtanh.f32 %v1076_v59  ;;  %3879 = vmatmul.mubr.msk.f32.gmra.mrb[36].mxu1 %vm695_vm4, %v1187_v54 }
 0x22e   :  { %v4149_v62 = vpop.eup %4148 }
 0x22f   :  { %v4151_v0 = vpop.eup %4150  ;;  %v1151_v1 = vadd.f32 1.0, %v4149_v62  ;;  %v3826_v2 = vpop.f32.mrb[4].mxu1 }
 0x230   :  { %v1150_v4 = vadd.f32 1.0, %v4151_v0  ;;  %v935_v5 = vadd.f32 %v3826_v2, %v4801_v10  ;;  %v929_v6 = vpop.f32.mrb[5].mxu1 }
 0x231   :  { %v1189_v7 = vmul.f32 0.5, %v1151_v1  ;;  %v930_v56 = vadd.f32 %v4801_v10, %v929_v6 }
 0x232   :  { %v1188_v8 = vmul.f32 0.5, %v1150_v4  ;;  %v1079_v9 = vmul.f32 0.5, %v935_v5 }
 0x233   :  { %v1078_v11 = vmul.f32 0.5, %v930_v56 }
 0x234   :  { %4156 = vtanh.f32 %v1079_v9  ;;  %3881 = vmatprep.mubr.msk.f32.mxu1 %vm695_vm4, %v1188_v8 }
 0x235   :  { %4158 = vtanh.f32 %v1078_v11  ;;  %3882 = vmatmul.mubr.msk.f32.gmra.mrb[38].mxu1 %vm695_vm4, %v1189_v7 }
 0x236   :  { %v4153_v12 = vpop.eup %4152 }
 0x237   :  { %v4155_v13 = vpop.eup %4154  ;;  %v1153_v14 = vadd.f32 1.0, %v4153_v12  ;;  %v3829_v15 = vpop.f32.mrb[6].mxu1 }
 0x238   :  { %v1152_v16 = vadd.f32 1.0, %v4155_v13  ;;  %v945_v17 = vadd.f32 %v3829_v15, %v4801_v10  ;;  %v939_v18 = vpop.f32.mrb[7].mxu1 }
 0x239   :  { %v1191_v19 = vmul.f32 0.5, %v1153_v14  ;;  %v940_v20 = vadd.f32 %v4801_v10, %v939_v18 }
 0x23a   :  { %v1190_v21 = vmul.f32 0.5, %v1152_v16  ;;  %v1081_v22 = vmul.f32 0.5, %v945_v17 }
 0x23b   :  { %v1080_v23 = vmul.f32 0.5, %v940_v20 }
 0x23c   :  { %4160 = vtanh.f32 %v1081_v22  ;;  %3884 = vmatprep.mubr.msk.f32.mxu1 %vm695_vm4, %v1190_v21 }
 0x23d   :  { %4162 = vtanh.f32 %v1080_v23  ;;  %3885 = vmatmul.mubr.msk.f32.gmra.mrb[40].mxu1 %vm695_vm4, %v1191_v19 }
 0x23e   :  { %v4157_v24 = vpop.eup %4156 }
 0x23f   :  { %v4159_v25 = vpop.eup %4158  ;;  %v1155_v26 = vadd.f32 1.0, %v4157_v24  ;;  %v3832_v27 = vpop.f32.mrb[8].mxu1 }
 0x240   :  { %v1154_v28 = vadd.f32 1.0, %v4159_v25  ;;  %v955_v29 = vadd.f32 %v3832_v27, %v4801_v10  ;;  %v949_v30 = vpop.f32.mrb[9].mxu1 }
 0x241   :  { %v1193_v31 = vmul.f32 0.5, %v1155_v26  ;;  %v950_v32 = vadd.f32 %v4801_v10, %v949_v30 }
 0x242   :  { %v1192_v33 = vmul.f32 0.5, %v1154_v28  ;;  %v1083_v34 = vmul.f32 0.5, %v955_v29 }
 0x243   :  { %v1082_v35 = vmul.f32 0.5, %v950_v32 }
 0x244   :  { %4164 = vtanh.f32 %v1083_v34  ;;  %3887 = vmatprep.mubr.msk.f32.mxu1 %vm695_vm4, %v1192_v33 }
 0x245   :  { %4166 = vtanh.f32 %v1082_v35  ;;  %3888 = vmatmul.mubr.msk.f32.gmra.mrb[42].mxu1 %vm695_vm4, %v1193_v31 }
 0x246   :  { %v4161_v36 = vpop.eup %4160 }
 0x247   :  { %v4163_v37 = vpop.eup %4162  ;;  %v1157_v38 = vadd.f32 1.0, %v4161_v36  ;;  %v3835_v39 = vpop.f32.mrb[10].mxu1 }
 0x248   :  { %v1156_v40 = vadd.f32 1.0, %v4163_v37  ;;  %v965_v41 = vadd.f32 %v3835_v39, %v4801_v10  ;;  %v959_v42 = vpop.f32.mrb[11].mxu1 }
 0x249   :  { %v1195_v43 = vmul.f32 0.5, %v1157_v38  ;;  %v960_v44 = vadd.f32 %v4801_v10, %v959_v42 }
 0x24a   :  { %v1194_v45 = vmul.f32 0.5, %v1156_v40  ;;  %v1085_v46 = vmul.f32 0.5, %v965_v41 }
 0x24b   :  { %v1084_v47 = vmul.f32 0.5, %v960_v44 }
 0x24c   :  { %4168 = vtanh.f32 %v1085_v46  ;;  %3890 = vmatprep.mubr.msk.f32.mxu1 %vm695_vm4, %v1194_v45 }
 0x24d   :  { %4170 = vtanh.f32 %v1084_v47  ;;  %3891 = vmatmul.mubr.msk.f32.gmra.mrb[44].mxu1 %vm695_vm4, %v1195_v43 }
 0x24e   :  { %v4165_v48 = vpop.eup %4164 }
 0x24f   :  { %v4167_v49 = vpop.eup %4166  ;;  %v1159_v50 = vadd.f32 1.0, %v4165_v48  ;;  %v3838_v51 = vpop.f32.mrb[12].mxu1 }
 0x250   :  { %v1158_v52 = vadd.f32 1.0, %v4167_v49  ;;  %v975_v53 = vadd.f32 %v3838_v51, %v4801_v10  ;;  %v969_v54 = vpop.f32.mrb[13].mxu1 }
 0x251   :  { %v1197_v55 = vmul.f32 0.5, %v1159_v50  ;;  %v970_v57 = vadd.f32 %v4801_v10, %v969_v54 }
 0x252   :  { %v1196_v58 = vmul.f32 0.5, %v1158_v52  ;;  %v1087_v59 = vmul.f32 0.5, %v975_v53 }
 0x253   :  { %v1086_v60 = vmul.f32 0.5, %v970_v57 }
 0x254   :  { %4172 = vtanh.f32 %v1087_v59  ;;  %3893 = vmatprep.mubr.msk.f32.mxu1 %vm695_vm4, %v1196_v58  ;;  %v4493_v58 = vmov 0   ;;  %v2594_v59 = vld [vmem:[%s5866_s1 + $0x8] sm:$0xff] }
 0x255   :  { %4174 = vtanh.f32 %v1086_v60  ;;  %3894 = vmatmul.mubr.msk.f32.gmra.mrb[46].mxu1 %vm695_vm4, %v1197_v55  ;;  %4059 = vset.pattern.permute.xlu1 %v4493_v58 }
 0x256   :  { %v4169_v61 = vpop.eup %4168  ;;  %4058 = vset.pattern.permute.xlu0 %v4493_v58  ;;  %2637 = vperm.xlu1 %4059, %v2594_v59   ;;  %v2608_v59 = vld [vmem:[%s5866_s1 + $0x78] sm:$0xff] }
 0x257   :  { %v4171_v62 = vpop.eup %4170  ;;  %v1161_v63 = vadd.f32 1.0, %v4169_v61  ;;  %v3841_v0 = vpop.f32.mrb[14].mxu1 }
 0x258   :  { %v1160_v1 = vadd.f32 1.0, %v4171_v62  ;;  %v985_v2 = vadd.f32 %v3841_v0, %v4801_v10  ;;  %v979_v3 = vpop.f32.mrb[15].mxu1  ;;  %v2595_v0 = vld [vmem:[%s5866_s1 + $0x10] sm:$0xff] }
 0x259   :  { %v1199_v4 = vmul.f32 0.5, %v1161_v63  ;;  %v980_v5 = vadd.f32 %v4801_v10, %v979_v3 }
 0x25a   :  { %v1198_v6 = vmul.f32 0.5, %v1160_v1  ;;  %v1089_v7 = vmul.f32 0.5, %v985_v2  ;;  %2640 = vperm.xlu1 %4059, %v2595_v0  }
 0x25b   :  { %v1088_v56 = vmul.f32 0.5, %v980_v5 }
 0x25c   :  { %4176 = vtanh.f32 %v1089_v7  ;;  %3896 = vmatprep.mubr.msk.f32.mxu1 %vm695_vm4, %v1198_v6 }
 0x25d   :  { %4178 = vtanh.f32 %v1088_v56  ;;  %3897 = vmatmul.mubr.msk.f32.gmra.mrb[48].mxu1 %vm695_vm4, %v1199_v4 }
 0x25e   :  { %v4173_v8 = vpop.eup %4172 }
 0x25f   :  { %v4175_v9 = vpop.eup %4174  ;;  %v1163_v11 = vadd.f32 1.0, %v4173_v8  ;;  %v3844_v12 = vpop.f32.mrb[16].mxu1  ;;  %v2596_v8 = vld [vmem:[%s5866_s1 + $0x18] sm:$0xff] }
 0x260   :  { %v1162_v13 = vadd.f32 1.0, %v4175_v9  ;;  %v995_v14 = vadd.f32 %v3844_v12, %v4801_v10  ;;  %v989_v15 = vpop.f32.mrb[17].mxu1  ;;  %2643 = vperm.xlu1 %4059, %v2596_v8   ;;  %v2621_v8 = vld [vmem:[%s5866_s1 + $0xe0] sm:$0xff] }
 0x261   :  { %v1201_v16 = vmul.f32 0.5, %v1163_v11  ;;  %v990_v17 = vadd.f32 %v4801_v10, %v989_v15 }
 0x262   :  { %v1200_v18 = vmul.f32 0.5, %v1162_v13  ;;  %v1091_v19 = vmul.f32 0.5, %v995_v14  ;;  %v2597_v14 = vld [vmem:[%s5866_s1 + $0x20] sm:$0xff] }
 0x263   :  { %v1090_v20 = vmul.f32 0.5, %v990_v17 }
 0x264   :  { %4180 = vtanh.f32 %v1091_v19  ;;  %3899 = vmatprep.mubr.msk.f32.mxu1 %vm695_vm4, %v1200_v18  ;;  %2646 = vperm.xlu1 %4059, %v2597_v14   ;;  %v2627_v14 = vld [vmem:[%s5866_s1 + $0x110] sm:$0xff] }
 0x265   :  { %4182 = vtanh.f32 %v1090_v20  ;;  %3900 = vmatmul.mubr.msk.f32.gmra.mrb[50].mxu1 %vm695_vm4, %v1201_v16 }
 0x266   :  { %v4177_v21 = vpop.eup %4176 }
 0x267   :  { %v4179_v22 = vpop.eup %4178  ;;  %v1165_v23 = vadd.f32 1.0, %v4177_v21  ;;  %v3847_v24 = vpop.f32.mrb[18].mxu1 }
 0x268   :  { %v1164_v25 = vadd.f32 1.0, %v4179_v22  ;;  %v1005_v26 = vadd.f32 %v3847_v24, %v4801_v10  ;;  %v999_v27 = vpop.f32.mrb[19].mxu1 }
 0x269   :  { %v1203_v28 = vmul.f32 0.5, %v1165_v23  ;;  %v1000_v29 = vadd.f32 %v4801_v10, %v999_v27  ;;  %v2598_v23 = vld [vmem:[%s5866_s1 + $0x28] sm:$0xff] }
 0x26a   :  { %v1202_v30 = vmul.f32 0.5, %v1164_v25  ;;  %v1093_v31 = vmul.f32 0.5, %v1005_v26  ;;  %2649 = vperm.xlu1 %4059, %v2598_v23   ;;  %v2612_v23 = vld [vmem:[%s5866_s1 + $0x98] sm:$0xff] }
 0x26b   :  { %v1092_v32 = vmul.f32 0.5, %v1000_v29 }
 0x26c   :  { %4184 = vtanh.f32 %v1093_v31  ;;  %3902 = vmatprep.mubr.msk.f32.mxu1 %vm695_vm4, %v1202_v30 }
 0x26d   :  { %4186 = vtanh.f32 %v1092_v32  ;;  %3903 = vmatmul.mubr.msk.f32.gmra.mrb[52].mxu1 %vm695_vm4, %v1203_v28  ;;  %v2599_v28 = vld [vmem:[%s5866_s1 + $0x30] sm:$0xff] }
 0x26e   :  { %v4181_v33 = vpop.eup %4180  ;;  %2652 = vperm.xlu1 %4059, %v2599_v28  }
 0x26f   :  { %v4183_v34 = vpop.eup %4182  ;;  %v1167_v35 = vadd.f32 1.0, %v4181_v33  ;;  %v3850_v36 = vpop.f32.mrb[20].mxu1 }
 0x270   :  { %v1166_v37 = vadd.f32 1.0, %v4183_v34  ;;  %v1015_v38 = vadd.f32 %v3850_v36, %v4801_v10  ;;  %v1009_v39 = vpop.f32.mrb[21].mxu1 }
 0x271   :  { %v1205_v40 = vmul.f32 0.5, %v1167_v35  ;;  %v1010_v41 = vadd.f32 %v4801_v10, %v1009_v39 }
 0x272   :  { %v1204_v42 = vmul.f32 0.5, %v1166_v37  ;;  %v1095_v43 = vmul.f32 0.5, %v1015_v38  ;;  %v2600_v37 = vld [vmem:[%s5866_s1 + $0x38] sm:$0xff] }
 0x273   :  { %v1094_v44 = vmul.f32 0.5, %v1010_v41  ;;  %2655 = vperm.xlu1 %4059, %v2600_v37  }
 0x274   :  { %4188 = vtanh.f32 %v1095_v43  ;;  %3905 = vmatprep.mubr.msk.f32.mxu1 %vm695_vm4, %v1204_v42  ;;  %v2601_v42 = vld [vmem:[%s5866_s1 + $0x40] sm:$0xff] }
 0x275   :  { %4190 = vtanh.f32 %v1094_v44  ;;  %3906 = vmatmul.mubr.msk.f32.gmra.mrb[54].mxu1 %vm695_vm4, %v1205_v40 }
 0x276   :  { %v4185_v45 = vpop.eup %4184 }
 0x277   :  { %v4187_v46 = vpop.eup %4186  ;;  %v1169_v47 = vadd.f32 1.0, %v4185_v45  ;;  %v3853_v48 = vpop.f32.mrb[22].mxu1  ;;  %2658 = vperm.xlu1 %4059, %v2601_v42   ;;  %v2628_v42 = vld [vmem:[%s5866_s1 + $0x118] sm:$0xff] }
 0x278   :  { %v1168_v49 = vadd.f32 1.0, %v4187_v46  ;;  %v1025_v50 = vadd.f32 %v3853_v48, %v4801_v10  ;;  %v1019_v51 = vpop.f32.mrb[23].mxu1 }
 0x279   :  { %v1207_v52 = vmul.f32 0.5, %v1169_v47  ;;  %v1020_v53 = vadd.f32 %v4801_v10, %v1019_v51  ;;  %v2603_v51 = vld [vmem:[%s5866_s1 + $0x50] sm:$0xff] }
 0x27a   :  { %v1206_v54 = vmul.f32 0.5, %v1168_v49  ;;  %v1097_v55 = vmul.f32 0.5, %v1025_v50 }
 0x27b   :  { %v1096_v57 = vmul.f32 0.5, %v1020_v53  ;;  %2664 = vperm.xlu1 %4059, %v2603_v51  }
 0x27c   :  { %4192 = vtanh.f32 %v1097_v55  ;;  %3908 = vmatprep.mubr.msk.f32.mxu1 %vm695_vm4, %v1206_v54 }
 0x27d   :  { %4194 = vtanh.f32 %v1096_v57  ;;  %3909 = vmatmul.mubr.msk.f32.gmra.mrb[56].mxu1 %vm695_vm4, %v1207_v52 }
 0x27e   :  { %v4189_v60 = vpop.eup %4188 }
 0x27f   :  { %v4191_v61 = vpop.eup %4190  ;;  %v1171_v62 = vadd.f32 1.0, %v4189_v60  ;;  %v3856_v63 = vpop.f32.mrb[24].mxu1 }
 0x280   :  { %v1170_v1 = vadd.f32 1.0, %v4191_v61  ;;  %v1035_v2 = vadd.f32 %v3856_v63, %v4801_v10  ;;  %v1029_v3 = vpop.f32.mrb[25].mxu1  ;;  %v2611_v63 = vld [vmem:[%s5866_s1 + $0x90] sm:$0xff] }
 0x281   :  { %v1209_v4 = vmul.f32 0.5, %v1171_v62  ;;  %v1030_v5 = vadd.f32 %v4801_v10, %v1029_v3  ;;  %v2613_v3 = vld [vmem:[%s5866_s1 + $0xa0] sm:$0xff] }
 0x282   :  { %v1208_v6 = vmul.f32 0.5, %v1170_v1  ;;  %v1099_v7 = vmul.f32 0.5, %v1035_v2 }
 0x283   :  { %v1098_v56 = vmul.f32 0.5, %v1030_v5  ;;  %v2616_v5 = vld [vmem:[%s5866_s1 + $0xb8] sm:$0xff] }
 0x284   :  { %4196 = vtanh.f32 %v1099_v7  ;;  %3911 = vmatprep.mubr.msk.f32.mxu1 %vm695_vm4, %v1208_v6  ;;  %v2617_v6 = vld [vmem:[%s5866_s1 + $0xc0] sm:$0xff]  ;;  %v2618_v7 = vld [vmem:[%s5866_s1 + $0xc8] sm:$0xff] }
 0x285   :  { %4198 = vtanh.f32 %v1098_v56  ;;  %3912 = vmatmul.mubr.msk.f32.gmra.mrb[58].mxu1 %vm695_vm4, %v1209_v4  ;;  %v2615_v4 = vld [vmem:[%s5866_s1 + $0xb0] sm:$0xff] }
 0x286   :  { %v4193_v9 = vpop.eup %4192  ;;  %v2619_v56 = vld [vmem:[%s5866_s1 + $0xd0] sm:$0xff] }
 0x287   :  { %v4195_v11 = vpop.eup %4194  ;;  %v1173_v12 = vadd.f32 1.0, %v4193_v9  ;;  %v3859_v13 = vpop.f32.mrb[26].mxu1  ;;  %v2623_v9 = vld [vmem:[%s5866_s1 + $0xf0] sm:$0xff] }
 0x288   :  { %v1172_v15 = vadd.f32 1.0, %v4195_v11  ;;  %v1045_v16 = vadd.f32 %v3859_v13, %v4801_v10  ;;  %v1039_v17 = vpop.f32.mrb[27].mxu1  ;;  %v2624_v11 = vld [vmem:[%s5866_s1 + $0xf8] sm:$0xff]  ;;  %v2593_v13 = vld [vmem:[%s5866_s1] sm:$0xff] }
 0x289   :  { %v1211_v18 = vmul.f32 0.5, %v1173_v12  ;;  %v1040_v19 = vadd.f32 %v4801_v10, %v1039_v17  ;;  %v2626_v12 = vld [vmem:[%s5866_s1 + $0x108] sm:$0xff]  ;;  %2634 = vperm.xlu0 %4058, %v2593_v13   ;;  %v2604_v17 = vld [vmem:[%s5866_s1 + $0x58] sm:$0xff] }
 0x28a   :  { %v1210_v20 = vmul.f32 0.5, %v1172_v15  ;;  %v1101_v21 = vmul.f32 0.5, %v1045_v16  ;;  %v2602_v15 = vld [vmem:[%s5866_s1 + $0x48] sm:$0xff]  ;;  %v2629_v16 = vld [vmem:[%s5866_s1 + $0x120] sm:$0xff] }
 0x28b   :  { %v1100_v22 = vmul.f32 0.5, %v1040_v19  ;;  %v2606_v19 = vld [vmem:[%s5866_s1 + $0x68] sm:$0xff] }
 0x28c   :  { %4200 = vtanh.f32 %v1101_v21  ;;  %3914 = vmatprep.mubr.msk.f32.mxu1 %vm695_vm4, %v1210_v20  ;;  %v2607_v20 = vld [vmem:[%s5866_s1 + $0x70] sm:$0xff]  ;;  %v2609_v21 = vld [vmem:[%s5866_s1 + $0x80] sm:$0xff] }
 0x28d   :  { %4202 = vtanh.f32 %v1100_v22  ;;  %3915 = vmatmul.mubr.msk.f32.gmra.mrb[60].mxu1 %vm695_vm4, %v1211_v18  ;;  %2661 = vperm.xlu0 %4058, %v2602_v15   ;;  %v2630_v18 = vld [vmem:[%s5866_s1 + $0x128] sm:$0xff] }
 0x28e   :  { %v4197_v24 = vpop.eup %4196  ;;  %v2610_v22 = vld [vmem:[%s5866_s1 + $0x88] sm:$0xff] }
 0x28f   :  { %v4199_v25 = vpop.eup %4198  ;;  %v1175_v26 = vadd.f32 1.0, %v4197_v24  ;;  %v3862_v27 = vpop.f32.mrb[28].mxu1  ;;  %v4992_v24 = vld [vmem:[%s5872_s7] ss:$0 sm:$0xff] }
 0x290   :  { %v1174_v29 = vadd.f32 1.0, %v4199_v25  ;;  %v1055_v30 = vadd.f32 %v3862_v27, %v4801_v10  ;;  %v1049_v31 = vpop.f32.mrb[29].mxu1  ;;  %v2614_v25 = vld [vmem:[%s5866_s1 + $0xa8] sm:$0xff] }
 0x291   :  { %v1213_v32 = vmul.f32 0.5, %v1175_v26  ;;  %v1050_v33 = vadd.f32 %v4801_v10, %v1049_v31  ;;  %2667 = vperm.xlu0 %4058, %v2604_v17   ;;  %v2620_v31 = vld [vmem:[%s5866_s1 + $0xd8] sm:$0xff] }
 0x292   :  { %v1212_v34 = vmul.f32 0.5, %v1174_v29  ;;  %v1103_v35 = vmul.f32 0.5, %v1055_v30 }
 0x293   :  { %v1102_v36 = vmul.f32 0.5, %v1050_v33  ;;  %v2622_v33 = vld [vmem:[%s5866_s1 + $0xe8] sm:$0xff] }
 0x294   :  { %4204 = vtanh.f32 %v1103_v35  ;;  %3917 = vmatprep.mubr.msk.f32.mxu1 %vm695_vm4, %v1212_v34 }
 0x295   :  { %4206 = vtanh.f32 %v1102_v36  ;;  %3918 = vmatmul.mubr.msk.f32.gmra.mrb[62].mxu1 %vm695_vm4, %v1213_v32  ;;  %2673 = vperm.xlu0 %4058, %v2606_v19  }
 0x296   :  { %v4201_v38 = vpop.eup %4200 }
 0x297   :  { %v4203_v39 = vpop.eup %4202  ;;  %v1177_v40 = vadd.f32 1.0, %v4201_v38  ;;  %v3865_v41 = vpop.f32.mrb[30].mxu1 }
 0x298   :  { %v1176_v43 = vadd.f32 1.0, %v4203_v39  ;;  %v1065_v44 = vadd.f32 %v3865_v41, %v4801_v10  ;;  %v1059_v45 = vpop.f32.mrb[31].mxu1  ;;  %v2625_v39 = vld [vmem:[%s5866_s1 + $0x100] sm:$0xff] }
 0x299   :  { %v1215_v46 = vmul.f32 0.5, %v1177_v40  ;;  %v1060_v47 = vadd.f32 %v4801_v10, %v1059_v45  ;;  %v2605_v10 = vld [vmem:[%s5866_s1 + $0x60] sm:$0xff]  ;;  %2676 = vperm.xlu0 %4058, %v2607_v20  }
 0x29a   :  { %v1214_v48 = vmul.f32 0.5, %v1176_v43  ;;  %v1105_v49 = vmul.f32 0.5, %v1065_v44  ;;  %2670 = vperm.xlu1 %4059, %v2605_v10  }
 0x29b   :  { %v1104_v50 = vmul.f32 0.5, %v1060_v47 }
 0x29c   :  { %4208 = vtanh.f32 %v1105_v49  ;;  %3920 = vmatprep.mubr.msk.f32.mxu1 %vm695_vm4, %v1214_v48 }
 0x29d   :  { %4210 = vtanh.f32 %v1104_v50  ;;  %3921 = vmatmul.mubr.msk.f32.gmra.mrb[64].mxu1 %vm695_vm4, %v1215_v46  ;;  %2682 = vperm.xlu0 %4058, %v2609_v21  }
 0x29e   :  { %v4205_v52 = vpop.eup %4204  ;;  %2679 = vperm.xlu1 %4059, %v2608_v59  }
 0x29f   :  { %v4207_v53 = vpop.eup %4206  ;;  %v1179_v54 = vadd.f32 1.0, %v4205_v52 }
 0x2a0   :  { %v1178_v55 = vadd.f32 1.0, %v4207_v53 }
 0x2a1   :  { %v1217_v57 = vmul.f32 0.5, %v1179_v54  ;;  %2685 = vperm.xlu0 %4058, %v2610_v22  }
 0x2a2   :  { %v1216_v58 = vmul.f32 0.5, %v1178_v55  ;;  %2688 = vperm.xlu1 %4059, %v2611_v63  }
 0x2a4   :  { %3923 = vmatprep.mubr.msk.f32.mxu1 %vm695_vm4, %v1216_v58 }
 0x2a5   :  { %3924 = vmatmul.mubr.msk.f32.gmra.mrb[66].mxu1 %vm695_vm4, %v1217_v57  ;;  %2691 = vperm.xlu0 %4058, %v2612_v23  }
 0x2a6   :  { %v4209_v60 = vpop.eup %4208  ;;  %2694 = vperm.xlu1 %4059, %v2613_v3  }
 0x2a7   :  { %v4211_v61 = vpop.eup %4210  ;;  %v1181_v62 = vadd.f32 1.0, %v4209_v60 }
 0x2a8   :  { %v1180_v0 = vadd.f32 1.0, %v4211_v61 }
 0x2a9   :  { %v1219_v1 = vmul.f32 0.5, %v1181_v62  ;;  %2697 = vperm.xlu0 %4058, %v2614_v25  }
 0x2aa   :  { %v1218_v2 = vmul.f32 0.5, %v1180_v0  ;;  %2700 = vperm.xlu1 %4059, %v2615_v4  }
 0x2ac   :  { %3926 = vmatprep.mubr.msk.f32.mxu1 %vm695_vm4, %v1218_v2 }
 0x2ad   :  { %3927 = vmatmul.mubr.msk.f32.gmra.mrb[68].mxu1 %vm695_vm4, %v1219_v1  ;;  %2715 = vperm.xlu0 %4058, %v2620_v31  }
 0x2ae   :  { %2703 = vperm.xlu1 %4059, %v2616_v5  }
 0x2b1   :  { %2721 = vperm.xlu0 %4058, %v2622_v33  }
 0x2b2   :  { %2706 = vperm.xlu1 %4059, %v2617_v6  }
 0x2b5   :  { %2730 = vperm.xlu0 %4058, %v2625_v39  }
 0x2b6   :  { %2709 = vperm.xlu1 %4059, %v2618_v7  }
 0x2b9   :  { %2739 = vperm.xlu0 %4058, %v2628_v42  }
 0x2ba   :  { %2712 = vperm.xlu1 %4059, %v2619_v56  }
 0x2be   :  { %2718 = vperm.xlu1 %4059, %v2621_v8  }
 0x2c2   :  { %2724 = vperm.xlu1 %4059, %v2623_v9  }
 0x2c6   :  { %2727 = vperm.xlu1 %4059, %v2624_v11  }
 0x2ca   :  { %2733 = vperm.xlu1 %4059, %v2626_v12  }
 0x2ce   :  { %2736 = vperm.xlu1 %4059, %v2627_v14  }
 0x2d2   :  { %2742 = vperm.xlu1 %4059, %v2629_v16  }
 0x2d6   :  { %2745 = vperm.xlu1 %4059, %v2630_v18  }
 0x2f0   :  { %v3874_v26 = vpop.f32.mrb[32].mxu1 }
 0x2f1   :  { %v1419_v27 = vadd.f32 %v3874_v26, %v4992_v24  ;;  %v1413_v28 = vpop.f32.mrb[33].mxu1 }
 0x2f2   :  { %v1414_v29 = vadd.f32 %v4992_v24, %v1413_v28 }
 0x2f3   :  { %v1603_v30 = vmul.f32 0.5, %v1419_v27 }
 0x2f4   :  { %v1602_v32 = vmul.f32 0.5, %v1414_v29 }
 0x2f5   :  { %4212 = vtanh.f32 %v1603_v30 }
 0x2f6   :  { %4214 = vtanh.f32 %v1602_v32 }
 0x2f8   :  { %v3877_v34 = vpop.f32.mrb[34].mxu1 }
 0x2f9   :  { %v1429_v35 = vadd.f32 %v3877_v34, %v4992_v24  ;;  %v1423_v36 = vpop.f32.mrb[35].mxu1 }
 0x2fa   :  { %v1424_v37 = vadd.f32 %v4992_v24, %v1423_v36 }
 0x2fb   :  { %v1605_v38 = vmul.f32 0.5, %v1429_v35 }
 0x2fc   :  { %v1604_v40 = vmul.f32 0.5, %v1424_v37 }
 0x2fd   :  { %4216 = vtanh.f32 %v1605_v38 }
 0x2fe   :  { %4218 = vtanh.f32 %v1604_v40 }
 0x2ff   :  { %v4213_v41 = vpop.eup %4212 }
 0x300   :  { %v4215_v43 = vpop.eup %4214  ;;  %v1679_v44 = vadd.f32 1.0, %v4213_v41  ;;  %v3880_v45 = vpop.f32.mrb[36].mxu1 }
 0x301   :  { %v1678_v46 = vadd.f32 1.0, %v4215_v43  ;;  %v1439_v47 = vadd.f32 %v3880_v45, %v4992_v24  ;;  %v1433_v48 = vpop.f32.mrb[37].mxu1 }
 0x302   :  { %v1434_v49 = vadd.f32 %v4992_v24, %v1433_v48  ;;  %v1717_v52 = vmul.f32 0.5, %v1679_v44 }
 0x303   :  { %v1716_v50 = vmul.f32 0.5, %v1678_v46  ;;  %v1607_v51 = vmul.f32 0.5, %v1439_v47 }
 0x304   :  { %v1606_v53 = vmul.f32 0.5, %v1434_v49 }
 0x305   :  { %4220 = vtanh.f32 %v1607_v51  ;;  %3935 = vmatprep.mubr.msk.f32.mxu1 %vm695_vm4, %v1716_v50 }
 0x306   :  { %4222 = vtanh.f32 %v1606_v53  ;;  %3936 = vmatmul.mubr.msk.f32.vlgmr.msra.gmra.mrb[70].mxu1 %vm695_vm4, %v1717_v52 }
 0x307   :  { %v4217_v54 = vpop.eup %4216 }
 0x308   :  { %v4219_v10 = vpop.eup %4218  ;;  %v1681_v55 = vadd.f32 1.0, %v4217_v54  ;;  %v3883_v57 = vpop.f32.mrb[38].mxu1 }
 0x309   :  { %v1680_v58 = vadd.f32 1.0, %v4219_v10  ;;  %v1449_v59 = vadd.f32 %v3883_v57, %v4992_v24  ;;  %v1443_v60 = vpop.f32.mrb[39].mxu1 }
 0x30a   :  { %v1444_v61 = vadd.f32 %v4992_v24, %v1443_v60  ;;  %v1719_v0 = vmul.f32 0.5, %v1681_v55 }
 0x30b   :  { %v1718_v62 = vmul.f32 0.5, %v1680_v58  ;;  %v1609_v63 = vmul.f32 0.5, %v1449_v59 }
 0x30c   :  { %v1608_v1 = vmul.f32 0.5, %v1444_v61 }
 0x30d   :  { %4224 = vtanh.f32 %v1609_v63  ;;  %3938 = vmatprep.mubr.msk.f32.mxu1 %vm695_vm4, %v1718_v62 }
 0x30e   :  { %4226 = vtanh.f32 %v1608_v1  ;;  %3939 = vmatmul.mubr.msk.f32.gmra.mrb[72].mxu1 %vm695_vm4, %v1719_v0 }
 0x30f   :  { %v4221_v2 = vpop.eup %4220 }
 0x310   :  { %v4223_v3 = vpop.eup %4222  ;;  %v1683_v4 = vadd.f32 1.0, %v4221_v2  ;;  %v3886_v5 = vpop.f32.mrb[40].mxu1 }
 0x311   :  { %v1682_v6 = vadd.f32 1.0, %v4223_v3  ;;  %v1459_v7 = vadd.f32 %v3886_v5, %v4992_v24  ;;  %v1453_v56 = vpop.f32.mrb[41].mxu1 }
 0x312   :  { %v1721_v8 = vmul.f32 0.5, %v1683_v4  ;;  %v1454_v9 = vadd.f32 %v4992_v24, %v1453_v56 }
 0x313   :  { %v1720_v11 = vmul.f32 0.5, %v1682_v6  ;;  %v1611_v12 = vmul.f32 0.5, %v1459_v7 }
 0x314   :  { %v1610_v13 = vmul.f32 0.5, %v1454_v9 }
 0x315   :  { %4228 = vtanh.f32 %v1611_v12  ;;  %3941 = vmatprep.mubr.msk.f32.mxu1 %vm695_vm4, %v1720_v11 }
 0x316   :  { %4230 = vtanh.f32 %v1610_v13  ;;  %3942 = vmatmul.mubr.msk.f32.gmra.mrb[74].mxu1 %vm695_vm4, %v1721_v8 }
 0x317   :  { %v4225_v14 = vpop.eup %4224 }
 0x318   :  { %v4227_v15 = vpop.eup %4226  ;;  %v1685_v16 = vadd.f32 1.0, %v4225_v14  ;;  %v3889_v17 = vpop.f32.mrb[42].mxu1 }
 0x319   :  { %v1684_v18 = vadd.f32 1.0, %v4227_v15  ;;  %v1469_v19 = vadd.f32 %v3889_v17, %v4992_v24  ;;  %v1463_v20 = vpop.f32.mrb[43].mxu1 }
 0x31a   :  { %v1723_v21 = vmul.f32 0.5, %v1685_v16  ;;  %v1464_v22 = vadd.f32 %v4992_v24, %v1463_v20 }
 0x31b   :  { %v1722_v23 = vmul.f32 0.5, %v1684_v18  ;;  %v1613_v25 = vmul.f32 0.5, %v1469_v19 }
 0x31c   :  { %v1612_v26 = vmul.f32 0.5, %v1464_v22 }
 0x31d   :  { %4232 = vtanh.f32 %v1613_v25  ;;  %3944 = vmatprep.mubr.msk.f32.mxu1 %vm695_vm4, %v1722_v23 }
 0x31e   :  { %4234 = vtanh.f32 %v1612_v26  ;;  %3945 = vmatmul.mubr.msk.f32.gmra.mrb[76].mxu1 %vm695_vm4, %v1723_v21 }
 0x31f   :  { %v4229_v27 = vpop.eup %4228 }
 0x320   :  { %v4231_v28 = vpop.eup %4230  ;;  %v1687_v29 = vadd.f32 1.0, %v4229_v27  ;;  %v3892_v30 = vpop.f32.mrb[44].mxu1 }
 0x321   :  { %v1686_v31 = vadd.f32 1.0, %v4231_v28  ;;  %v1479_v32 = vadd.f32 %v3892_v30, %v4992_v24  ;;  %v1473_v33 = vpop.f32.mrb[45].mxu1 }
 0x322   :  { %v1725_v34 = vmul.f32 0.5, %v1687_v29  ;;  %v1474_v35 = vadd.f32 %v4992_v24, %v1473_v33 }
 0x323   :  { %v1724_v36 = vmul.f32 0.5, %v1686_v31  ;;  %v1615_v37 = vmul.f32 0.5, %v1479_v32 }
 0x324   :  { %v1614_v38 = vmul.f32 0.5, %v1474_v35 }
 0x325   :  { %4236 = vtanh.f32 %v1615_v37  ;;  %3947 = vmatprep.mubr.msk.f32.mxu1 %vm695_vm4, %v1724_v36 }
 0x326   :  { %4238 = vtanh.f32 %v1614_v38  ;;  %3948 = vmatmul.mubr.msk.f32.gmra.mrb[78].mxu1 %vm695_vm4, %v1725_v34 }
 0x327   :  { %v4233_v39 = vpop.eup %4232 }
 0x328   :  { %v4235_v40 = vpop.eup %4234  ;;  %v1689_v41 = vadd.f32 1.0, %v4233_v39  ;;  %v3895_v42 = vpop.f32.mrb[46].mxu1 }
 0x329   :  { %v1688_v43 = vadd.f32 1.0, %v4235_v40  ;;  %v1489_v44 = vadd.f32 %v3895_v42, %v4992_v24  ;;  %v1483_v45 = vpop.f32.mrb[47].mxu1 }
 0x32a   :  { %v1727_v46 = vmul.f32 0.5, %v1689_v41  ;;  %v1484_v47 = vadd.f32 %v4992_v24, %v1483_v45 }
 0x32b   :  { %v1726_v48 = vmul.f32 0.5, %v1688_v43  ;;  %v1617_v49 = vmul.f32 0.5, %v1489_v44 }
 0x32c   :  { %v1616_v50 = vmul.f32 0.5, %v1484_v47 }
 0x32d   :  { %4240 = vtanh.f32 %v1617_v49  ;;  %3950 = vmatprep.mubr.msk.f32.mxu1 %vm695_vm4, %v1726_v48 }
 0x32e   :  { %4242 = vtanh.f32 %v1616_v50  ;;  %3951 = vmatmul.mubr.msk.f32.gmra.mrb[80].mxu1 %vm695_vm4, %v1727_v46 }
 0x32f   :  { %v4237_v51 = vpop.eup %4236 }
 0x330   :  { %v4239_v52 = vpop.eup %4238  ;;  %v1691_v53 = vadd.f32 1.0, %v4237_v51  ;;  %v3898_v54 = vpop.f32.mrb[48].mxu1 }
 0x331   :  { %v1690_v10 = vadd.f32 1.0, %v4239_v52  ;;  %v1499_v55 = vadd.f32 %v3898_v54, %v4992_v24  ;;  %v1493_v57 = vpop.f32.mrb[49].mxu1 }
 0x332   :  { %v1729_v58 = vmul.f32 0.5, %v1691_v53  ;;  %v1494_v59 = vadd.f32 %v4992_v24, %v1493_v57 }
 0x333   :  { %v1728_v60 = vmul.f32 0.5, %v1690_v10  ;;  %v1619_v61 = vmul.f32 0.5, %v1499_v55 }
 0x334   :  { %v1618_v62 = vmul.f32 0.5, %v1494_v59 }
 0x335   :  { %4244 = vtanh.f32 %v1619_v61  ;;  %3953 = vmatprep.mubr.msk.f32.mxu1 %vm695_vm4, %v1728_v60 }
 0x336   :  { %4246 = vtanh.f32 %v1618_v62  ;;  %3954 = vmatmul.mubr.msk.f32.gmra.mrb[82].mxu1 %vm695_vm4, %v1729_v58 }
 0x337   :  { %v4241_v63 = vpop.eup %4240 }
 0x338   :  { %v4243_v0 = vpop.eup %4242  ;;  %v1693_v1 = vadd.f32 1.0, %v4241_v63  ;;  %v3901_v2 = vpop.f32.mrb[50].mxu1 }
 0x339   :  { %v1692_v3 = vadd.f32 1.0, %v4243_v0  ;;  %v1509_v4 = vadd.f32 %v3901_v2, %v4992_v24  ;;  %v1503_v5 = vpop.f32.mrb[51].mxu1 }
 0x33a   :  { %v1731_v6 = vmul.f32 0.5, %v1693_v1  ;;  %v1504_v7 = vadd.f32 %v4992_v24, %v1503_v5 }
 0x33b   :  { %v1730_v56 = vmul.f32 0.5, %v1692_v3  ;;  %v1621_v8 = vmul.f32 0.5, %v1509_v4 }
 0x33c   :  { %v1620_v9 = vmul.f32 0.5, %v1504_v7 }
 0x33d   :  { %4248 = vtanh.f32 %v1621_v8  ;;  %3956 = vmatprep.mubr.msk.f32.mxu1 %vm695_vm4, %v1730_v56 }
 0x33e   :  { %4250 = vtanh.f32 %v1620_v9  ;;  %3957 = vmatmul.mubr.msk.f32.gmra.mrb[84].mxu1 %vm695_vm4, %v1731_v6 }
 0x33f   :  { %v4245_v11 = vpop.eup %4244 }
 0x340   :  { %v4247_v12 = vpop.eup %4246  ;;  %v1695_v13 = vadd.f32 1.0, %v4245_v11  ;;  %v3904_v14 = vpop.f32.mrb[52].mxu1 }
 0x341   :  { %v1694_v15 = vadd.f32 1.0, %v4247_v12  ;;  %v1519_v16 = vadd.f32 %v3904_v14, %v4992_v24  ;;  %v1513_v17 = vpop.f32.mrb[53].mxu1 }
 0x342   :  { %v1733_v18 = vmul.f32 0.5, %v1695_v13  ;;  %v1514_v19 = vadd.f32 %v4992_v24, %v1513_v17 }
 0x343   :  { %v1732_v20 = vmul.f32 0.5, %v1694_v15  ;;  %v1623_v21 = vmul.f32 0.5, %v1519_v16 }
 0x344   :  { %v1622_v22 = vmul.f32 0.5, %v1514_v19 }
 0x345   :  { %4252 = vtanh.f32 %v1623_v21  ;;  %3959 = vmatprep.mubr.msk.f32.mxu1 %vm695_vm4, %v1732_v20 }
 0x346   :  { %4254 = vtanh.f32 %v1622_v22  ;;  %3960 = vmatmul.mubr.msk.f32.gmra.mrb[86].mxu1 %vm695_vm4, %v1733_v18 }
 0x347   :  { %v4249_v23 = vpop.eup %4248 }
 0x348   :  { %v4251_v25 = vpop.eup %4250  ;;  %v1697_v26 = vadd.f32 1.0, %v4249_v23  ;;  %v3907_v27 = vpop.f32.mrb[54].mxu1 }
 0x349   :  { %v1696_v28 = vadd.f32 1.0, %v4251_v25  ;;  %v1529_v29 = vadd.f32 %v3907_v27, %v4992_v24  ;;  %v1523_v30 = vpop.f32.mrb[55].mxu1 }
 0x34a   :  { %v1735_v31 = vmul.f32 0.5, %v1697_v26  ;;  %v1524_v32 = vadd.f32 %v4992_v24, %v1523_v30 }
 0x34b   :  { %v1734_v33 = vmul.f32 0.5, %v1696_v28  ;;  %v1625_v34 = vmul.f32 0.5, %v1529_v29 }
 0x34c   :  { %v1624_v35 = vmul.f32 0.5, %v1524_v32 }
 0x34d   :  { %4256 = vtanh.f32 %v1625_v34  ;;  %3962 = vmatprep.mubr.msk.f32.mxu1 %vm695_vm4, %v1734_v33 }
 0x34e   :  { %4258 = vtanh.f32 %v1624_v35  ;;  %3963 = vmatmul.mubr.msk.f32.gmra.mrb[88].mxu1 %vm695_vm4, %v1735_v31 }
 0x34f   :  { %v4253_v36 = vpop.eup %4252 }
 0x350   :  { %v4255_v37 = vpop.eup %4254  ;;  %v1699_v38 = vadd.f32 1.0, %v4253_v36  ;;  %v3910_v39 = vpop.f32.mrb[56].mxu1 }
 0x351   :  { %v1698_v40 = vadd.f32 1.0, %v4255_v37  ;;  %v1539_v41 = vadd.f32 %v3910_v39, %v4992_v24  ;;  %v1533_v42 = vpop.f32.mrb[57].mxu1 }
 0x352   :  { %v1737_v43 = vmul.f32 0.5, %v1699_v38  ;;  %v1534_v44 = vadd.f32 %v4992_v24, %v1533_v42 }
 0x353   :  { %v1736_v45 = vmul.f32 0.5, %v1698_v40  ;;  %v1627_v46 = vmul.f32 0.5, %v1539_v41 }
 0x354   :  { %v1626_v47 = vmul.f32 0.5, %v1534_v44 }
 0x355   :  { %4260 = vtanh.f32 %v1627_v46  ;;  %3965 = vmatprep.mubr.msk.f32.mxu1 %vm695_vm4, %v1736_v45 }
 0x356   :  { %4262 = vtanh.f32 %v1626_v47  ;;  %3966 = vmatmul.mubr.msk.f32.gmra.mrb[90].mxu1 %vm695_vm4, %v1737_v43 }
 0x357   :  { %v4257_v48 = vpop.eup %4256 }
 0x358   :  { %v4259_v49 = vpop.eup %4258  ;;  %v1701_v50 = vadd.f32 1.0, %v4257_v48  ;;  %v3913_v51 = vpop.f32.mrb[58].mxu1 }
 0x359   :  { %v1700_v52 = vadd.f32 1.0, %v4259_v49  ;;  %v1549_v53 = vadd.f32 %v3913_v51, %v4992_v24  ;;  %v1543_v54 = vpop.f32.mrb[59].mxu1 }
 0x35a   :  { %v1739_v10 = vmul.f32 0.5, %v1701_v50  ;;  %v1544_v55 = vadd.f32 %v4992_v24, %v1543_v54 }
 0x35b   :  { %v1738_v57 = vmul.f32 0.5, %v1700_v52  ;;  %v1629_v58 = vmul.f32 0.5, %v1549_v53 }
 0x35c   :  { %v1628_v59 = vmul.f32 0.5, %v1544_v55 }
 0x35d   :  { %4264 = vtanh.f32 %v1629_v58  ;;  %3968 = vmatprep.mubr.msk.f32.mxu1 %vm695_vm4, %v1738_v57 }
 0x35e   :  { %4266 = vtanh.f32 %v1628_v59  ;;  %3969 = vmatmul.mubr.msk.f32.gmra.mrb[92].mxu1 %vm695_vm4, %v1739_v10 }
 0x35f   :  { %v4261_v60 = vpop.eup %4260 }
 0x360   :  { %v4263_v61 = vpop.eup %4262  ;;  %v1703_v62 = vadd.f32 1.0, %v4261_v60  ;;  %v3916_v63 = vpop.f32.mrb[60].mxu1 }
 0x361   :  { %v1702_v0 = vadd.f32 1.0, %v4263_v61  ;;  %v1559_v1 = vadd.f32 %v3916_v63, %v4992_v24  ;;  %v1553_v2 = vpop.f32.mrb[61].mxu1 }
 0x362   :  { %v1741_v3 = vmul.f32 0.5, %v1703_v62  ;;  %v1554_v4 = vadd.f32 %v4992_v24, %v1553_v2 }
 0x363   :  { %v1740_v5 = vmul.f32 0.5, %v1702_v0  ;;  %v1631_v6 = vmul.f32 0.5, %v1559_v1 }
 0x364   :  { %v1630_v7 = vmul.f32 0.5, %v1554_v4  ;;  %v5876_v4 = vlaneseq }
 0x365   :  { %4268 = vtanh.f32 %v1631_v6  ;;  %3971 = vmatprep.mubr.msk.f32.mxu1 %vm695_vm4, %v1740_v5  ;;  %v2638_v6 = vpop.permute.xlu1 %2637 }
 0x366   :  { %4270 = vtanh.f32 %v1630_v7  ;;  %3972 = vmatmul.mubr.msk.f32.gmra.mrb[94].mxu1 %vm695_vm4, %v1741_v3  ;;  %v5086_v5 = vand.u32 127, %v5876_v4  ;;  %v2635_v7 = vpop.permute.xlu0 %2634 }
 0x367   :  { %v4265_v56 = vpop.eup %4264 }
 0x368   :  { %v4267_v8 = vpop.eup %4266  ;;  %v1705_v9 = vadd.f32 1.0, %v4265_v56  ;;  %v3919_v11 = vpop.f32.mrb[62].mxu1  ;;  %vm2747_vm5 = vcmp.eq.s32.totalorder %v5086_v5, %v2635_v7  ;;  %v5092_v56 = vld [vmem:[%s5874_s9] ss:$0 sm:$0xff]  ;;  %vm2748_vm7 = vcmp.eq.s32.totalorder %v5086_v5, %v2638_v6  ;;  %s4495_s9 = smov [#allocation5]  }
 0x369   :  { %v1704_v12 = vadd.f32 1.0, %v4267_v8  ;;  %v1569_v13 = vadd.f32 %v3919_v11, %v4992_v24  ;;  %v1563_v14 = vpop.f32.mrb[63].mxu1  ;;  %v2641_v8 = vpop.permute.xlu1 %2640  ;;  %v5877_v11 = vmov 0.0   ;;  %s3472_s30 = sshll.u32 %s4495_s9, 4  ;;  %s3473_s30 = int_to_ptr.vmem [resolvable:$true] %s3472_s30 }
 0x36a   :  { %v1743_v15 = vmul.f32 0.5, %v1705_v9  ;;  %v1564_v16 = vadd.f32 %v4992_v24, %v1563_v14  ;;  %vm2749_vm9 = vcmp.eq.s32.totalorder %v5086_v5, %v2641_v8  ;;  %s4462_s12 = scalar_lea.vmem %s3473_s30, 16  ;;  %s4466_s8 = scalar_lea.vmem %s3473_s30, 32 }
 0x36b   :  { %v1742_v17 = vmul.f32 0.5, %v1704_v12  ;;  %v1633_v18 = vmul.f32 0.5, %v1569_v13  ;;  %v3641_v12 = vsel %vm2747_vm5, 1.0, %v5877_v11  ;;  %p4463_p8 = scmp.ne.s32.totalorder %s3473_s30, %s4462_s12  ;;  %p4467_p9 = scmp.lt.s32.totalorder %s3473_s30, %s3473_s30 }
 0x36c   :  { %v1632_v19 = vmul.f32 0.5, %v1564_v16  ;;  %p4468_p10 = scmp.lt.s32.totalorder %s4466_s8, %s4462_s12 }
 0x36d   :  { %4272 = vtanh.f32 %v1633_v18  ;;  %3974 = vmatprep.mubr.msk.f32.mxu1 %vm695_vm4, %v1742_v17  ;;  %v3642_v17 = vsel %vm2748_vm7, 1.0, %v5877_v11 }
 0x36e   :  { %4274 = vtanh.f32 %v1632_v19  ;;  %3975 = vmatmul.mubr.msk.f32.gmra.mrb[96].mxu1 %vm695_vm4, %v1743_v15  ;;  %v2644_v19 = vpop.permute.xlu1 %2643  ;;  %p4469_p11 = por %p4468_p10, %p4467_p9 }
 0x36f   :  { %v4269_v20 = vpop.eup %4268  ;;  %vm2750_vm8 = vcmp.eq.s32.totalorder %v5086_v5, %v2644_v19 }
 0x370   :  { %v4271_v21 = vpop.eup %4270  ;;  %v1707_v22 = vadd.f32 1.0, %v4269_v20  ;;  %v3922_v23 = vpop.f32.mrb[64].mxu1  ;;  %p4470_p12 = pnand %p4469_p11, %p4463_p8 }
 0x371   :  { %v1706_v25 = vadd.f32 1.0, %v4271_v21  ;;  %v1579_v26 = vadd.f32 %v3922_v23, %v4992_v24  ;;  %v1573_v27 = vpop.f32.mrb[65].mxu1 }
 0x372   :  { %v1745_v28 = vmul.f32 0.5, %v1707_v22  ;;  %v1574_v29 = vadd.f32 %v4992_v24, %v1573_v27  ;;  %v3644_v27 = vsel %vm2750_vm8, 1.0, %v5877_v11 }
 0x373   :  { %v1744_v30 = vmul.f32 0.5, %v1706_v25  ;;  %v1635_v31 = vmul.f32 0.5, %v1579_v26 }
 0x374   :  { %v1634_v32 = vmul.f32 0.5, %v1574_v29 }
 0x375   :  { %4276 = vtanh.f32 %v1635_v31  ;;  %3977 = vmatprep.mubr.msk.f32.mxu1 %vm695_vm4, %v1744_v30 }
 0x376   :  { %4278 = vtanh.f32 %v1634_v32  ;;  %3978 = vmatmul.mubr.msk.f32.gmra.mrb[98].mxu1 %vm695_vm4, %v1745_v28  ;;  %v2647_v32 = vpop.permute.xlu1 %2646 }
 0x377   :  { %v4273_v33 = vpop.eup %4272  ;;  %vm2751_vm11 = vcmp.eq.s32.totalorder %v5086_v5, %v2647_v32 }
 0x378   :  { %v4275_v34 = vpop.eup %4274  ;;  %v1709_v35 = vadd.f32 1.0, %v4273_v33  ;;  %v3925_v36 = vpop.f32.mrb[66].mxu1  ;;  %v3643_v33 = vsel %vm2749_vm9, 1.0, %v5877_v11 }
 0x379   :  { %v1708_v37 = vadd.f32 1.0, %v4275_v34  ;;  %v1589_v38 = vadd.f32 %v3925_v36, %v4992_v24  ;;  %v1583_v39 = vpop.f32.mrb[67].mxu1 }
 0x37a   :  { %v1747_v40 = vmul.f32 0.5, %v1709_v35  ;;  %v1584_v41 = vadd.f32 %v4992_v24, %v1583_v39 }
 0x37b   :  { %v1746_v42 = vmul.f32 0.5, %v1708_v37  ;;  %v1637_v43 = vmul.f32 0.5, %v1589_v38 }
 0x37c   :  { %v1636_v44 = vmul.f32 0.5, %v1584_v41 }
 0x37d   :  { %4280 = vtanh.f32 %v1637_v43  ;;  %3980 = vmatprep.mubr.msk.f32.mxu1 %vm695_vm4, %v1746_v42 }
 0x37e   :  { %4282 = vtanh.f32 %v1636_v44  ;;  %3981 = vmatmul.mubr.msk.f32.gmra.mrb[100].mxu1 %vm695_vm4, %v1747_v40  ;;  %v2650_v40 = vpop.permute.xlu1 %2649 }
 0x37f   :  { %v4277_v45 = vpop.eup %4276  ;;  %vm2752_vm10 = vcmp.eq.s32.totalorder %v5086_v5, %v2650_v40 }
 0x380   :  { %v4279_v46 = vpop.eup %4278  ;;  %v1711_v47 = vadd.f32 1.0, %v4277_v45  ;;  %v3928_v48 = vpop.f32.mrb[68].mxu1  ;;  %v3646_v44 = vsel %vm2752_vm10, 1.0, %v5877_v11 }
 0x381   :  { %v1710_v49 = vadd.f32 1.0, %v4279_v46  ;;  %v1599_v50 = vadd.f32 %v3928_v48, %v4992_v24  ;;  %v1593_v51 = vpop.f32.mrb[69].mxu1 }
 0x382   :  { %v1749_v52 = vmul.f32 0.5, %v1711_v47  ;;  %v1594_v53 = vadd.f32 %v4992_v24, %v1593_v51  ;;  %v2653_v47 = vpop.permute.xlu1 %2652  ;;  %v3645_v51 = vsel %vm2751_vm11, 1.0, %v5877_v11 }
 0x383   :  { %v1748_v54 = vmul.f32 0.5, %v1710_v49  ;;  %v1639_v10 = vmul.f32 0.5, %v1599_v50  ;;  %vm2753_vm13 = vcmp.eq.s32.totalorder %v5086_v5, %v2653_v47 }
 0x384   :  { %v1638_v55 = vmul.f32 0.5, %v1594_v53 }
 0x385   :  { %4284 = vtanh.f32 %v1639_v10  ;;  %3983 = vmatprep.mubr.msk.f32.mxu1 %vm695_vm4, %v1748_v54 }
 0x386   :  { %4286 = vtanh.f32 %v1638_v55  ;;  %3984 = vmatmul.mubr.msk.f32.gmra.mrb[102].mxu1 %vm695_vm4, %v1749_v52  ;;  %v2656_v10 = vpop.permute.xlu1 %2655 }
 0x387   :  { %v4281_v57 = vpop.eup %4280  ;;  %vm2754_vm12 = vcmp.eq.s32.totalorder %v5086_v5, %v2656_v10 }
 0x388   :  { %v4283_v58 = vpop.eup %4282  ;;  %v1713_v59 = vadd.f32 1.0, %v4281_v57 }
 0x389   :  { %v1712_v60 = vadd.f32 1.0, %v4283_v58 }
 0x38a   :  { %v1751_v61 = vmul.f32 0.5, %v1713_v59 }
 0x38b   :  { %v1750_v62 = vmul.f32 0.5, %v1712_v60 }
 0x38d   :  { %3986 = vmatprep.mubr.msk.f32.mxu1 %vm695_vm4, %v1750_v62 }
 0x38e   :  { %3987 = vmatmul.mubr.msk.f32.gmra.mrb[104].mxu1 %vm695_vm4, %v1751_v61  ;;  %v3648_v61 = vsel %vm2754_vm12, 1.0, %v5877_v11 }
 0x38f   :  { %v4285_v24 = vpop.eup %4284 }
 0x390   :  { %v4287_v63 = vpop.eup %4286  ;;  %v1715_v0 = vadd.f32 1.0, %v4285_v24 }
 0x391   :  { %v1714_v1 = vadd.f32 1.0, %v4287_v63 }
 0x392   :  { %v1753_v2 = vmul.f32 0.5, %v1715_v0  ;;  %v3647_v0 = vsel %vm2753_vm13, 1.0, %v5877_v11 }
 0x393   :  { %v1752_v3 = vmul.f32 0.5, %v1714_v1 }
 0x395   :  { %3989 = vmatprep.mubr.msk.f32.mxu1 %vm695_vm4, %v1752_v3  ;;  %v2662_v3 = vpop.permute.xlu0 %2661 }
 0x396   :  { %3990 = vmatmul.mubr.msk.f32.gmra.mrb[106].mxu1 %vm695_vm4, %v1753_v2  ;;  %vm2756_vm14 = vcmp.eq.s32.totalorder %v5086_v5, %v2662_v3 }
 0x399   :  { %v2668_v32 = vpop.permute.xlu0 %2667 }
 0x39a   :  { %vm2758_vm0 = vcmp.eq.s32.totalorder %v5086_v5, %v2668_v32 }
 0x3d9   :  { %v3937_v9 = vpop.f32.mrb[70].mxu1 }
 0x3da   :  { %v5097_v13 = vadd.f32 %v3937_v9, %v5092_v56  ;;  %v1947_v14 = vpop.f32.mrb[71].mxu1  ;;  %v2659_v9 = vpop.permute.xlu1 %2658 }
 0x3db   :  { %v5100_v15 = vadd.f32 %v5092_v56, %v1947_v14  ;;  %vm2755_vm15 = vcmp.eq.s32.totalorder %v5086_v5, %v2659_v9 }
 0x3dc   :  { %v2140_v16 = vsel %vm2136_vm6, %v5097_v13, -inf  ;;  %v2862_v22 = vmul.f32 %v3642_v17, %v5097_v13 }
 0x3dd   :  { %2141 = vmax.xlane.f32.xlu0 %v2140_v16  ;;  %v2861_v18 = vmul.f32 %v3641_v12, %v5100_v15  ;;  %v2137_v21 = vsel %vm2136_vm6, %v5100_v15, -inf  ;;  %v3650_v16 = vsel %vm2756_vm14, 1.0, %v5877_v11 }
 0x3de   :  { %v2902_v30 = vsel %vm2136_vm6, %v2862_v22, 0.0 }
 0x3df   :  { %v2899_v20 = vsel %vm2136_vm6, %v2861_v18, 0.0 }
 0x3e0   :  { %2900 = vadd.xlane.f32.xlu1 %v2899_v20  ;;  %v2665_v20 = vpop.permute.xlu1 %2664 }
 0x3e1   :  { %v3940_v23 = vpop.f32.mrb[72].mxu1  ;;  %2138 = vmax.xlane.f32.xlu0 %v2137_v21  ;;  %vm2757_vm1 = vcmp.eq.s32.totalorder %v5086_v5, %v2665_v20 }
 0x3e2   :  { %v5112_v25 = vadd.f32 %v3940_v23, %v5092_v56  ;;  %v1957_v26 = vpop.f32.mrb[73].mxu1 }
 0x3e3   :  { %v5117_v28 = vadd.f32 %v5092_v56, %v1957_v26  ;;  %v3649_v26 = vsel %vm2755_vm15, 1.0, %v5877_v11 }
 0x3e4   :  { %v2146_v29 = vsel %vm2136_vm6, %v5112_v25, -inf  ;;  %v2864_v31 = vmul.f32 %v3644_v27, %v5112_v25 }
 0x3e5   :  { %2147 = vmax.xlane.f32.xlu1 %v2146_v29  ;;  %2903 = vadd.xlane.f32.xlu0 %v2902_v30  ;;  %v2143_v34 = vsel %vm2136_vm6, %v5117_v28, -inf  ;;  %v2863_v36 = vmul.f32 %v3643_v33, %v5117_v28 }
 0x3e6   :  { %v2908_v35 = vsel %vm2136_vm6, %v2864_v31, 0.0  ;;  %v2671_v31 = vpop.permute.xlu1 %2670 }
 0x3e7   :  { %v2905_v43 = vsel %vm2136_vm6, %v2863_v36, 0.0  ;;  %vm2759_vm3 = vcmp.eq.s32.totalorder %v5086_v5, %v2671_v31 }
 0x3e9   :  { %v3943_v37 = vpop.f32.mrb[74].mxu1  ;;  %2144 = vmax.xlane.f32.xlu1 %v2143_v34  ;;  %2909 = vadd.xlane.f32.xlu0 %v2908_v35 }
 0x3ea   :  { %v5129_v38 = vadd.f32 %v3943_v37, %v5092_v56  ;;  %v1967_v39 = vpop.f32.mrb[75].mxu1 }
 0x3eb   :  { %v5133_v41 = vadd.f32 %v5092_v56, %v1967_v39  ;;  %v3652_v39 = vsel %vm2758_vm0, 1.0, %v5877_v11 }
 0x3ec   :  { %v2152_v42 = vsel %vm2136_vm6, %v5129_v38, -inf  ;;  %v2866_v46 = vmul.f32 %v3646_v44, %v5129_v38  ;;  %v5207_v44 = vpop.permute.xlu1 %2679 }
 0x3ed   :  { %2153 = vmax.xlane.f32.xlu1 %v2152_v42  ;;  %2906 = vadd.xlane.f32.xlu0 %v2905_v43  ;;  %v2149_v45 = vsel %vm2136_vm6, %v5133_v41, -inf  ;;  %v2865_v54 = vmul.f32 %v3645_v51, %v5133_v41  ;;  %vm2762_vm5 = vcmp.eq.s32.totalorder %v5086_v5, %v5207_v44 }
 0x3ee   :  { %v2914_v53 = vsel %vm2136_vm6, %v2866_v46, 0.0 }
 0x3ef   :  { %v2911_v55 = vsel %vm2136_vm6, %v2865_v54, 0.0 }
 0x3f1   :  { %v3946_v48 = vpop.f32.mrb[76].mxu1  ;;  %2150 = vmax.xlane.f32.xlu0 %v2149_v45  ;;  %v3651_v45 = vsel %vm2757_vm1, 1.0, %v5877_v11 }
 0x3f2   :  { %v5144_v49 = vadd.f32 %v3946_v48, %v5092_v56  ;;  %v1977_v50 = vpop.f32.mrb[77].mxu1 }
 0x3f3   :  { %v5154_v58 = vadd.f32 %v5092_v56, %v1977_v50 }
 0x3f4   :  { %v2158_v52 = vsel %vm2136_vm6, %v5144_v49, -inf  ;;  %v2868_v63 = vmul.f32 %v3648_v61, %v5144_v49 }
 0x3f5   :  { %2159 = vmax.xlane.f32.xlu1 %v2158_v52  ;;  %2915 = vadd.xlane.f32.xlu0 %v2914_v53  ;;  %v2155_v24 = vsel %vm2136_vm6, %v5154_v58, -inf  ;;  %v2867_v2 = vmul.f32 %v3647_v0, %v5154_v58  ;;  %v5215_v52 = vpop.permute.xlu1 %2688  ;;  %v2674_v53 = vpop.permute.xlu0 %2673 }
 0x3f6   :  { %v2920_v1 = vsel %vm2136_vm6, %v2868_v63, 0.0  ;;  %vm2760_vm2 = vcmp.eq.s32.totalorder %v5086_v5, %v2674_v53  ;;  %vm2765_vm10 = vcmp.eq.s32.totalorder %v5086_v5, %v5215_v52 }
 0x3f7   :  { %v2917_v14 = vsel %vm2136_vm6, %v2867_v2, 0.0 }
 0x3f9   :  { %v3949_v57 = vpop.f32.mrb[78].mxu1  ;;  %2912 = vadd.xlane.f32.xlu0 %v2911_v55  ;;  %v2677_v9 = vpop.permute.xlu0 %2676 }
 0x3fa   :  { %v5157_v59 = vadd.f32 %v3949_v57, %v5092_v56  ;;  %v1987_v60 = vpop.f32.mrb[79].mxu1  ;;  %v3654_v57 = vsel %vm2760_vm2, 1.0, %v5877_v11  ;;  %vm2761_vm4 = vcmp.eq.s32.totalorder %v5086_v5, %v2677_v9 }
 0x3fb   :  { %v5178_v17 = vadd.f32 %v5092_v56, %v1987_v60  ;;  %v3655_v20 = vsel %vm2761_vm4, 1.0, %v5877_v11 }
 0x3fc   :  { %v2164_v62 = vsel %vm2136_vm6, %v5157_v59, -inf  ;;  %v2870_v19 = vmul.f32 %v3650_v16, %v5157_v59 }
 0x3fd   :  { %2165 = vmax.xlane.f32.xlu1 %v2164_v62  ;;  %2156 = vmax.xlane.f32.xlu0 %v2155_v24  ;;  %v2161_v18 = vsel %vm2136_vm6, %v5178_v17, -inf  ;;  %v2869_v30 = vmul.f32 %v3649_v26, %v5178_v17  ;;  %v5229_v62 = vpop.permute.xlu1 %2694  ;;  %v5285_v53 = vpop.permute.xlu0 %2682 }
 0x3fe   :  { %v2926_v29 = vsel %vm2136_vm6, %v2870_v19, 0.0  ;;  %vm2763_vm7 = vcmp.eq.s32.totalorder %v5086_v5, %v5285_v53  ;;  %vm2767_vm12 = vcmp.eq.s32.totalorder %v5086_v5, %v5229_v62 }
 0x3ff   :  { %v2923_v33 = vsel %vm2136_vm6, %v2869_v30, 0.0 }
 0x401   :  { %v3952_v6 = vpop.f32.mrb[80].mxu1  ;;  %2921 = vadd.xlane.f32.xlu0 %v2920_v1  ;;  %v3653_v1 = vsel %vm2759_vm3, 1.0, %v5877_v11 }
 0x402   :  { %v5171_v7 = vadd.f32 %v3952_v6, %v5092_v56  ;;  %v1997_v8 = vpop.f32.mrb[81].mxu1 }
 0x403   :  { %v5195_v35 = vadd.f32 %v5092_v56, %v1997_v8  ;;  %v5239_v8 = vpop.permute.xlu1 %2700 }
 0x404   :  { %v2170_v12 = vsel %vm2136_vm6, %v5171_v7, -inf  ;;  %v2872_v43 = vmul.f32 %v3652_v39, %v5171_v7  ;;  %vm2769_vm14 = vcmp.eq.s32.totalorder %v5086_v5, %v5239_v8 }
 0x405   :  { %2171 = vmax.xlane.f32.xlu1 %v2170_v12  ;;  %2918 = vadd.xlane.f32.xlu0 %v2917_v14  ;;  %v2167_v42 = vsel %vm2136_vm6, %v5195_v35, -inf  ;;  %v2871_v47 = vmul.f32 %v3651_v45, %v5195_v35 }
 0x406   :  { %v2932_v46 = vsel %vm2136_vm6, %v2872_v43, 0.0 }
 0x407   :  { %v2929_v10 = vsel %vm2136_vm6, %v2871_v47, 0.0 }
 0x409   :  { %v3955_v21 = vpop.f32.mrb[82].mxu1  ;;  %2162 = vmax.xlane.f32.xlu0 %v2161_v18 }
 0x40a   :  { %v5185_v22 = vadd.f32 %v3955_v21, %v5092_v56  ;;  %v2007_v23 = vpop.f32.mrb[83].mxu1 }
 0x40b   :  { %v5222_v55 = vadd.f32 %v5092_v56, %v2007_v23 }
 0x40c   :  { %v2176_v27 = vsel %vm2136_vm6, %v5185_v22, -inf  ;;  %v2874_v61 = vmul.f32 %v3654_v57, %v5185_v22 }
 0x40d   :  { %2177 = vmax.xlane.f32.xlu1 %v2176_v27  ;;  %2927 = vadd.xlane.f32.xlu0 %v2926_v29  ;;  %v2173_v60 = vsel %vm2136_vm6, %v5222_v55, -inf  ;;  %v2873_v6 = vmul.f32 %v3653_v1, %v5222_v55  ;;  %v5255_v27 = vpop.permute.xlu1 %2703 }
 0x40e   :  { %v2938_v3 = vsel %vm2136_vm6, %v2874_v61, 0.0  ;;  %vm2770_vm15 = vcmp.eq.s32.totalorder %v5086_v5, %v5255_v27 }
 0x40f   :  { %v2935_v14 = vsel %vm2136_vm6, %v2873_v6, 0.0 }
 0x411   :  { %v3958_v34 = vpop.f32.mrb[84].mxu1  ;;  %2924 = vadd.xlane.f32.xlu0 %v2923_v33 }
 0x412   :  { %v5198_v36 = vadd.f32 %v3958_v34, %v5092_v56  ;;  %v2017_v37 = vpop.f32.mrb[85].mxu1  ;;  %v5264_v34 = vpop.permute.xlu1 %2706 }
 0x413   :  { %v5243_v12 = vadd.f32 %v5092_v56, %v2017_v37  ;;  %vm2771_vm0 = vcmp.eq.s32.totalorder %v5086_v5, %v5264_v34 }
 0x414   :  { %v2182_v40 = vsel %vm2136_vm6, %v5198_v36, -inf }
 0x415   :  { %2183 = vmax.xlane.f32.xlu1 %v2182_v40  ;;  %2168 = vmax.xlane.f32.xlu0 %v2167_v42  ;;  %v2179_v23 = vsel %vm2136_vm6, %v5243_v12, -inf  ;;  %v2875_v26 = vmul.f32 %v3655_v20, %v5243_v12 }
 0x416   :  { %v5278_v45 = vpop.permute.xlu1 %2709 }
 0x417   :  { %v2941_v29 = vsel %vm2136_vm6, %v2875_v26, 0.0  ;;  %vm2772_vm1 = vcmp.eq.s32.totalorder %v5086_v5, %v5278_v45 }
 0x419   :  { %v3961_v48 = vpop.f32.mrb[86].mxu1  ;;  %2933 = vadd.xlane.f32.xlu0 %v2932_v46 }
 0x41a   :  { %v5213_v50 = vadd.f32 %v3961_v48, %v5092_v56  ;;  %v2027_v51 = vpop.f32.mrb[87].mxu1 }
 0x41b   :  { %v5259_v31 = vadd.f32 %v5092_v56, %v2027_v51 }
 0x41c   :  { %v2188_v54 = vsel %vm2136_vm6, %v5213_v50, -inf }
 0x41d   :  { %2189 = vmax.xlane.f32.xlu1 %v2188_v54  ;;  %2930 = vadd.xlane.f32.xlu0 %v2929_v10  ;;  %v2185_v39 = vsel %vm2136_vm6, %v5259_v31, -inf }
 0x421   :  { %v3964_v24 = vpop.f32.mrb[88].mxu1  ;;  %2174 = vmax.xlane.f32.xlu0 %v2173_v60  ;;  %v5294_v60 = vpop.permute.xlu1 %2712 }
 0x422   :  { %v5232_v63 = vadd.f32 %v3964_v24, %v5092_v56  ;;  %v2037_v0 = vpop.f32.mrb[89].mxu1  ;;  %vm2773_vm2 = vcmp.eq.s32.totalorder %v5086_v5, %v5294_v60 }
 0x423   :  { %v5271_v40 = vadd.f32 %v5092_v56, %v2037_v0  ;;  %v5299_v0 = vpop.permute.xlu0 %2685 }
 0x424   :  { %v2194_v2 = vsel %vm2136_vm6, %v5232_v63, -inf  ;;  %vm2764_vm9 = vcmp.eq.s32.totalorder %v5086_v5, %v5299_v0 }
 0x425   :  { %2195 = vmax.xlane.f32.xlu1 %v2194_v2  ;;  %2939 = vadd.xlane.f32.xlu0 %v2938_v3  ;;  %v2191_v43 = vsel %vm2136_vm6, %v5271_v40, -inf }
 0x429   :  { %v3967_v16 = vpop.f32.mrb[90].mxu1  ;;  %2936 = vadd.xlane.f32.xlu0 %v2935_v14  ;;  %v5311_v14 = vpop.permute.xlu1 %2718 }
 0x42a   :  { %v5247_v18 = vadd.f32 %v3967_v16, %v5092_v56  ;;  %v2047_v19 = vpop.f32.mrb[91].mxu1  ;;  %vm2775_vm4 = vcmp.eq.s32.totalorder %v5086_v5, %v5311_v14 }
 0x42b   :  { %v5274_v42 = vadd.f32 %v5092_v56, %v2047_v19  ;;  %v5315_v19 = vpop.permute.xlu0 %2691 }
 0x42c   :  { %v2200_v21 = vsel %vm2136_vm6, %v5247_v18, -inf  ;;  %vm2766_vm11 = vcmp.eq.s32.totalorder %v5086_v5, %v5315_v19 }
 0x42d   :  { %2201 = vmax.xlane.f32.xlu1 %v2200_v21  ;;  %2180 = vmax.xlane.f32.xlu0 %v2179_v23  ;;  %v2197_v51 = vsel %vm2136_vm6, %v5274_v42, -inf  ;;  %v5320_v26 = vpop.permute.xlu1 %2724 }
 0x431   :  { %v3970_v30 = vpop.f32.mrb[92].mxu1  ;;  %2942 = vadd.xlane.f32.xlu0 %v2941_v29 }
 0x432   :  { %v5262_v32 = vadd.f32 %v3970_v30, %v5092_v56  ;;  %v2057_v33 = vpop.f32.mrb[93].mxu1 }
 0x433   :  { %v5288_v54 = vadd.f32 %v5092_v56, %v2057_v33 }
 0x434   :  { %v2206_v37 = vsel %vm2136_vm6, %v5262_v32, -inf }
 0x435   :  { %2207 = vmax.xlane.f32.xlu1 %v2206_v37  ;;  %2186 = vmax.xlane.f32.xlu0 %v2185_v39  ;;  %v2203_v57 = vsel %vm2136_vm6, %v5288_v54, -inf  ;;  %v5329_v37 = vpop.permute.xlu0 %2697  ;;  %v5331_v39 = vpop.permute.xlu1 %2727 }
 0x436   :  { %5896 = vst [vmem:[#allocation8_spill] sm:$0xff] %v5331_v39  ;;  %vm2768_vm13 = vcmp.eq.s32.totalorder %v5086_v5, %v5329_v37 }
 0x439   :  { %v3973_v46 = vpop.f32.mrb[94].mxu1  ;;  %2192 = vmax.xlane.f32.xlu0 %v2191_v43 }
 0x43a   :  { %v5281_v47 = vadd.f32 %v3973_v46, %v5092_v56  ;;  %v2067_v48 = vpop.f32.mrb[95].mxu1 }
 0x43b   :  { %v5297_v61 = vadd.f32 %v5092_v56, %v2067_v48 }
 0x43c   :  { %v2212_v10 = vsel %vm2136_vm6, %v5281_v47, -inf }
 0x43d   :  { %2213 = vmax.xlane.f32.xlu1 %v2212_v10  ;;  %2198 = vmax.xlane.f32.xlu0 %v2197_v51  ;;  %v2209_v3 = vsel %vm2136_vm6, %v5297_v61, -inf  ;;  %v5339_v10 = vpop.permute.xlu0 %2715 }
 0x43e   :  { %vm2774_vm3 = vcmp.eq.s32.totalorder %v5086_v5, %v5339_v10 }
 0x441   :  { %v3976_v24 = vpop.f32.mrb[96].mxu1  ;;  %2204 = vmax.xlane.f32.xlu0 %v2203_v57 }
 0x442   :  { %v5302_v1 = vadd.f32 %v3976_v24, %v5092_v56  ;;  %v2077_v2 = vpop.f32.mrb[97].mxu1 }
 0x443   :  { %v5307_v6 = vadd.f32 %v5092_v56, %v2077_v2  ;;  %v5345_v2 = vpop.permute.xlu1 %2733 }
 0x444   :  { %v2218_v9 = vsel %vm2136_vm6, %v5302_v1, -inf  ;;  %5897 = vst [vmem:[#allocation9_spill] sm:$0xff] %v5345_v2 }
 0x445   :  { %2219 = vmax.xlane.f32.xlu1 %v2218_v9  ;;  %2210 = vmax.xlane.f32.xlu0 %v2209_v3  ;;  %v2215_v16 = vsel %vm2136_vm6, %v5307_v6, -inf  ;;  %v5347_v9 = vpop.permute.xlu0 %2721 }
 0x446   :  { %vm2776_vm8 = vcmp.eq.s32.totalorder %v5086_v5, %v5347_v9 }
 0x449   :  { %v3979_v20 = vpop.f32.mrb[98].mxu1  ;;  %2216 = vmax.xlane.f32.xlu0 %v2215_v16 }
 0x44a   :  { %v5318_v21 = vadd.f32 %v3979_v20, %v5092_v56  ;;  %v2087_v23 = vpop.f32.mrb[99].mxu1 }
 0x44b   :  { %v5323_v29 = vadd.f32 %v5092_v56, %v2087_v23 }
 0x44c   :  { %v2224_v30 = vsel %vm2136_vm6, %v5318_v21, -inf }
 0x44d   :  { %2225 = vmax.xlane.f32.xlu1 %v2224_v30  ;;  %v2221_v33 = vsel %vm2136_vm6, %v5323_v29, -inf }
 0x44e   :  { %2222 = vmax.xlane.f32.xlu0 %v2221_v33  ;;  %v5357_v33 = vpop.permute.xlu1 %2736 }
 0x44f   :  { %5898 = vst [vmem:[#allocation10_spill] sm:$0xff] %v5357_v33  ;;  %v5905_v33 = vmov 0.0  }
 0x450   :  { %v3659_v0 = vsel %vm2765_vm10, 1.0, %v5905_v33 }
 0x451   :  { %v3982_v43 = vpop.f32.mrb[100].mxu1  ;;  %v2879_v52 = vmul.f32 %v3659_v0, %v5271_v40 }
 0x452   :  { %v5334_v46 = vadd.f32 %v3982_v43, %v5092_v56  ;;  %v2097_v48 = vpop.f32.mrb[101].mxu1  ;;  %v5366_v4 = vpop.permute.xlu1 %2742 }
 0x453   :  { %v5337_v51 = vadd.f32 %v5092_v56, %v2097_v48  ;;  %v5361_v48 = vpop.permute.xlu0 %2730  ;;  %5900 = vst [vmem:[#allocation12_spill] sm:$0xff] %v5366_v4 }
 0x454   :  { %v2230_v57 = vsel %vm2136_vm6, %v5334_v46, -inf  ;;  %5899 = vst [vmem:[#allocation11_spill] sm:$0xff] %v5361_v48 }
 0x455   :  { %2231 = vmax.xlane.f32.xlu0 %v2230_v57  ;;  %v2227_v24 = vsel %vm2136_vm6, %v5337_v51, -inf }
 0x456   :  { %2228 = vmax.xlane.f32.xlu1 %v2227_v24 }
 0x459   :  { %v3985_v3 = vpop.f32.mrb[102].mxu1 }
 0x45a   :  { %v5350_v16 = vadd.f32 %v3985_v3, %v5092_v56  ;;  %v2107_v20 = vpop.f32.mrb[103].mxu1 }
 0x45b   :  { %v5353_v23 = vadd.f32 %v5092_v56, %v2107_v20 }
 0x45c   :  { %v2236_v30 = vsel %vm2136_vm6, %v5350_v16, -inf }
 0x45d   :  { %2237 = vmax.xlane.f32.xlu1 %v2236_v30  ;;  %v2233_v43 = vsel %vm2136_vm6, %v5353_v23, -inf  ;;  %v5373_v30 = vpop.permute.xlu0 %2739 }
 0x45e   :  { %2234 = vmax.xlane.f32.xlu0 %v2233_v43  ;;  %5902 = vst [vmem:[#allocation14_spill] sm:$0xff] %v5373_v30 }
 0x461   :  { %v3988_v57 = vpop.f32.mrb[104].mxu1 }
 0x462   :  { %v5364_v24 = vadd.f32 %v3988_v57, %v5092_v56  ;;  %v2117_v3 = vpop.f32.mrb[105].mxu1  ;;  %v5379_v57 = vpop.permute.xlu1 %2745 }
 0x463   :  { %v5369_v20 = vadd.f32 %v5092_v56, %v2117_v3  ;;  %5903 = vst [vmem:[#allocation15_spill] sm:$0xff] %v5379_v57 }
 0x464   :  { %v2242_v11 = vsel %vm2136_vm6, %v5364_v24, -inf }
 0x465   :  { %5901 = vst [vmem:[#allocation13_spill] sm:$0xff] %v5369_v20  ;;  %2243 = vmax.xlane.f32.xlu0 %v2242_v11  ;;  %v2239_v43 = vsel %vm2136_vm6, %v5369_v20, -inf  ;;  %v3656_v11 = vsel %vm2762_vm5, 1.0, %v5905_v33  ;;  %vm2777_vm5 = vcmp.eq.s32.totalorder %v5086_v5, %v5320_v26 }
 0x469   :  { %v3991_v2 = vpop.f32.mrb[106].mxu1  ;;  %2240 = vmax.xlane.f32.xlu0 %v2239_v43 }
 0x46a   :  { %v5382_v39 = vadd.f32 %v3991_v2, %v5092_v56  ;;  %v5384_v3 = vpop.xlane.xlu0 %2141  ;;  %v2127_v4 = vpop.f32.mrb[107].mxu1  ;;  %v2876_v2 = vmul.f32 %v3656_v11, %v5198_v36 }
 0x46b   :  { %5904 = vst [vmem:[#allocation16_spill] sm:$0xff] %v5384_v3  ;;  %v2252_v30 = vsub.f32 %v5097_v13, %v5384_v3  ;;  %v5390_v48 = vadd.f32 %v5092_v56, %v2127_v4  ;;  %v3657_v4 = vsel %vm2763_vm7, 1.0, %v5905_v33 }
 0x46c   :  { %v2248_v44 = vsel %vm2136_vm6, %v5382_v39, -inf  ;;  %v2944_v53 = vsel %vm2136_vm6, %v2876_v2, 0.0  ;;  %v2877_v11 = vmul.f32 %v3657_v4, %v5259_v31 }
 0x46d   :  { %5906 = vst [vmem:[#allocation17_spill] sm:$0xff] %v5390_v48  ;;  %v2291_v43 = vmul.f32 1.442695, %v2252_v30  ;;  %v5397_v57 = vpop.xlane.xlu1 %2900  ;;  %2249 = vmax.xlane.f32.xlu0 %v2248_v44  ;;  %v2245_v20 = vsel %vm2136_vm6, %v5390_v48, -inf }
 0x46e   :  { %5907 = vst [vmem:[#allocation18_spill] sm:$0xff] %v5397_v57  ;;  %2246 = vmax.xlane.f32.xlu1 %v2245_v20  ;;  %v5401_v13 = vpop.xlane.xlu0 %2138  ;;  %v2947_v3 = vsel %vm2136_vm6, %v2877_v11, 0.0 }
 0x46f   :  { %4288 = vpow2.f32 %v2291_v43  ;;  %v2251_v56 = vsub.f32 %v5100_v15, %v5401_v13 }
 0x471   :  { %v2289_v30 = vmul.f32 1.442695, %v2251_v56  ;;  %2945 = vadd.xlane.f32.xlu0 %v2944_v53 }
 0x472   :  { %v5408_v57 = vpop.xlane.xlu1 %2147  ;;  %v5410_v44 = vpop.xlane.xlu0 %2903 }
 0x473   :  { %5908 = vst [vmem:[#allocation19_spill] sm:$0xff] %v5408_v57  ;;  %4290 = vpow2.f32 %v2289_v30  ;;  %v2254_v20 = vsub.f32 %v5112_v25, %v5408_v57 }
 0x475   :  { %v2295_v43 = vmul.f32 1.442695, %v2254_v20  ;;  %2948 = vadd.xlane.f32.xlu0 %v2947_v3 }
 0x476   :  { %v5415_v48 = vpop.xlane.xlu1 %2144  ;;  %v5417_v15 = vpop.xlane.xlu0 %2909 }
 0x477   :  { %5909 = vst [vmem:[#allocation20_spill] sm:$0xff] %v5417_v15  ;;  %4292 = vpow2.f32 %v2295_v43  ;;  %v2253_v2 = vsub.f32 %v5117_v28, %v5415_v48 }
 0x479   :  { %v4289_v4 = vpop.eup %4288  ;;  %v2293_v56 = vmul.f32 1.442695, %v2253_v2 }
 0x47a   :  { %v5421_v53 = vpop.xlane.xlu1 %2153  ;;  %v5423_v30 = vpop.xlane.xlu0 %2906  ;;  %v2368_v25 = vsel %vm2136_vm6, %v4289_v4, 0.0 }
 0x47b   :  { %5910 = vst [vmem:[#allocation21_spill] sm:$0xff] %v5423_v30  ;;  %4294 = vpow2.f32 %v2293_v56  ;;  %v2256_v3 = vsub.f32 %v5129_v38, %v5421_v53  ;;  %2369 = vadd.xlane.f32.xlu1 %v2368_v25 }
 0x47d   :  { %v4291_v11 = vpop.eup %4290  ;;  %v2299_v20 = vmul.f32 1.442695, %v2256_v3 }
 0x47e   :  { %v5428_v15 = vpop.xlane.xlu0 %2150  ;;  %v2365_v43 = vsel %vm2136_vm6, %v4291_v11, 0.0 }
 0x47f   :  { %4296 = vpow2.f32 %v2299_v20  ;;  %v2255_v28 = vsub.f32 %v5133_v41, %v5428_v15  ;;  %2366 = vadd.xlane.f32.xlu0 %v2365_v43 }
 0x481   :  { %v4293_v2 = vpop.eup %4292  ;;  %v2297_v57 = vmul.f32 1.442695, %v2255_v28 }
 0x482   :  { %v5433_v30 = vpop.xlane.xlu1 %2159  ;;  %v5435_v4 = vpop.xlane.xlu0 %2915  ;;  %v2374_v38 = vsel %vm2136_vm6, %v4293_v2, 0.0 }
 0x483   :  { %5911 = vst [vmem:[#allocation22_spill] sm:$0xff] %v5433_v30  ;;  %4298 = vpow2.f32 %v2297_v57  ;;  %v2258_v56 = vsub.f32 %v5144_v49, %v5433_v30  ;;  %2375 = vadd.xlane.f32.xlu0 %v2374_v38  ;;  %v3670_v30 = vsel %vm2776_vm8, 1.0, %v5905_v33 }
 0x485   :  { %v4295_v25 = vpop.eup %4294  ;;  %v2303_v3 = vmul.f32 1.442695, %v2258_v56 }
 0x486   :  { %v5440_v11 = vpop.xlane.xlu0 %2912  ;;  %v2371_v41 = vsel %vm2136_vm6, %v4295_v25, 0.0 }
 0x487   :  { %4300 = vpow2.f32 %v2303_v3  ;;  %2372 = vadd.xlane.f32.xlu1 %v2371_v41 }
 0x489   :  { %v4297_v20 = vpop.eup %4296 }
 0x48a   :  { %v5443_v43 = vpop.xlane.xlu1 %2165  ;;  %v5445_v28 = vpop.xlane.xlu0 %2156  ;;  %v2380_v2 = vsel %vm2136_vm6, %v4297_v20, 0.0 }
 0x48b   :  { %5912 = vst [vmem:[#allocation23_spill] sm:$0xff] %v5443_v43  ;;  %v2260_v57 = vsub.f32 %v5157_v59, %v5443_v43  ;;  %v2257_v49 = vsub.f32 %v5154_v58, %v5445_v28  ;;  %2381 = vadd.xlane.f32.xlu1 %v2380_v2 }
 0x48d   :  { %v4299_v38 = vpop.eup %4298  ;;  %v2301_v56 = vmul.f32 1.442695, %v2257_v49  ;;  %v2307_v25 = vmul.f32 1.442695, %v2260_v57  ;;  %v2890_v49 = vmul.f32 %v3670_v30, %v5318_v21 }
 0x48e   :  { %v5454_v3 = vpop.xlane.xlu0 %2921  ;;  %v2377_v41 = vsel %vm2136_vm6, %v4299_v38, 0.0 }
 0x48f   :  { %5913 = vst [vmem:[#allocation24_spill] sm:$0xff] %v5454_v3  ;;  %2378 = vadd.xlane.f32.xlu1 %v2377_v41  ;;  %4302 = vpow2.f32 %v2301_v56  ;;  %v2986_v38 = vsel %vm2136_vm6, %v2890_v49, 0.0 }
 0x490   :  { %4304 = vpow2.f32 %v2307_v25 }
 0x491   :  { %v4301_v20 = vpop.eup %4300 }
 0x492   :  { %v5458_v59 = vpop.xlane.xlu1 %2171  ;;  %v5460_v58 = vpop.xlane.xlu0 %2918  ;;  %v2386_v2 = vsel %vm2136_vm6, %v4301_v20, 0.0 }
 0x493   :  { %5914 = vst [vmem:[#allocation25_spill] sm:$0xff] %v5458_v59  ;;  %2387 = vadd.xlane.f32.xlu1 %v2386_v2  ;;  %v2262_v9 = vsub.f32 %v5171_v7, %v5458_v59 }
 0x495   :  { %v2311_v25 = vmul.f32 1.442695, %v2262_v9 }
 0x496   :  { %v5466_v57 = vpop.xlane.xlu0 %2162 }
 0x497   :  { %v2259_v56 = vsub.f32 %v5178_v17, %v5466_v57  ;;  %2987 = vadd.xlane.f32.xlu1 %v2986_v38 }
 0x499   :  { %v2305_v41 = vmul.f32 1.442695, %v2259_v56  ;;  %v4303_v43 = vpop.eup %4302 }
 0x49a   :  { %v5471_v3 = vpop.xlane.xlu1 %2177  ;;  %v5473_v20 = vpop.xlane.xlu0 %2927  ;;  %v2383_v7 = vsel %vm2136_vm6, %v4303_v43, 0.0 }
 0x49b   :  { %5915 = vst [vmem:[#allocation26_spill] sm:$0xff] %v5471_v3  ;;  %4306 = vpow2.f32 %v2305_v41  ;;  %v2264_v30 = vsub.f32 %v5185_v22, %v5471_v3  ;;  %v4305_v2 = vpop.eup %4304  ;;  %2384 = vadd.xlane.f32.xlu0 %v2383_v7 }
 0x49c   :  { %4308 = vpow2.f32 %v2311_v25  ;;  %v2392_v17 = vsel %vm2136_vm6, %v4305_v2, 0.0 }
 0x49d   :  { %v2315_v49 = vmul.f32 1.442695, %v2264_v30 }
 0x49e   :  { %v5478_v59 = vpop.xlane.xlu0 %2924 }
 0x49f   :  { %4310 = vpow2.f32 %v2315_v49  ;;  %2393 = vadd.xlane.f32.xlu0 %v2392_v17 }
 0x4a2   :  { %v5481_v9 = vpop.xlane.xlu0 %2168  ;;  %v5488_v30 = vpop.xlane.xlu1 %2183 }
 0x4a3   :  { %v2261_v38 = vsub.f32 %v5195_v35, %v5481_v9  ;;  %v2266_v35 = vsub.f32 %v5198_v36, %v5488_v30 }
 0x4a5   :  { %v4307_v56 = vpop.eup %4306  ;;  %v2309_v41 = vmul.f32 1.442695, %v2261_v38 }
 0x4a6   :  { %v5485_v22 = vpop.xlane.xlu0 %2933  ;;  %v2389_v43 = vsel %vm2136_vm6, %v4307_v56, 0.0  ;;  %v4309_v7 = vpop.eup %4308 }
 0x4a7   :  { %5916 = vst [vmem:[#allocation27_spill] sm:$0xff] %v5485_v22  ;;  %2390 = vadd.xlane.f32.xlu0 %v2389_v43  ;;  %4312 = vpow2.f32 %v2309_v41  ;;  %v2398_v17 = vsel %vm2136_vm6, %v4309_v7, 0.0  ;;  %v2319_v41 = vmul.f32 1.442695, %v2266_v35 }
 0x4a9   :  { %v4311_v25 = vpop.eup %4310 }
 0x4aa   :  { %v5490_v49 = vpop.xlane.xlu0 %2930  ;;  %v2404_v2 = vsel %vm2136_vm6, %v4311_v25, 0.0  ;;  %v3658_v25 = vsel %vm2764_vm9, 1.0, %v5905_v33 }
 0x4ab   :  { %2405 = vadd.xlane.f32.xlu1 %v2404_v2  ;;  %2399 = vadd.xlane.f32.xlu0 %v2398_v17  ;;  %v2878_v7 = vmul.f32 %v3658_v25, %v5213_v50  ;;  %v5514_v2 = vpop.xlane.xlu1 %2189 }
 0x4ac   :  { %5917 = vst [vmem:[#allocation28_spill] sm:$0xff] %v5514_v2  ;;  %v2268_v35 = vsub.f32 %v5213_v50, %v5514_v2 }
 0x4ad   :  { %v2950_v17 = vsel %vm2136_vm6, %v2878_v7, 0.0  ;;  %v3661_v7 = vsel %vm2767_vm12, 1.0, %v5905_v33 }
 0x4ae   :  { %v5496_v38 = vpop.xlane.xlu0 %2174  ;;  %v2323_v0 = vmul.f32 1.442695, %v2268_v35 }
 0x4af   :  { %v2263_v56 = vsub.f32 %v5222_v55, %v5496_v38 }
 0x4b1   :  { %v2313_v43 = vmul.f32 1.442695, %v2263_v56  ;;  %v4313_v3 = vpop.eup %4312 }
 0x4b2   :  { %v5503_v22 = vpop.xlane.xlu0 %2939  ;;  %v2395_v36 = vsel %vm2136_vm6, %v4313_v3, 0.0  ;;  %v3660_v3 = vsel %vm2766_vm11, 1.0, %v5905_v33  ;;  %v5535_v62 = vpop.xlane.xlu1 %2195 }
 0x4b3   :  { %4314 = vpow2.f32 %v2313_v43  ;;  %2396 = vadd.xlane.f32.xlu0 %v2395_v36  ;;  %v2880_v43 = vmul.f32 %v3660_v3, %v5232_v63  ;;  %v3662_v3 = vsel %vm2768_vm13, 1.0, %v5905_v33  ;;  %v2270_v35 = vsub.f32 %v5232_v63, %v5535_v62 }
 0x4b4   :  { %4316 = vpow2.f32 %v2319_v41  ;;  %v2953_v41 = vsel %vm2136_vm6, %v2879_v52, 0.0  ;;  %v2881_v52 = vmul.f32 %v3661_v7, %v5274_v42  ;;  %v3663_v7 = vsel %vm2769_vm14, 1.0, %v5905_v33 }
 0x4b5   :  { %v2327_v63 = vmul.f32 1.442695, %v2270_v35 }
 0x4b6   :  { %v5510_v55 = vpop.xlane.xlu0 %2936 }
 0x4b7   :  { %2951 = vadd.xlane.f32.xlu0 %v2950_v17 }
 0x4ba   :  { %v5521_v56 = vpop.xlane.xlu0 %2180 }
 0x4bb   :  { %v2265_v19 = vsub.f32 %v5243_v12, %v5521_v56  ;;  %2954 = vadd.xlane.f32.xlu0 %v2953_v41  ;;  %v2956_v12 = vsel %vm2136_vm6, %v2880_v43, 0.0  ;;  %v2959_v43 = vsel %vm2136_vm6, %v2881_v52, 0.0  ;;  %v3664_v52 = vsel %vm2770_vm15, 1.0, %v5905_v33 }
 0x4bc   :  { %vm3464_vm15 = vcmask 0  }
 0x4bd   :  { %v4315_v25 = vpop.eup %4314  ;;  %v2317_v36 = vmul.f32 1.442695, %v2265_v19 }
 0x4be   :  { %v5530_v17 = vpop.xlane.xlu0 %2942  ;;  %v2401_v50 = vsel %vm2136_vm6, %v4315_v25, 0.0  ;;  %v4317_v2 = vpop.eup %4316  ;;  %v2882_v25 = vmul.f32 %v3662_v3, %v5247_v18 }
 0x4bf   :  { %2402 = vadd.xlane.f32.xlu1 %v2401_v50  ;;  %4318 = vpow2.f32 %v2317_v36  ;;  %2957 = vadd.xlane.f32.xlu0 %v2956_v12  ;;  %v2410_v41 = vsel %vm2136_vm6, %v4317_v2, 0.0  ;;  %v5556_v2 = vpop.xlane.xlu1 %2201  ;;  %v2883_v50 = vmul.f32 %v3663_v7, %v5288_v54 }
 0x4c0   :  { %4320 = vpow2.f32 %v2323_v0  ;;  %v2272_v3 = vsub.f32 %v5247_v18, %v5556_v2 }
 0x4c2   :  { %v5542_v19 = vpop.xlane.xlu0 %2186 }
 0x4c3   :  { %v2267_v37 = vsub.f32 %v5259_v31, %v5542_v19  ;;  %2411 = vadd.xlane.f32.xlu1 %v2410_v41  ;;  %2960 = vadd.xlane.f32.xlu0 %v2959_v43  ;;  %v2962_v31 = vsel %vm2136_vm6, %v2882_v25, 0.0  ;;  %v3665_v25 = vsel %vm2771_vm0, 1.0, %v5905_v33  ;;  %v5577_v34 = vpop.xlane.xlu1 %2207 }
 0x4c5   :  { %v2321_v36 = vmul.f32 1.442695, %v2267_v37  ;;  %v2884_v37 = vmul.f32 %v3664_v52, %v5262_v32 }
 0x4c6   :  { %v5552_v0 = vpop.xlane.xlu0 %2192 }
 0x4c7   :  { %v2269_v8 = vsub.f32 %v5271_v40, %v5552_v0  ;;  %4322 = vpow2.f32 %v2321_v36  ;;  %2963 = vadd.xlane.f32.xlu0 %v2962_v31  ;;  %v2965_v40 = vsel %vm2136_vm6, %v2883_v50, 0.0  ;;  %v2331_v36 = vmul.f32 1.442695, %v2272_v3 }
 0x4c8   :  { %4324 = vpow2.f32 %v2327_v63  ;;  %v2968_v7 = vsel %vm2136_vm6, %v2884_v37, 0.0  ;;  %v3666_v50 = vsel %vm2772_vm1, 1.0, %v5905_v33 }
 0x4c9   :  { %v4319_v12 = vpop.eup %4318  ;;  %v2325_v35 = vmul.f32 1.442695, %v2269_v8  ;;  %v2885_v8 = vmul.f32 %v3665_v25, %v5297_v61 }
 0x4ca   :  { %v5567_v27 = vpop.xlane.xlu0 %2198  ;;  %v2407_v41 = vsel %vm2136_vm6, %v4319_v12, 0.0  ;;  %v4321_v43 = vpop.eup %4320 }
 0x4cb   :  { %2966 = vadd.xlane.f32.xlu0 %v2965_v40  ;;  %2408 = vadd.xlane.f32.xlu1 %v2407_v41  ;;  %4326 = vpow2.f32 %v2325_v35  ;;  %v2271_v18 = vsub.f32 %v5274_v42, %v5567_v27  ;;  %v2416_v63 = vsel %vm2136_vm6, %v4321_v43, 0.0  ;;  %v2274_v42 = vsub.f32 %v5262_v32, %v5577_v34  ;;  %v5597_v60 = vpop.xlane.xlu1 %2213 }
 0x4cc   :  { %4328 = vpow2.f32 %v2331_v36  ;;  %v2971_v52 = vsel %vm2136_vm6, %v2885_v8, 0.0  ;;  %v2886_v35 = vmul.f32 %v3666_v50, %v5281_v47  ;;  %v3667_v41 = vsel %vm2773_vm2, 1.0, %v5905_v33 }
 0x4cd   :  { %v2329_v12 = vmul.f32 1.442695, %v2271_v18  ;;  %v2335_v37 = vmul.f32 1.442695, %v2274_v42  ;;  %v2887_v36 = vmul.f32 %v3667_v41, %v5307_v6 }
 0x4ce   :  { %v5587_v45 = vpop.xlane.xlu0 %2204  ;;  %v2974_v43 = vsel %vm2136_vm6, %v2886_v35, 0.0 }
 0x4cf   :  { %2969 = vadd.xlane.f32.xlu0 %v2968_v7  ;;  %2417 = vadd.xlane.f32.xlu1 %v2416_v63  ;;  %4330 = vpow2.f32 %v2329_v12  ;;  %v2273_v32 = vsub.f32 %v5288_v54, %v5587_v45  ;;  %v3668_v7 = vsel %vm2774_vm3, 1.0, %v5905_v33  ;;  %v2276_v54 = vsub.f32 %v5281_v47, %v5597_v60 }
 0x4d0   :  { %4332 = vpow2.f32 %v2335_v37  ;;  %v2977_v10 = vsel %vm2136_vm6, %v2887_v36, 0.0  ;;  %v2888_v50 = vmul.f32 %v3668_v7, %v5302_v1  ;;  %v3669_v12 = vsel %vm2775_vm4, 1.0, %v5905_v33 }
 0x4d1   :  { %v4323_v31 = vpop.eup %4322  ;;  %v2333_v63 = vmul.f32 1.442695, %v2273_v32 }
 0x4d2   :  { %v2413_v3 = vsel %vm2136_vm6, %v4323_v31, 0.0  ;;  %v4325_v40 = vpop.eup %4324  ;;  %v5605_v8 = vpop.xlane.xlu0 %2210  ;;  %v2980_v14 = vsel %vm2136_vm6, %v2888_v50, 0.0 }
 0x4d3   :  { %2972 = vadd.xlane.f32.xlu0 %v2971_v52  ;;  %2414 = vadd.xlane.f32.xlu1 %v2413_v3  ;;  %v2422_v25 = vsel %vm2136_vm6, %v4325_v40, 0.0  ;;  %v2339_v52 = vmul.f32 1.442695, %v2276_v54  ;;  %4334 = vpow2.f32 %v2333_v63  ;;  %v2275_v47 = vsub.f32 %v5297_v61, %v5605_v8  ;;  %v5615_v3 = vpop.xlane.xlu1 %2219 }
 0x4d4   :  { %v2889_v40 = vmul.f32 %v3669_v12, %v5323_v29  ;;  %v2278_v32 = vsub.f32 %v5302_v1, %v5615_v3 }
 0x4d5   :  { %v4327_v18 = vpop.eup %4326  ;;  %4336 = vpow2.f32 %v2339_v52 }
 0x4d6   :  { %v2419_v31 = vsel %vm2136_vm6, %v4327_v18, 0.0  ;;  %v4329_v42 = vpop.eup %4328  ;;  %v5620_v37 = vpop.xlane.xlu0 %2216  ;;  %v2983_v61 = vsel %vm2136_vm6, %v2889_v40, 0.0  ;;  %v2343_v18 = vmul.f32 1.442695, %v2278_v32 }
 0x4d7   :  { %2975 = vadd.xlane.f32.xlu0 %v2974_v43  ;;  %2423 = vadd.xlane.f32.xlu1 %v2422_v25  ;;  %v2428_v35 = vsel %vm2136_vm6, %v4329_v42, 0.0  ;;  %v2337_v43 = vmul.f32 1.442695, %v2275_v47  ;;  %v2277_v7 = vsub.f32 %v5307_v6, %v5620_v37 }
 0x4d9   :  { %v4331_v41 = vpop.eup %4330  ;;  %4338 = vpow2.f32 %v2337_v43 }
 0x4da   :  { %v2425_v25 = vsel %vm2136_vm6, %v4331_v41, 0.0  ;;  %v4333_v36 = vpop.eup %4332  ;;  %v5630_v63 = vpop.xlane.xlu1 %2225  ;;  %4340 = vpow2.f32 %v2343_v18 }
 0x4db   :  { %2978 = vadd.xlane.f32.xlu0 %v2977_v10  ;;  %2420 = vadd.xlane.f32.xlu1 %v2419_v31  ;;  %v5628_v54 = vpop.xlane.xlu0 %2222  ;;  %v2434_v10 = vsel %vm2136_vm6, %v4333_v36, 0.0  ;;  %v2341_v31 = vmul.f32 1.442695, %v2277_v7  ;;  %v2280_v50 = vsub.f32 %v5318_v21, %v5630_v63 }
 0x4dc   :  { %v2279_v47 = vsub.f32 %v5323_v29, %v5628_v54 }
 0x4dd   :  { %v4335_v1 = vpop.eup %4334  ;;  %4342 = vpow2.f32 %v2341_v31  ;;  %v2347_v6 = vmul.f32 1.442695, %v2280_v50 }
 0x4de   :  { %v2431_v12 = vsel %vm2136_vm6, %v4335_v1, 0.0  ;;  %v2345_v41 = vmul.f32 1.442695, %v2279_v47 }
 0x4df   :  { %2981 = vadd.xlane.f32.xlu0 %v2980_v14  ;;  %2429 = vadd.xlane.f32.xlu1 %v2428_v35  ;;  %v4337_v52 = vpop.eup %4336  ;;  %4344 = vpow2.f32 %v2347_v6 }
 0x4e0   :  { %v2440_v35 = vsel %vm2136_vm6, %v4337_v52, 0.0  ;;  %4346 = vpow2.f32 %v2345_v41 }
 0x4e2   :  { %v5635_v42 = vpop.xlane.xlu0 %2231 }
 0x4e3   :  { %2984 = vadd.xlane.f32.xlu0 %v2983_v61  ;;  %2426 = vadd.xlane.f32.xlu1 %v2425_v25  ;;  %v4339_v40 = vpop.eup %4338  ;;  %v2282_v21 = vsub.f32 %v5334_v46, %v5635_v42  ;;  %v5647_v43 = vpop.xlane.xlu1 %2228 }
 0x4e4   :  { %v2437_v61 = vsel %vm2136_vm6, %v4339_v40, 0.0  ;;  %v4341_v25 = vpop.eup %4340  ;;  %v2281_v36 = vsub.f32 %v5337_v51, %v5647_v43 }
 0x4e5   :  { %v2351_v29 = vmul.f32 1.442695, %v2282_v21 }
 0x4e6   :  { %v2349_v31 = vmul.f32 1.442695, %v2281_v36 }
 0x4e7   :  { %2435 = vadd.xlane.f32.xlu1 %v2434_v10  ;;  %v2446_v10 = vsel %vm2136_vm6, %v4341_v25, 0.0  ;;  %v4343_v1 = vpop.eup %4342  ;;  %4348 = vpow2.f32 %v2351_v29 }
 0x4e8   :  { %v2443_v6 = vsel %vm2136_vm6, %v4343_v1, 0.0  ;;  %4350 = vpow2.f32 %v2349_v31  ;;  %v5922_v31 = vld [vmem:[#allocation13_spill] sm:$0xff] }
 0x4e9   :  { %v4345_v47 = vpop.eup %4344 }
 0x4ea   :  { %v5654_v7 = vpop.xlane.xlu1 %2237  ;;  %v2452_v21 = vsel %vm2136_vm6, %v4345_v47, 0.0 }
 0x4eb   :  { %2432 = vadd.xlane.f32.xlu1 %v2431_v12  ;;  %v5640_v14 = vpop.xlane.xlu0 %2234  ;;  %5920 = vst [vmem:[#allocation31_spill] sm:$0xff] %v5654_v7  ;;  %v2284_v50 = vsub.f32 %v5350_v16, %v5654_v7 }
 0x4ec   :  { %v2283_v41 = vsub.f32 %v5353_v23, %v5640_v14 }
 0x4ed   :  { %v2355_v40 = vmul.f32 1.442695, %v2284_v50 }
 0x4ee   :  { %v2353_v25 = vmul.f32 1.442695, %v2283_v41  ;;  %v5924_v41 = vld [vmem:[#allocation11_spill] sm:$0xff] }
 0x4ef   :  { %2441 = vadd.xlane.f32.xlu1 %v2440_v35  ;;  %vm2779_vm7 = vcmp.eq.s32.totalorder %v5086_v5, %v5924_v41 }
 0x4f2   :  { %v5645_v32 = vpop.xlane.xlu0 %2243 }
 0x4f3   :  { %5918 = vst [vmem:[#allocation29_spill] sm:$0xff] %v5645_v32  ;;  %2438 = vadd.xlane.f32.xlu1 %v2437_v61  ;;  %v4347_v61 = vpop.eup %4346  ;;  %v2286_v29 = vsub.f32 %v5364_v24, %v5645_v32 }
 0x4f4   :  { %v2449_v36 = vsel %vm2136_vm6, %v4347_v61, 0.0  ;;  %v5925_v61 = vld [vmem:[#allocation17_spill] sm:$0xff] }
 0x4f5   :  { %v2359_v1 = vmul.f32 1.442695, %v2286_v29 }
 0x4f6   :  { %v5652_v18 = vpop.xlane.xlu0 %2240 }
 0x4f7   :  { %5919 = vst [vmem:[#allocation30_spill] sm:$0xff] %v5652_v18  ;;  %2447 = vadd.xlane.f32.xlu1 %v2446_v10  ;;  %v4349_v10 = vpop.eup %4348  ;;  %v2285_v50 = vsub.f32 %v5922_v31, %v5652_v18 }
 0x4f8   :  { %v4351_v47 = vpop.eup %4350 }
 0x4f9   :  { %v2357_v26 = vmul.f32 1.442695, %v2285_v50 }
 0x4fa   :  { %v5659_v12 = vpop.xlane.xlu0 %2249 }
 0x4fb   :  { %5921 = vst [vmem:[#allocation32_spill] sm:$0xff] %v5659_v12  ;;  %v2288_v52 = vsub.f32 %v5382_v39, %v5659_v12  ;;  %2444 = vadd.xlane.f32.xlu1 %v2443_v6  ;;  %v2458_v6 = vsel %vm2136_vm6, %v4349_v10, 0.0  ;;  %v5926_v12 = vld [vmem:[#allocation10_spill] sm:$0xff] }
 0x4fc   :  { %vm2781_vm8 = vcmp.eq.s32.totalorder %v5086_v5, %v5926_v12 }
 0x4fd   :  { %v2363_v35 = vmul.f32 1.442695, %v2288_v52  ;;  %v5674_v52 = vpop.xlane.xlu1 %2246 }
 0x4fe   :  { %5923 = vst [vmem:[#allocation13_spill] sm:$0xff] %v5674_v52 }
 0x4ff   :  { %4352 = vpow2.f32 %v2363_v35  ;;  %2453 = vadd.xlane.f32.xlu1 %v2452_v21  ;;  %v3671_v35 = vsel %vm2777_vm5, 1.0, %v5905_v33 }
 0x500   :  { %4354 = vpow2.f32 %v2355_v40  ;;  %v2891_v21 = vmul.f32 %v3671_v35, %v5337_v51 }
 0x501   :  { %4356 = vpow2.f32 %v2353_v25  ;;  %v2287_v25 = vsub.f32 %v5925_v61, %v5674_v52 }
 0x502   :  { %4358 = vpow2.f32 %v2359_v1  ;;  %v2989_v51 = vsel %vm2136_vm6, %v2891_v21, 0.0 }
 0x503   :  { %2450 = vadd.xlane.f32.xlu1 %v2449_v36  ;;  %v2455_v36 = vsel %vm2136_vm6, %v4351_v47, 0.0  ;;  %4360 = vpow2.f32 %v2357_v26  ;;  %v2361_v41 = vmul.f32 1.442695, %v2287_v25  ;;  %v3675_v47 = vsel %vm2781_vm8, 1.0, %v5905_v33 }
 0x504   :  { %v2895_v26 = vmul.f32 %v3675_v47, %v5922_v31 }
 0x505   :  { %4362 = vpow2.f32 %v2361_v41 }
 0x507   :  { %2459 = vadd.xlane.f32.xlu1 %v2458_v6  ;;  %v3673_v6 = vsel %vm2779_vm7, 1.0, %v5905_v33 }
 0x508   :  { %v2893_v1 = vmul.f32 %v3673_v6, %v5353_v23 }
 0x509   :  { %v4353_v40 = vpop.eup %4352 }
 0x50a   :  { %v2476_v29 = vsel %vm2136_vm6, %v4353_v40, 0.0  ;;  %v4355_v10 = vpop.eup %4354  ;;  %v5927_v40 = vld [vmem:[#allocation12_spill] sm:$0xff]  ;;  %v2995_v12 = vsel %vm2136_vm6, %v2893_v1, 0.0 }
 0x50b   :  { %2477 = vadd.xlane.f32.xlu0 %v2476_v29  ;;  %2456 = vadd.xlane.f32.xlu1 %v2455_v36  ;;  %v2464_v50 = vsel %vm2136_vm6, %v4355_v10, 0.0  ;;  %v4357_v35 = vpop.eup %4356  ;;  %vm2783_vm9 = vcmp.eq.s32.totalorder %v5086_v5, %v5927_v40  ;;  %v3001_v29 = vsel %vm2136_vm6, %v2895_v26, 0.0 }
 0x50c   :  { %v2461_v25 = vsel %vm2136_vm6, %v4357_v35, 0.0  ;;  %v4359_v21 = vpop.eup %4358  ;;  %v3677_v23 = vsel %vm2783_vm9, 1.0, %v5905_v33  ;;  %v5929_v35 = vld [vmem:[#allocation9_spill] sm:$0xff] }
 0x50d   :  { %v2897_v36 = vmul.f32 %v3677_v23, %v5925_v61  ;;  %v2470_v10 = vsel %vm2136_vm6, %v4359_v21, 0.0  ;;  %v4361_v6 = vpop.eup %4360  ;;  %vm2780_vm11 = vcmp.eq.s32.totalorder %v5086_v5, %v5929_v35  ;;  %v5931_v23 = vld [vmem:[#allocation15_spill] sm:$0xff] }
 0x50e   :  { %v2467_v31 = vsel %vm2136_vm6, %v4361_v6, 0.0  ;;  %v3674_v40 = vsel %vm2780_vm11, 1.0, %v5905_v33  ;;  %vm2784_vm13 = vcmp.eq.s32.totalorder %v5086_v5, %v5931_v23 }
 0x50f   :  { %2990 = vadd.xlane.f32.xlu0 %v2989_v51  ;;  %2465 = vadd.xlane.f32.xlu1 %v2464_v50  ;;  %v3007_v41 = vsel %vm2136_vm6, %v2897_v36, 0.0  ;;  %v5928_v51 = vld [vmem:[#allocation8_spill] sm:$0xff]  ;;  %v4363_v1 = vpop.eup %4362  ;;  %v3678_v36 = vsel %vm2784_vm13, 1.0, %v5905_v33 }
 0x510   :  { %vm2778_vm10 = vcmp.eq.s32.totalorder %v5086_v5, %v5928_v51  ;;  %v2473_v61 = vsel %vm2136_vm6, %v4363_v1, 0.0 }
 0x511   :  { %v3672_v50 = vsel %vm2778_vm10, 1.0, %v5905_v33 }
 0x512   :  { %v2892_v47 = vmul.f32 %v3672_v50, %v5334_v46 }
 0x513   :  { %2996 = vadd.xlane.f32.xlu0 %v2995_v12  ;;  %2462 = vadd.xlane.f32.xlu1 %v2461_v25  ;;  %v5930_v12 = vld [vmem:[#allocation14_spill] sm:$0xff]  ;;  %v2894_v25 = vmul.f32 %v3674_v40, %v5350_v16 }
 0x514   :  { %vm2782_vm12 = vcmp.eq.s32.totalorder %v5086_v5, %v5930_v12  ;;  %v2992_v26 = vsel %vm2136_vm6, %v2892_v47, 0.0 }
 0x515   :  { %v3676_v21 = vsel %vm2782_vm12, 1.0, %v5905_v33 }
 0x516   :  { %v2896_v46 = vmul.f32 %v3676_v21, %v5364_v24 }
 0x517   :  { %3002 = vadd.xlane.f32.xlu0 %v3001_v29  ;;  %2471 = vadd.xlane.f32.xlu1 %v2470_v10  ;;  %v2998_v29 = vsel %vm2136_vm6, %v2894_v25, 0.0  ;;  %v2370_v10 = vpop.xlane.xlu1 %2369 }
 0x518   :  { %v3004_v6 = vsel %vm2136_vm6, %v2896_v46, 0.0 }
 0x51b   :  { %3008 = vadd.xlane.f32.xlu0 %v3007_v41  ;;  %2468 = vadd.xlane.f32.xlu1 %v2467_v31  ;;  %v2898_v41 = vmul.f32 %v3678_v36, %v5382_v39  ;;  %v2373_v16 = vpop.xlane.xlu1 %2372  ;;  %v5724_v31 = vpop.xlane.xlu0 %2945 }
 0x51d   :  { %v3010_v51 = vsel %vm2136_vm6, %v2898_v41, 0.0  ;;  %vm3378_vm6 = vcmask 7168  }
 0x51f   :  { %2474 = vadd.xlane.f32.xlu1 %v2473_v61  ;;  %v2382_v5 = vpop.xlane.xlu1 %2381  ;;  %v5726_v1 = vpop.xlane.xlu0 %2948 }
 0x523   :  { %2993 = vadd.xlane.f32.xlu1 %v2992_v26  ;;  %v2367_v50 = vpop.xlane.xlu0 %2366  ;;  %v2379_v24 = vpop.xlane.xlu1 %2378 }
 0x524   :  { %4364 = vlog2.f32 %v2367_v50 }
 0x525   :  { %4366 = vlog2.f32 %v2370_v10 }
 0x526   :  { %4368 = vlog2.f32 %v2373_v16 }
 0x527   :  { %2999 = vadd.xlane.f32.xlu1 %v2998_v29  ;;  %v2376_v35 = vpop.xlane.xlu0 %2375  ;;  %v2388_v61 = vpop.xlane.xlu1 %2387 }
 0x528   :  { %4370 = vlog2.f32 %v2376_v35 }
 0x529   :  { %4372 = vlog2.f32 %v2379_v24 }
 0x52a   :  { %4374 = vlog2.f32 %v2382_v5 }
 0x52b   :  { %3005 = vadd.xlane.f32.xlu1 %v3004_v6  ;;  %v2385_v47 = vpop.xlane.xlu0 %2384  ;;  %v5728_v40 = vpop.xlane.xlu1 %2987 }
 0x52c   :  { %4376 = vlog2.f32 %v2385_v47 }
 0x52d   :  { %4378 = vlog2.f32 %v2388_v61  ;;  %v5935_v61 = vld [vmem:[#allocation19_spill] sm:$0xff] }
 0x52e   :  { %v4365_v12 = vpop.eup %4364 }
 0x52f   :  { %3011 = vadd.xlane.f32.xlu1 %v3010_v51  ;;  %v2394_v39 = vpop.xlane.xlu0 %2393  ;;  %v4367_v25 = vpop.eup %4366  ;;  %v2480_v23 = vmul.f32 0.6931472, %v4365_v12  ;;  %v5932_v51 = vld [vmem:[#allocation16_spill] sm:$0xff]  ;;  %v5933_v12 = vld [vmem:[#allocation18_spill] sm:$0xff] }
 0x530   :  { %v4369_v21 = vpop.eup %4368  ;;  %v2482_v36 = vmul.f32 0.6931472, %v4367_v25 }
 0x531   :  { %v2484_v6 = vmul.f32 0.6931472, %v4369_v21  ;;  %v2555_v41 = vadd.f32 %v2480_v23, %v5401_v13  ;;  %v5934_v21 = vld [vmem:[#allocation21_spill] sm:$0xff] }
 0x532   :  { %v4371_v10 = vpop.eup %4370  ;;  %v2556_v50 = vadd.f32 %v2482_v36, %v5932_v51 }
 0x533   :  { %v4373_v16 = vpop.eup %4372  ;;  %v2557_v24 = vadd.f32 %v2484_v6, %v5415_v48  ;;  %v3013_v5 = vsub.f32 %v2555_v41, %v5933_v12  ;;  %v2486_v52 = vmul.f32 0.6931472, %v4371_v10  ;;  %v5936_v12 = vld [vmem:[#allocation20_spill] sm:$0xff] }
 0x534   :  { %v2391_v29 = vpop.xlane.xlu0 %2390  ;;  %v2488_v47 = vmul.f32 0.6931472, %v4373_v16  ;;  %v4375_v32 = vpop.eup %4374  ;;  %v3014_v25 = vsub.f32 %v2556_v50, %v5410_v44 }
 0x535   :  { %4380 = vlog2.f32 %v2391_v29  ;;  %v3015_v18 = vsub.f32 %v2557_v24, %v5934_v21  ;;  %v3379_v48 = vsel %vm3378_vm6, %v3013_v5, 0.0  ;;  %v2558_v6 = vadd.f32 %v2486_v52, %v5935_v61 }
 0x536   :  { %v4377_v23 = vpop.eup %4376  ;;  %v2559_v29 = vadd.f32 %v2488_v47, %v5428_v15  ;;  %4382 = vlog2.f32 %v2394_v39  ;;  %v3380_v10 = vsel %vm3378_vm6, %v3014_v25, 0.0  ;;  %v2490_v16 = vmul.f32 0.6931472, %v4375_v32 }
 0x537   :  { %v3382_v41 = vsel %vm3378_vm6, %v3015_v18, 0.0  ;;  %v2492_v44 = vmul.f32 0.6931472, %v4377_v23  ;;  %v3381_v51 = vadd.f32 %v3380_v10, %v3379_v48  ;;  %v4379_v24 = vpop.eup %4378  ;;  %v3016_v21 = vsub.f32 %v2558_v6, %v5936_v12  ;;  %v5938_v12 = vld [vmem:[#allocation24_spill] sm:$0xff] }
 0x538   :  { %v5730_v26 = vpop.xlane.xlu1 %2405  ;;  %v2400_v35 = vpop.xlane.xlu0 %2399  ;;  %v3017_v7 = vsub.f32 %v2559_v29, %v5440_v11  ;;  %v2560_v15 = vadd.f32 %v2490_v16, %v5421_v53  ;;  %v2494_v25 = vmul.f32 0.6931472, %v4379_v24 }
 0x539   :  { %v3383_v61 = vadd.f32 %v3382_v41, %v3381_v51  ;;  %v2561_v39 = vadd.f32 %v2492_v44, %v5445_v28  ;;  %v3384_v32 = vsel %vm3378_vm6, %v3016_v21, 0.0 }
 0x53a   :  { %v3386_v47 = vsel %vm3378_vm6, %v3017_v7, 0.0  ;;  %v3018_v11 = vsub.f32 %v2560_v15, %v5435_v4 }
 0x53b   :  { %v3385_v23 = vadd.f32 %v3384_v32, %v3383_v61  ;;  %v3019_v6 = vsub.f32 %v2561_v39, %v5460_v58  ;;  %v5939_v39 = vld [vmem:[#allocation23_spill] sm:$0xff] }
 0x53c   :  { %v3388_v7 = vsel %vm3378_vm6, %v3018_v11, 0.0 }
 0x53d   :  { %v3387_v10 = vadd.f32 %v3386_v47, %v3385_v23  ;;  %v3390_v16 = vsel %vm3378_vm6, %v3019_v6, 0.0 }
 0x53f   :  { %v4381_v52 = vpop.eup %4380  ;;  %v3389_v51 = vadd.f32 %v3388_v7, %v3387_v10 }
 0x540   :  { %v2397_v13 = vpop.xlane.xlu0 %2396  ;;  %v4383_v48 = vpop.eup %4382 }
 0x541   :  { %4384 = vlog2.f32 %v2397_v13  ;;  %v2496_v13 = vmul.f32 0.6931472, %v4381_v52  ;;  %v2498_v44 = vmul.f32 0.6931472, %v4383_v48 }
 0x542   :  { %4386 = vlog2.f32 %v2400_v35  ;;  %v5937_v35 = vld [vmem:[#allocation22_spill] sm:$0xff] }
 0x543   :  { %v2563_v41 = vadd.f32 %v2496_v13, %v5466_v57  ;;  %v3391_v57 = vadd.f32 %v3390_v16, %v3389_v51  ;;  %v5941_v51 = vld [vmem:[#allocation27_spill] sm:$0xff] }
 0x544   :  { %v5747_v5 = vpop.xlane.xlu0 %2951 }
 0x545   :  { %v3021_v52 = vsub.f32 %v2563_v41, %v5478_v59 }
 0x548   :  { %v5755_v29 = vpop.xlane.xlu0 %2954 }
 0x54b   :  { %v4385_v53 = vpop.eup %4384 }
 0x54c   :  { %v2403_v46 = vpop.xlane.xlu1 %2402  ;;  %v2500_v4 = vmul.f32 0.6931472, %v4385_v53  ;;  %v4387_v24 = vpop.eup %4386 }
 0x54d   :  { %4388 = vlog2.f32 %v2403_v46  ;;  %v2562_v46 = vadd.f32 %v2494_v25, %v5937_v35  ;;  %v5764_v61 = vpop.xlane.xlu0 %2957  ;;  %v3394_v25 = vsel %vm3378_vm6, %v3021_v52, 0.0  ;;  %v2502_v13 = vmul.f32 0.6931472, %v4387_v24 }
 0x54e   :  { %4390 = vlog2.f32 %v5730_v26  ;;  %v2564_v26 = vadd.f32 %v2498_v44, %v5939_v39 }
 0x54f   :  { %v3020_v21 = vsub.f32 %v2562_v46, %v5938_v12 }
 0x550   :  { %v5735_v33 = vpop.xlane.xlu1 %2411  ;;  %v3022_v11 = vsub.f32 %v2564_v26, %v5473_v20 }
 0x551   :  { %v3392_v47 = vsel %vm3378_vm6, %v3020_v21, 0.0  ;;  %v5773_v53 = vpop.xlane.xlu0 %2960 }
 0x552   :  { %v3393_v48 = vadd.f32 %v3392_v47, %v3391_v57  ;;  %v3396_v41 = vsel %vm3378_vm6, %v3022_v11, 0.0 }
 0x555   :  { %v5781_v21 = vpop.xlane.xlu0 %2963 }
 0x557   :  { %v4389_v15 = vpop.eup %4388 }
 0x558   :  { %v2409_v36 = vpop.xlane.xlu1 %2408  ;;  %v2504_v23 = vmul.f32 0.6931472, %v4389_v15  ;;  %v4391_v59 = vpop.eup %4390 }
 0x559   :  { %4392 = vlog2.f32 %v2409_v36  ;;  %v2565_v36 = vadd.f32 %v2500_v4, %v5481_v9  ;;  %v3395_v9 = vadd.f32 %v3394_v25, %v3393_v48  ;;  %v2506_v7 = vmul.f32 0.6931472, %v4391_v59  ;;  %v5789_v48 = vpop.xlane.xlu0 %2966 }
 0x55a   :  { %4394 = vlog2.f32 %v5735_v33  ;;  %v5940_v33 = vld [vmem:[#allocation25_spill] sm:$0xff]  ;;  %v2567_v46 = vadd.f32 %v2504_v23, %v5496_v38  ;;  %v5942_v38 = vld [vmem:[#allocation26_spill] sm:$0xff] }
 0x55b   :  { %v3023_v6 = vsub.f32 %v2565_v36, %v5490_v49  ;;  %v3397_v20 = vadd.f32 %v3396_v41, %v3395_v9 }
 0x55c   :  { %v2418_v50 = vpop.xlane.xlu1 %2417  ;;  %v3025_v12 = vsub.f32 %v2567_v46, %v5510_v55 }
 0x55d   :  { %v3398_v16 = vsel %vm3378_vm6, %v3023_v6, 0.0  ;;  %v5796_v41 = vpop.xlane.xlu0 %2969 }
 0x55e   :  { %v3399_v15 = vadd.f32 %v3398_v16, %v3397_v20  ;;  %v3402_v26 = vsel %vm3378_vm6, %v3025_v12, 0.0 }
 0x560   :  { %v2415_v18 = vpop.xlane.xlu1 %2414 }
 0x561   :  { %4396 = vlog2.f32 %v2415_v18  ;;  %v2566_v18 = vadd.f32 %v2502_v13, %v5940_v33 }
 0x562   :  { %4398 = vlog2.f32 %v2418_v50  ;;  %v2568_v50 = vadd.f32 %v2506_v7, %v5942_v38 }
 0x563   :  { %v4393_v10 = vpop.eup %4392  ;;  %v3024_v24 = vsub.f32 %v2566_v18, %v5941_v51 }
 0x564   :  { %v2424_v28 = vpop.xlane.xlu1 %2423  ;;  %v2508_v44 = vmul.f32 0.6931472, %v4393_v10  ;;  %v4395_v49 = vpop.eup %4394  ;;  %v3026_v55 = vsub.f32 %v2568_v50, %v5503_v22 }
 0x565   :  { %v3400_v39 = vsel %vm3378_vm6, %v3024_v24, 0.0  ;;  %v2510_v36 = vmul.f32 0.6931472, %v4395_v49 }
 0x566   :  { %v3401_v25 = vadd.f32 %v3400_v39, %v3399_v15  ;;  %v3404_v10 = vsel %vm3378_vm6, %v3026_v55, 0.0 }
 0x568   :  { %v2421_v58 = vpop.xlane.xlu1 %2420  ;;  %v3403_v11 = vadd.f32 %v3402_v26, %v3401_v25 }
 0x569   :  { %4400 = vlog2.f32 %v2421_v58  ;;  %v2569_v58 = vadd.f32 %v2508_v44, %v5521_v56 }
 0x56a   :  { %4402 = vlog2.f32 %v2424_v28  ;;  %v2570_v28 = vadd.f32 %v2510_v36, %v5488_v30  ;;  %v3405_v22 = vadd.f32 %v3404_v10, %v3403_v11 }
 0x56b   :  { %v4397_v52 = vpop.eup %4396  ;;  %v3027_v23 = vsub.f32 %v2569_v58, %v5530_v17 }
 0x56c   :  { %v2430_v32 = vpop.xlane.xlu1 %2429  ;;  %v2512_v47 = vmul.f32 0.6931472, %v4397_v52  ;;  %v4399_v13 = vpop.eup %4398  ;;  %v3028_v46 = vsub.f32 %v2570_v28, %v5724_v31 }
 0x56d   :  { %v3406_v9 = vsel %vm3378_vm6, %v3027_v23, 0.0 }
 0x56e   :  { %v2571_v6 = vadd.f32 %v2512_v47, %v5542_v19  ;;  %v3407_v16 = vadd.f32 %v3406_v9, %v3405_v22  ;;  %v5943_v19 = vld [vmem:[#allocation28_spill] sm:$0xff]  ;;  %v3408_v51 = vsel %vm3378_vm6, %v3028_v46, 0.0 }
 0x570   :  { %v2427_v35 = vpop.xlane.xlu1 %2426  ;;  %v3029_v7 = vsub.f32 %v2571_v6, %v5726_v1  ;;  %v3409_v31 = vadd.f32 %v3408_v51, %v3407_v16  ;;  %v2973_v1 = vpop.xlane.xlu0 %2972 }
 0x571   :  { %4404 = vlog2.f32 %v2427_v35  ;;  %v2514_v35 = vmul.f32 0.6931472, %v4399_v13 }
 0x572   :  { %4406 = vlog2.f32 %v2430_v32  ;;  %v3410_v24 = vsel %vm3378_vm6, %v3029_v7, 0.0 }
 0x573   :  { %v4401_v59 = vpop.eup %4400  ;;  %v2572_v32 = vadd.f32 %v2514_v35, %v5943_v19  ;;  %v3411_v58 = vadd.f32 %v3410_v24, %v3409_v31 }
 0x574   :  { %v2436_v4 = vpop.xlane.xlu1 %2435  ;;  %v2516_v33 = vmul.f32 0.6931472, %v4401_v59  ;;  %v4403_v17 = vpop.eup %4402 }
 0x575   :  { %v2518_v20 = vmul.f32 0.6931472, %v4403_v17  ;;  %v3030_v15 = vsub.f32 %v2572_v32, %v5747_v5  ;;  %v2976_v55 = vpop.xlane.xlu0 %2975 }
 0x576   :  { %v2573_v44 = vadd.f32 %v2516_v33, %v5552_v0 }
 0x577   :  { %v2574_v0 = vadd.f32 %v2518_v20, %v5535_v62  ;;  %v3412_v39 = vsel %vm3378_vm6, %v3030_v15, 0.0 }
 0x578   :  { %v2433_v57 = vpop.xlane.xlu1 %2432  ;;  %v3031_v38 = vsub.f32 %v2573_v44, %v5755_v29  ;;  %v3413_v25 = vadd.f32 %v3412_v39, %v3411_v58 }
 0x579   :  { %4408 = vlog2.f32 %v2433_v57  ;;  %v3032_v5 = vsub.f32 %v2574_v0, %v5764_v61  ;;  %v2979_v33 = vpop.xlane.xlu0 %2978 }
 0x57a   :  { %4410 = vlog2.f32 %v2436_v4  ;;  %v3414_v26 = vsel %vm3378_vm6, %v3031_v38, 0.0 }
 0x57b   :  { %v4405_v30 = vpop.eup %4404  ;;  %v3415_v59 = vadd.f32 %v3414_v26, %v3413_v25 }
 0x57c   :  { %v2442_v56 = vpop.xlane.xlu1 %2441  ;;  %v2520_v12 = vmul.f32 0.6931472, %v4405_v30  ;;  %v4407_v52 = vpop.eup %4406 }
 0x57d   :  { %v2522_v36 = vmul.f32 0.6931472, %v4407_v52  ;;  %v2982_v20 = vpop.xlane.xlu0 %2981 }
 0x57e   :  { %v2575_v57 = vadd.f32 %v2520_v12, %v5567_v27 }
 0x57f   :  { %v2576_v27 = vadd.f32 %v2522_v36, %v5556_v2 }
 0x580   :  { %v2439_v18 = vpop.xlane.xlu1 %2438  ;;  %v3033_v23 = vsub.f32 %v2575_v57, %v5773_v53 }
 0x581   :  { %4412 = vlog2.f32 %v2439_v18  ;;  %v3034_v53 = vsub.f32 %v2576_v27, %v5781_v21  ;;  %v2985_v58 = vpop.xlane.xlu0 %2984 }
 0x582   :  { %4414 = vlog2.f32 %v2442_v56  ;;  %v3416_v56 = vsel %vm3378_vm6, %v3032_v5, 0.0  ;;  %v3418_v6 = vsel %vm3378_vm6, %v3033_v23, 0.0 }
 0x583   :  { %v4409_v50 = vpop.eup %4408  ;;  %v3417_v9 = vadd.f32 %v3416_v56, %v3415_v59  ;;  %v3420_v7 = vsel %vm3378_vm6, %v3034_v53, 0.0 }
 0x584   :  { %v2448_v49 = vpop.xlane.xlu1 %2447  ;;  %v2524_v47 = vmul.f32 0.6931472, %v4409_v50  ;;  %v4411_v29 = vpop.eup %4410 }
 0x585   :  { %v2526_v10 = vmul.f32 0.6931472, %v4411_v29  ;;  %v3419_v2 = vadd.f32 %v3418_v6, %v3417_v9 }
 0x586   :  { %v2577_v11 = vadd.f32 %v2524_v47, %v5587_v45 }
 0x587   :  { %v2578_v45 = vadd.f32 %v2526_v10, %v5577_v34  ;;  %v3421_v32 = vadd.f32 %v3420_v7, %v3419_v2 }
 0x588   :  { %v2445_v4 = vpop.xlane.xlu1 %2444  ;;  %v3035_v22 = vsub.f32 %v2577_v11, %v5789_v48 }
 0x589   :  { %4416 = vlog2.f32 %v2445_v4  ;;  %v3036_v21 = vsub.f32 %v2578_v45, %v5796_v41 }
 0x58a   :  { %4418 = vlog2.f32 %v2448_v49  ;;  %v3422_v30 = vsel %vm3378_vm6, %v3035_v22, 0.0 }
 0x58b   :  { %v4413_v62 = vpop.eup %4412  ;;  %v3423_v51 = vadd.f32 %v3422_v30, %v3421_v32  ;;  %v3424_v31 = vsel %vm3378_vm6, %v3036_v21, 0.0  ;;  %v5944_v32 = vlaneseq }
 0x58c   :  { %v2454_v13 = vpop.xlane.xlu1 %2453  ;;  %v2528_v61 = vmul.f32 0.6931472, %v4413_v62  ;;  %v4415_v35 = vpop.eup %4414 }
 0x58d   :  { %v2530_v16 = vmul.f32 0.6931472, %v4415_v35  ;;  %v3425_v50 = vadd.f32 %v3424_v31, %v3423_v51 }
 0x58e   :  { %v2579_v46 = vadd.f32 %v2528_v61, %v5605_v8 }
 0x58f   :  { %v2580_v34 = vadd.f32 %v2530_v16, %v5597_v60 }
 0x590   :  { %v2451_v28 = vpop.xlane.xlu1 %2450  ;;  %v3037_v48 = vsub.f32 %v2579_v46, %v2973_v1 }
 0x591   :  { %4420 = vlog2.f32 %v2451_v28  ;;  %v3038_v41 = vsub.f32 %v2580_v34, %v2976_v55 }
 0x592   :  { %4422 = vlog2.f32 %v2454_v13  ;;  %v3426_v52 = vsel %vm3378_vm6, %v3037_v48, 0.0 }
 0x593   :  { %v4417_v18 = vpop.eup %4416  ;;  %v3427_v4 = vadd.f32 %v3426_v52, %v3425_v50  ;;  %v3428_v26 = vsel %vm3378_vm6, %v3038_v41, 0.0 }
 0x594   :  { %v2460_v17 = vpop.xlane.xlu1 %2459  ;;  %v2532_v19 = vmul.f32 0.6931472, %v4417_v18  ;;  %v4419_v49 = vpop.eup %4418 }
 0x595   :  { %v2534_v15 = vmul.f32 0.6931472, %v4419_v49  ;;  %v3429_v25 = vadd.f32 %v3428_v26, %v3427_v4  ;;  %v5945_v49 = vld [vmem:[#allocation31_spill] sm:$0xff]  ;;  %v5947_v4 = vld [vmem:[#allocation29_spill] sm:$0xff] }
 0x596   :  { %v2581_v8 = vadd.f32 %v2532_v19, %v5620_v37 }
 0x597   :  { %v2582_v39 = vadd.f32 %v2534_v15, %v5615_v3 }
 0x598   :  { %v2457_v44 = vpop.xlane.xlu1 %2456  ;;  %v3039_v1 = vsub.f32 %v2581_v8, %v2979_v33  ;;  %v2478_v5 = vpop.xlane.xlu0 %2477 }
 0x599   :  { %4424 = vlog2.f32 %v2457_v44  ;;  %v3040_v55 = vsub.f32 %v2582_v39, %v2982_v20  ;;  %v3149_v44 = vshrl.u32 %v5944_v32, 7 }
 0x59a   :  { %4426 = vlog2.f32 %v2460_v17  ;;  %v3430_v36 = vsel %vm3378_vm6, %v3039_v1, 0.0 }
 0x59b   :  { %v4421_v24 = vpop.eup %4420  ;;  %v3431_v62 = vadd.f32 %v3430_v36, %v3429_v25  ;;  %v3432_v11 = vsel %vm3378_vm6, %v3040_v55, 0.0  ;;  %v3186_v15 = vadd.s32 296, %v3149_v44 }
 0x59c   :  { %v2466_v12 = vpop.xlane.xlu1 %2465  ;;  %v2536_v38 = vmul.f32 0.6931472, %v4421_v24  ;;  %v4423_v0 = vpop.eup %4422 }
 0x59d   :  { %v2538_v47 = vmul.f32 0.6931472, %v4423_v0  ;;  %v2991_v28 = vpop.xlane.xlu0 %2990  ;;  %v3433_v6 = vadd.f32 %v3432_v11, %v3431_v62  ;;  %vm3263_vm14 = vcmp.lt.s32.totalorder %v3186_v15, 300 }
 0x59e   :  { %v2583_v60 = vadd.f32 %v2536_v38, %v5628_v54  ;;  %v5946_v38 = vld [vmem:[#allocation30_spill] sm:$0xff] }
 0x59f   :  { %v2584_v3 = vadd.f32 %v2538_v47, %v5630_v63  ;;  %v5948_v47 = vld [vmem:[#allocation13_spill] sm:$0xff] }
 0x5a0   :  { %v2463_v57 = vpop.xlane.xlu1 %2462  ;;  %v3041_v23 = vsub.f32 %v2583_v60, %v2985_v58 }
 0x5a1   :  { %4428 = vlog2.f32 %v2463_v57  ;;  %v3042_v61 = vsub.f32 %v2584_v3, %v5728_v40  ;;  %v2997_v45 = vpop.xlane.xlu0 %2996 }
 0x5a2   :  { %4430 = vlog2.f32 %v2466_v12  ;;  %v3434_v56 = vsel %vm3378_vm6, %v3041_v23, 0.0  ;;  %v5949_v23 = vld [vmem:[#allocation32_spill] sm:$0xff] }
 0x5a3   :  { %v4425_v37 = vpop.eup %4424  ;;  %v3435_v53 = vadd.f32 %v3434_v56, %v3433_v6  ;;  %v3436_v2 = vsel %vm3378_vm6, %v3042_v61, 0.0 }
 0x5a4   :  { %v2540_v13 = vmul.f32 0.6931472, %v4425_v37  ;;  %v2472_v29 = vpop.xlane.xlu1 %2471  ;;  %v4427_v59 = vpop.eup %4426 }
 0x5a5   :  { %4432 = vlog2.f32 %v2472_v29  ;;  %v2542_v9 = vmul.f32 0.6931472, %v4427_v59  ;;  %v3437_v30 = vadd.f32 %v3436_v2, %v3435_v53  ;;  %v3003_v31 = vpop.xlane.xlu0 %3002 }
 0x5a6   :  { %v2585_v54 = vadd.f32 %v2540_v13, %v5647_v43 }
 0x5a7   :  { %v2586_v46 = vadd.f32 %v2542_v9, %v5635_v42 }
 0x5a8   :  { %v2469_v27 = vpop.xlane.xlu1 %2468  ;;  %v3043_v35 = vsub.f32 %v2585_v54, %v2991_v28  ;;  %v5950_v54 = vmov 0.0  }
 0x5a9   :  { %4434 = vlog2.f32 %v2469_v27  ;;  %v3009_v13 = vpop.xlane.xlu0 %3008  ;;  %v3679_v59 = vsel %vm3263_vm14, 1.0, %v5950_v54 }
 0x5aa   :  { %4436 = vlog2.f32 %v2478_v5  ;;  %v3438_v17 = vsel %vm3378_vm6, %v3043_v35, 0.0 }
 0x5ab   :  { %v4429_v10 = vpop.eup %4428  ;;  %v3439_v20 = vadd.f32 %v3438_v17, %v3437_v30 }
 0x5ac   :  { %v4431_v33 = vpop.eup %4430  ;;  %v2544_v63 = vmul.f32 0.6931472, %v4429_v10  ;;  %v2475_v22 = vpop.xlane.xlu1 %2474 }
 0x5ad   :  { %4438 = vlog2.f32 %v2475_v22  ;;  %v2546_v18 = vmul.f32 0.6931472, %v4431_v33 }
 0x5ae   :  { %v2587_v43 = vadd.f32 %v2544_v63, %v5640_v14 }
 0x5af   :  { %v4433_v7 = vpop.eup %4432  ;;  %v2588_v51 = vadd.f32 %v2546_v18, %v5945_v49 }
 0x5b0   :  { %v2994_v40 = vpop.xlane.xlu1 %2993  ;;  %v3045_v16 = vsub.f32 %v2587_v43, %v2997_v45  ;;  %v2550_v48 = vmul.f32 0.6931472, %v4433_v7 }
 0x5b1   :  { %v3044_v19 = vsub.f32 %v2586_v46, %v2994_v40 }
 0x5b2   :  { %v3442_v42 = vsel %vm3378_vm6, %v3045_v16, 0.0  ;;  %v2590_v57 = vadd.f32 %v2550_v48, %v5947_v4 }
 0x5b3   :  { %v4435_v21 = vpop.eup %4434  ;;  %v3440_v14 = vsel %vm3378_vm6, %v3044_v19, 0.0 }
 0x5b4   :  { %v4437_v24 = vpop.eup %4436  ;;  %v2548_v34 = vmul.f32 0.6931472, %v4435_v21  ;;  %v3441_v8 = vadd.f32 %v3440_v14, %v3439_v20  ;;  %v3000_v12 = vpop.xlane.xlu1 %2999 }
 0x5b5   :  { %v3046_v52 = vsub.f32 %v2588_v51, %v3000_v12  ;;  %v2554_v1 = vmul.f32 0.6931472, %v4437_v24 }
 0x5b6   :  { %v2589_v50 = vadd.f32 %v2548_v34, %v5946_v38  ;;  %v3443_v58 = vadd.f32 %v3442_v42, %v3441_v8 }
 0x5b7   :  { %v4439_v41 = vpop.eup %4438  ;;  %v3444_v0 = vsel %vm3378_vm6, %v3046_v52, 0.0  ;;  %v2592_v62 = vadd.f32 %v2554_v1, %v5949_v23 }
 0x5b8   :  { %v3047_v39 = vsub.f32 %v2589_v50, %v3003_v31  ;;  %v2552_v60 = vmul.f32 0.6931472, %v4439_v41  ;;  %v3445_v37 = vadd.f32 %v3444_v0, %v3443_v58  ;;  %v3006_v26 = vpop.xlane.xlu1 %3005 }
 0x5b9   :  { %v3048_v36 = vsub.f32 %v2590_v57, %v3006_v26 }
 0x5ba   :  { %v2591_v5 = vadd.f32 %v2552_v60, %v5948_v47  ;;  %v3446_v25 = vsel %vm3378_vm6, %v3047_v39, 0.0 }
 0x5bb   :  { %v3447_v29 = vadd.f32 %v3446_v25, %v3445_v37  ;;  %v3448_v55 = vsel %vm3378_vm6, %v3048_v36, 0.0 }
 0x5bc   :  { %v3049_v3 = vsub.f32 %v2591_v5, %v3009_v13  ;;  %v3012_v27 = vpop.xlane.xlu1 %3011 }
 0x5bd   :  { %v3449_v11 = vadd.f32 %v3448_v55, %v3447_v29  ;;  %v3050_v56 = vsub.f32 %v2592_v62, %v3012_v27 }
 0x5be   :  { %v3450_v28 = vsel %vm3378_vm6, %v3049_v3, 0.0 }
 0x5bf   :  { %v3451_v6 = vadd.f32 %v3450_v28, %v3449_v11  ;;  %v3377_v10 = vmul.f32 %v3679_v59, %v3050_v56 }
 0x5c1   :  { %v3452_v61 = vsel %vm3378_vm6, %v3377_v10, 0.0 }
 0x5c2   :  { %v3453_v9 = vadd.f32 %v3452_v61, %v3451_v6 }
 0x5c4   :  { %3454 = vadd.xlane.f32.xlu0 %v3453_v9 }
 0x651   :  { %v3455_v35 = vpop.xlane.xlu0 %3454 }
 0x652   :  { %v3456_v33 = vrot.slane %v3455_v35, 4 }
 0x654   :  { %v3457_v53 = vadd.f32 %v3456_v33, %v3455_v35 }
 0x656   :  { %v3458_v63 = vrot.slane %v3457_v53, 2 }
 0x658   :  { %v3459_v22 = vadd.f32 %v3458_v63, %v3457_v53 }
 0x65a   :  { %v3460_v43 = vrot.slane %v3459_v22, 1 }
 0x65c   :  { %v3461_v18 = vadd.f32 %v3460_v43, %v3459_v22 }
 0x65e   :  { %4048 = vpush %v3461_v18 }
 0x68f   :  { %s4049_s11 = spop %4048 }
 0x690   :  { %v3463_v2 = vstv %s4049_s11 }
 0x691   :  { %3465 = vst.msk [vmem:[#allocation5] sm:$0x1] %vm3464_vm15, %v3463_v2 }
 0x692   :  { %4473 = shalt.err (!%p4470_p12)
}
 0x693   :  { %s4474_s14 = scalar_lea.hbm %s5875_s10, 16 }
 0x694   :  { %p4475_p13 = scmp.ne.s32.totalorder %s5875_s10, %s4474_s14  ;;  %p4478_p0 = scmp.lt.u32.totalorder %s4474_s14, %s5875_s10 }
 0x696   :  { %p4480_p1 = pnand %p4478_p0, %p4475_p13 }
 0x698   :  { %4483 = shalt.err (!%p4480_p1)
}
 0x699   :  { %3475 = dma.vmem_to_hbm [thread:$0]  %s3473_s30, 16, %s5875_s10, [#allocation4]  }
 0x69a   :  { %4486 = dma.done.wait [#allocation4], 16  }
 0x69b   :  { %4487 = vsyncadd [#allocation4], 4294967280 }
 0x69c   :  { %3479 = vsyncpa [#allocation3], 1 }
 0x69d   :  { %3480 = vsyncpa [#allocation4], 1 }

</bundles_post_ra>
